<compile_context>
chip_gen: v7x
topology: tpu7x:2x2x1
jax: 0.10.0
libtpu: 0.0.40
codegen_flags: <defaults>
</compile_context>

<pallas_src>
import functools

import numpy as np
import jax
import jax.numpy as jnp
from jax.experimental import pallas as pl
from jax.experimental.pallas import tpu as pltpu


def _round_up(x, m):
    return ((x + m - 1) // m) * m


def _cdiv(a, b):
    return -(-a // b)


# ----------------------------------------------------------------------------
# Host-side constants: slaney-scale mel filterbank (librosa.filters.mel) + hann
# ----------------------------------------------------------------------------
def _hz_to_mel(f):
    f = np.asarray(f, dtype=np.float64)
    f_sp = 200.0 / 3.0
    min_log_hz = 1000.0
    min_log_mel = min_log_hz / f_sp
    logstep = np.log(6.4) / 27.0
    lin = f / f_sp
    log = min_log_mel + np.log(np.maximum(f, 1e-10) / min_log_hz) / logstep
    return np.where(f >= min_log_hz, log, lin)


def _mel_to_hz(m):
    m = np.asarray(m, dtype=np.float64)
    f_sp = 200.0 / 3.0
    min_log_hz = 1000.0
    min_log_mel = min_log_hz / f_sp
    logstep = np.log(6.4) / 27.0
    lin = m * f_sp
    log = min_log_hz * np.exp(logstep * (m - min_log_mel))
    return np.where(m >= min_log_mel, log, lin)


def _librosa_mel_fn(sr, n_fft, n_mels, fmin, fmax):
    if fmax is None:
        fmax = float(sr) / 2.0
    n_freq = 1 + n_fft // 2
    fftfreqs = np.linspace(0.0, float(sr) / 2.0, n_freq)
    mel_f = _mel_to_hz(np.linspace(_hz_to_mel(fmin), _hz_to_mel(fmax), n_mels + 2))
    fdiff = np.diff(mel_f)
    ramps = mel_f[:, None] - fftfreqs[None, :]
    weights = np.zeros((n_mels, n_freq), dtype=np.float64)
    for i in range(n_mels):
        lower = -ramps[i] / fdiff[i]
        upper = ramps[i + 2] / fdiff[i + 1]
        weights[i] = np.maximum(0.0, np.minimum(lower, upper))
    enorm = 2.0 / (mel_f[2:n_mels + 2] - mel_f[:n_mels])          # slaney norm
    weights *= enorm[:, None]
    return weights.astype(np.float32)


def _hann_window_periodic(win_length):
    n = np.arange(win_length, dtype=np.float64)
    return 0.5 - 0.5 * np.cos(2.0 * np.pi * n / win_length)


# ----------------------------------------------------------------------------
# Pallas kernel: frame rebuild + windowed DFT + magnitude + mel + log10 + T
# ----------------------------------------------------------------------------
def _audio2mel_kernel(chunks_ref, wcs_ref, melt_ref, o_ref, *,
                      f_tile, r, nf_pad, clamp):
    # chunks_ref: (1, n_chunks, hop)  bf16, whole padded audio row (constant over t)
    # wcs_ref:    (n_fft, 2*nf_pad)   bf16  [win*cos | -win*sin]
    # melt_ref:   (nf_pad, mel_pad)   bf16  mel_basis^T, zero padded
    # o_ref:      (1, mel_pad, f_tile) f32  log-mel already laid out (mel, time)
    t = pl.program_id(1)
    start = pl.multiple_of(t * f_tile, 8)

    # Aligned dynamic load of the chunk slab covering this frame tile (+ overlap).
    slab = chunks_ref[0, pl.ds(start, f_tile + 8), :].astype(jnp.float32)

    # Rebuild overlapping STFT frames: frame j = [slab[j], slab[j+1], ..., slab[j+r-1]].
    # (hop-shifted views; the 4x redundancy only ever exists in VMEM.)
    frames = jnp.concatenate([slab[k:k + f_tile, :] for k in range(r)], axis=-1)
    frames = frames.astype(jnp.bfloat16)                          # (f_tile, n_fft)

    # Windowed DFT as one fat MXU matmul; re/im halves are lane-aligned (nf_pad=640).
    y = jnp.dot(frames, wcs_ref[...], preferred_element_type=jnp.float32)
    re = y[:, :nf_pad]
    im = y[:, nf_pad:]
    mag = jnp.sqrt(re * re + im * im)                             # f32 (f_tile, nf_pad)

    mel = jnp.dot(mag.astype(jnp.bfloat16), melt_ref[...],
                  preferred_element_type=jnp.float32)             # (f_tile, mel_pad)
    log_mel = jnp.log(jnp.maximum(mel, clamp)) * np.float32(1.0 / np.log(10.0))

    # Store already transposed: (mel_pad, f_tile) -- XLU slot has slack.
    o_ref[0] = log_mel.T.astype(o_ref.dtype)


# ----------------------------------------------------------------------------
# Audio2Mel wrapper
# ----------------------------------------------------------------------------
class Audio2Mel:
    def __init__(self, n_fft=1024, hop_length=256, win_length=1024,
                 sampling_rate=22050, n_mel_channels=80,
                 mel_fmin=0.0, mel_fmax=None, frame_tile=512):
        # TODO(synk): win_length < n_fft (zero-padded window) and n_fft % hop != 0
        # are not implemented; the module's MelGAN defaults satisfy both.
        assert win_length == n_fft, "only win_length == n_fft supported"
        assert n_fft % hop_length == 0, "only n_fft % hop_length == 0 supported"
        self.n_fft = n_fft
        self.hop = hop_length
        self.r = n_fft // hop_length
        self.n_mel = n_mel_channels
        # 512 is safe on v5e/v6e/v7x (working set << 48 MiB); v6e could use 1024.
        self.frame_tile = _round_up(max(frame_tile, 128), 128)

        nf = n_fft // 2 + 1
        self.nf = nf
        self.nf_pad = _round_up(nf, 128)                  # 513 -> 640 lanes
        self.mel_pad = _round_up(n_mel_channels, 128)     # 80  -> 128 lanes

        window = _hann_window_periodic(win_length)        # float64
        n = np.arange(n_fft, dtype=np.float64)
        f = np.arange(nf, dtype=np.float64)
        ang = 2.0 * np.pi * np.outer(n, f) / float(n_fft)
        wc = window[:, None] * np.cos(ang)                # real-part weights
        ws = -window[:, None] * np.sin(ang)               # imag-part weights
        wcs = np.zeros((n_fft, 2 * self.nf_pad), dtype=np.float32)
        wcs[:, :nf] = wc
        wcs[:, self.nf_pad:self.nf_pad + nf] = ws
        self.wcs = jnp.asarray(wcs, dtype=jnp.bfloat16)   # (n_fft, 2*nf_pad)

        mel_basis = _librosa_mel_fn(sampling_rate, n_fft, n_mel_channels,
                                    mel_fmin, mel_fmax)   # (n_mel, nf)
        melt = np.zeros((self.nf_pad, self.mel_pad), dtype=np.float32)
        melt[:nf, :n_mel_channels] = mel_basis.T
        self.melt = jnp.asarray(melt, dtype=jnp.bfloat16)

        # f32 copies for the pure-JAX reference check
        self.mel_basis = jnp.asarray(mel_basis)
        self.window = jnp.asarray(window.astype(np.float32))

    # --- forward -------------------------------------------------------------
    def __call__(self, audio):
        audio = jnp.asarray(audio)
        if audio.ndim == 3:                               # (B, 1, T) -> (B, T)
            audio = audio[:, 0, :]
        B, T = audio.shape
        hop, n_fft = self.hop, self.n_fft
        p = (n_fft - hop) // 2

        # Reflect pad (matches F.pad 'reflect'); bf16 halves all downstream HBM
        # traffic and the MXU operand is bf16 anyway (numerically identical to
        # casting the frames later).
        x = jnp.pad(audio.astype(jnp.bfloat16), ((0, 0), (p, p)), mode="reflect")
        L = T + 2 * p
        n_frames = (L - n_fft) // hop + 1

        # Frame-tile selection: large tiles amortize per-grid-step overhead, but
        # keep B * n_tiles >= 2 grid steps when possible (two v7x TensorCores).
        if n_frames <= self.frame_tile:
            if B >= 2 or n_frames <= 128:
                f_tile = _round_up(n_frames, 8)           # single tile per row
            else:
                f_tile = _round_up(_cdiv(n_frames, 2), 128)
        else:
            f_tile = self.frame_tile                      # multiple of 128
        n_tiles = _cdiv(n_frames, f_tile)
        f_pad = n_tiles * f_tile

        # Hop-sized chunking of the padded audio (cheap reshape). The kernel
        # rebuilds the 4x-overlapping frames in VMEM, so the redundant framed
        # tensor never touches HBM.  "+8" chunks give slab over-read room.
        # TODO(synk): for extremely long audio (many minutes) the whole chunk row
        # is held in VMEM; segment the call along time in that case.
        n_chunks = f_pad + 8
        x = jnp.pad(x, ((0, 0), (0, n_chunks * hop - L)))
        chunks = x.reshape(B, n_chunks, hop)              # (B, n_chunks, hop) bf16

        kernel = functools.partial(_audio2mel_kernel, f_tile=f_tile, r=self.r,
                                   nf_pad=self.nf_pad, clamp=1e-5)
        out = pl.pallas_call(
            kernel,
            out_shape=jax.ShapeDtypeStruct((B, self.mel_pad, f_pad), jnp.float32),
            grid=(B, n_tiles),
            in_specs=[
                pl.BlockSpec((1, n_chunks, hop), lambda b, t: (b, 0, 0)),
                pl.BlockSpec((n_fft, 2 * self.nf_pad), lambda b, t: (0, 0)),
                pl.BlockSpec((self.nf_pad, self.mel_pad), lambda b, t: (0, 0)),
            ],
            out_specs=pl.BlockSpec((1, self.mel_pad, f_tile),
                                   lambda b, t: (b, 0, t)),
            compiler_params=pltpu.CompilerParams(
                dimension_semantics=("parallel", "parallel"),
                vmem_limit_bytes=48 * 1024 * 1024),       # safe on v7x (64 MiB/TC)
        )(chunks, self.wcs, self.melt)

        # Output is already (B, mel, time); just drop the pad lanes / frames.
        return out[:, :self.n_mel, :n_frames]


# ----------------------------------------------------------------------------
# Pure-JAX reference (FFT-based), for correctness check only
# ----------------------------------------------------------------------------
def _reference_log_mel(a2m, audio):
    audio = jnp.asarray(audio, jnp.float32)[:, 0, :]
    p = (a2m.n_fft - a2m.hop) // 2
    x = jnp.pad(audio, ((0, 0), (p, p)), mode="reflect")
    n_frames = (x.shape[1] - a2m.n_fft) // a2m.hop + 1
    idx = jnp.arange(n_frames)[:, None] * a2m.hop + jnp.arange(a2m.n_fft)[None, :]
    frames = x[:, idx] * a2m.window[None, None, :]        # (B, F, n_fft)
    fft = jnp.fft.rfft(frames, n=a2m.n_fft, axis=-1)
    mag = jnp.abs(fft)                                    # (B, F, nf)
    mel = jnp.einsum("mf,btf->bmt", a2m.mel_basis, mag,
                     precision=jax.lax.Precision.HIGHEST)
    return jnp.log10(jnp.maximum(mel, 1e-5))


# ----------------------------------------------------------------------------
if __name__ == "__main__":
    key = jax.random.PRNGKey(0)
    B, T = 2, 4096                                        # 16 STFT frames
    audio = 0.5 * jax.random.normal(key, (B, 1, T), dtype=jnp.float32)

    a2m = Audio2Mel()                                     # default MelGAN params
    fwd = jax.jit(a2m.__call__)
    y = jax.block_until_ready(fwd(audio))

    p = (1024 - 256) // 2
    n_frames = (T + 2 * p - 1024) // 256 + 1
    assert y.shape == (B, 80, n_frames), y.shape
    assert bool(jnp.all(jnp.isfinite(y)))

    ref = jax.block_until_ready(_reference_log_mel(a2m, audio))
    max_err = float(jnp.max(jnp.abs(y - ref)))
    assert max_err < 0.08, f"log-mel mismatch vs reference: {max_err}"

    print("KERNEL_OK")
</pallas_src>

<mosaic_0001>
module attributes {stable_mosaic.version = 11 : i64} {
  func.func @_audio2mel_kernel(%arg0: i32, %arg1: i32, %arg2: memref<1x24x256xbf16, #tpu.memory_space<vmem>>, %arg3: memref<1024x1280xbf16, #tpu.memory_space<vmem>>, %arg4: memref<640x128xbf16, #tpu.memory_space<vmem>>, %arg5: memref<1x128x16xf32, #tpu.memory_space<vmem>>) attributes {dimension_semantics = [#tpu.dimension_semantics<parallel>, #tpu.dimension_semantics<parallel>], iteration_bounds = array<i64: 2, 1>, scalar_prefetch = 0 : i64, scratch_operands = 0 : i64, tpu.core_type = #tpu.core_type<tc>, window_params = [{transform_indices = @transform_0, window_bounds = array<i64: 1, 24, 256>}, {pipeline_mode = #tpu.pipeline_mode<synchronous>, transform_indices = @transform_1, window_bounds = array<i64: 1024, 1280>}, {pipeline_mode = #tpu.pipeline_mode<synchronous>, transform_indices = @transform_2, window_bounds = array<i64: 640, 128>}, {transform_indices = @transform_3, window_bounds = array<i64: 1, 128, 16>}]} {
    %c16_i32 = arith.constant 16 : i32
    %0 = arith.muli %arg1, %c16_i32 : i32
    %1 = tpu.assume_multiple %0, 8 : i32
    %c0 = arith.constant 0 : index
    %2 = arith.index_cast %1 : i32 to index
    %c0_0 = arith.constant 0 : index
    %3 = vector.load %arg2[%c0, %2, %c0_0] : memref<1x24x256xbf16, #tpu.memory_space<vmem>>, vector<1x24x256xbf16>
    %4 = vector.shape_cast %3 : vector<1x24x256xbf16> to vector<24x256xbf16>
    %5 = arith.extf %4 : vector<24x256xbf16> to vector<24x256xf32>
    %6 = vector.extract_strided_slice %5 {offsets = [0, 0], sizes = [16, 256], strides = [1, 1]} : vector<24x256xf32> to vector<16x256xf32>
    %7 = vector.extract_strided_slice %5 {offsets = [1, 0], sizes = [16, 256], strides = [1, 1]} : vector<24x256xf32> to vector<16x256xf32>
    %8 = vector.extract_strided_slice %5 {offsets = [2, 0], sizes = [16, 256], strides = [1, 1]} : vector<24x256xf32> to vector<16x256xf32>
    %9 = vector.extract_strided_slice %5 {offsets = [3, 0], sizes = [16, 256], strides = [1, 1]} : vector<24x256xf32> to vector<16x256xf32>
    %10 = tpu.concatenate %6, %7, %8, %9 in 1 : vector<16x256xf32>, vector<16x256xf32>, vector<16x256xf32>, vector<16x256xf32> -> vector<16x1024xf32>
    %11 = arith.truncf %10 : vector<16x1024xf32> to vector<16x1024xbf16>
    %c0_1 = arith.constant 0 : index
    %c0_2 = arith.constant 0 : index
    %12 = vector.load %arg3[%c0_1, %c0_2] : memref<1024x1280xbf16, #tpu.memory_space<vmem>>, vector<1024x1280xbf16>
    %cst = arith.constant dense<0.000000e+00> : vector<16x1280xf32>
    %13 = tpu.matmul %11, %12, %cst {dimension_numbers = #tpu.dot_dimension_numbers<[1], [0], [0], [1], [0, 0, 1, 1], [], []>} : vector<16x1024xbf16>, vector<1024x1280xbf16>, vector<16x1280xf32> -> vector<16x1280xf32>
    %14 = vector.extract_strided_slice %13 {offsets = [0, 0], sizes = [16, 640], strides = [1, 1]} : vector<16x1280xf32> to vector<16x640xf32>
    %15 = vector.extract_strided_slice %13 {offsets = [0, 640], sizes = [16, 640], strides = [1, 1]} : vector<16x1280xf32> to vector<16x640xf32>
    %16 = arith.mulf %14, %14 : vector<16x640xf32>
    %17 = arith.mulf %15, %15 : vector<16x640xf32>
    %18 = arith.addf %16, %17 : vector<16x640xf32>
    %19 = math.sqrt %18 : vector<16x640xf32>
    %20 = arith.truncf %19 : vector<16x640xf32> to vector<16x640xbf16>
    %c0_3 = arith.constant 0 : index
    %c0_4 = arith.constant 0 : index
    %21 = vector.load %arg4[%c0_3, %c0_4] : memref<640x128xbf16, #tpu.memory_space<vmem>>, vector<640x128xbf16>
    %cst_5 = arith.constant dense<0.000000e+00> : vector<16x128xf32>
    %22 = tpu.matmul %20, %21, %cst_5 {dimension_numbers = #tpu.dot_dimension_numbers<[1], [0], [0], [1], [0, 0, 1, 1], [], []>} : vector<16x640xbf16>, vector<640x128xbf16>, vector<16x128xf32> -> vector<16x128xf32>
    %cst_6 = arith.constant 9.99999974E-6 : f32
    %23 = vector.broadcast %cst_6 : f32 to vector<16x128xf32>
    %24 = arith.maximumf %22, %23 : vector<16x128xf32>
    %25 = math.log %24 : vector<16x128xf32>
    %cst_7 = arith.constant 0.434294492 : f32
    %26 = vector.broadcast %cst_7 : f32 to vector<16x128xf32>
    %27 = arith.mulf %25, %26 : vector<16x128xf32>
    %28 = tpu.transpose %27, [1, 0] : vector<16x128xf32> -> vector<128x16xf32>
    %c0_8 = arith.constant 0 : index
    %c0_9 = arith.constant 0 : index
    %c0_10 = arith.constant 0 : index
    %29 = vector.load %arg5[%c0_8, %c0_9, %c0_10] : memref<1x128x16xf32, #tpu.memory_space<vmem>>, vector<1x128x16xf32>
    %30 = vector.shape_cast %29 : vector<1x128x16xf32> to vector<128x16xf32>
    %31 = vector.shape_cast %28 : vector<128x16xf32> to vector<1x128x16xf32>
    tpu.vector_store %arg5[%c0_8, %c0_9, %c0_10], %31 {strides = array<i32>} : memref<1x128x16xf32, #tpu.memory_space<vmem>>, vector<1x128x16xf32>,
    return
  }
  func.func @transform_0(%arg0: i32, %arg1: i32) -> (i32, i32, i32) {
    %c0_i32 = arith.constant 0 : i32
    %c0_i32_0 = arith.constant 0 : i32
    %c0_i32_1 = arith.constant 0 : i32
    return %arg0, %c0_i32, %c0_i32_0 : i32, i32, i32
  }
  func.func @transform_1(%arg0: i32, %arg1: i32) -> (i32, i32) {
    %c0_i32 = arith.constant 0 : i32
    %c0_i32_0 = arith.constant 0 : i32
    %c0_i32_1 = arith.constant 0 : i32
    return %c0_i32, %c0_i32_0 : i32, i32
  }
  func.func @transform_2(%arg0: i32, %arg1: i32) -> (i32, i32) {
    %c0_i32 = arith.constant 0 : i32
    %c0_i32_0 = arith.constant 0 : i32
    %c0_i32_1 = arith.constant 0 : i32
    return %c0_i32, %c0_i32_0 : i32, i32
  }
  func.func @transform_3(%arg0: i32, %arg1: i32) -> (i32, i32, i32) {
    %c0_i32 = arith.constant 0 : i32
    %c0_i32_0 = arith.constant 0 : i32
    return %arg0, %c0_i32, %arg1 : i32, i32, i32
  }
}

</mosaic_0001>

<bundles_post_ra>
// kernel: a_call__.1
= control target key start
LH: loop header
LB: loop body
LE: loop exit
PB: predicated region body
PF: predicated region fallthrough
CT: control target
= control target key end

     0   :  { %s7575_s12 = smov 0   ;;  %s7577_s13 = smov 0   ;;  %s9881_s0 = inlined_call_operand.vmem [shape: bf16[2,24,256], index: 0, kind: input, shape index: {}]   ;;  %s9882_s1 = inlined_call_operand.vmem [shape: bf16[1024,1280], index: 1, kind: input, shape index: {}]   ;;  %s9883_s2 = inlined_call_operand.vmem [shape: bf16[640,128], index: 2, kind: input, shape index: {}]   ;;  %s9884_s3 = inlined_call_operand.vmem [shape: f32[2,128,16], index: 3, kind: output, shape index: {}]  }
   0x1   :  { %s7579_s14 = smov 0  }
   0x2 LB: > { %s25_s15 = sadd.s32 1, %s7547_s13  ;;  %p5654_p0 = scmp.ge.s32.totalorder %s7551_s14, 1  ;;  %s7551_s14 = sphi %s7579_s14, %s13_s14   ;;  %s7547_s13 = sphi %s7577_s13, %s9886_s13   ;;  %s7543_s12 = sphi %s7575_s12, %s9885_s12  }
   0x3   : > { %p27_p1 = scmp.ge.s32.totalorder %s25_s15, 2  ;;  %p151_p2 = scmp.lt.s32.totalorder %s7551_s14, 3 }
   0x5   : > { %s9888_s15 = smov (%p27_p1, %s25_s15), 0  ;;  %p152_p3 = pnand %p5654_p0, %p151_p2 }
   0x6   : > { %v6503_v0 = vld [vmem:[%s9882_s1 + $0x4] ss:$40 sps:$4 sm:$0xff] (!%p152_p3)   ;;  %v6507_v2 = vld [vmem:[%s9882_s1] ss:$40 sps:$4 sm:$0xff] (!%p152_p3)   ;;  %v6509_v4 = vld [vmem:[%s9882_s1 + $0x54] ss:$40 sps:$4 sm:$0xff] (!%p152_p3)  }
   0x7   : > { %155 = sbr.rel (%p152_p3) target bundleno = 1401 (0x579), region = 32  ;;  %v6505_v1 = vld [vmem:[%s9882_s1 + $0x504] ss:$40 sps:$4 sm:$0xff] (!%p152_p3)   ;;  %4106 = vmatprep.subr.bf16.mxu1 (!%p152_p3), %v6503_v0  ;;  %v6508_v3 = vld [vmem:[%s9882_s1 + $0x500] ss:$40 sps:$4 sm:$0xff] (!%p152_p3)   ;;  %p178_p4 = scmp.lt.s32.totalorder (!%p152_p3), %s7543_s12, 1 }
   0x8   : > { %4149 = vmatprep.subr.bf16.mxu0 (!%p152_p3), %v6505_v1  ;;  %4107 = vmatpush1.bf16.msra.mxu1 (!%p152_p3), %v6507_v2  ;;  %v6511_v5 = vld [vmem:[%s9882_s1 + $0x554] ss:$40 sps:$4 sm:$0xff] (!%p152_p3)   ;;  %v6513_v6 = vld [vmem:[%s9882_s1 + $0x50] ss:$40 sps:$4 sm:$0xff] (!%p152_p3)   ;;  %v6515_v8 = vld [vmem:[%s9882_s1 + $0xa4] ss:$40 sps:$4 sm:$0xff] (!%p152_p3)  }
   0x9   : > { %4150 = vmatpush1.bf16.msra.mxu0 (!%p152_p3), %v6508_v3  ;;  %4108 = vmatprep.subr.bf16.mxu1 (!%p152_p3), %v6509_v4  ;;  %v6514_v7 = vld [vmem:[%s9882_s1 + $0x550] ss:$40 sps:$4 sm:$0xff] (!%p152_p3)   ;;  %v6517_v9 = vld [vmem:[%s9882_s1 + $0x5a4] ss:$40 sps:$4 sm:$0xff] (!%p152_p3)   ;;  %v6519_v10 = vld [vmem:[%s9882_s1 + $0xa0] ss:$40 sps:$4 sm:$0xff] (!%p152_p3)  }
   0xa   : > { %4151 = vmatprep.subr.bf16.mxu0 (!%p152_p3), %v6511_v5  ;;  %v6520_v11 = vld [vmem:[%s9882_s1 + $0x5a0] ss:$40 sps:$4 sm:$0xff] (!%p152_p3)   ;;  %v6521_v12 = vld [vmem:[%s9882_s1 + $0xf4] ss:$40 sps:$4 sm:$0xff] (!%p152_p3)   ;;  %v6525_v14 = vld [vmem:[%s9882_s1 + $0xf0] ss:$40 sps:$4 sm:$0xff] (!%p152_p3)  }
   0xb   : > { %v6523_v13 = vld [vmem:[%s9882_s1 + $0x5f4] ss:$40 sps:$4 sm:$0xff] (!%p152_p3)   ;;  %v6526_v15 = vld [vmem:[%s9882_s1 + $0x5f0] ss:$40 sps:$4 sm:$0xff] (!%p152_p3)   ;;  %v6527_v16 = vld [vmem:[%s9882_s1 + $0x144] ss:$40 sps:$4 sm:$0xff] (!%p152_p3)  }
   0xc   : > { %4109 = vmatpush1.bf16.msra.mxu1 (!%p152_p3), %v6513_v6  ;;  %v6529_v17 = vld [vmem:[%s9882_s1 + $0x644] ss:$40 sps:$4 sm:$0xff] (!%p152_p3)   ;;  %v6531_v18 = vld [vmem:[%s9882_s1 + $0x140] ss:$40 sps:$4 sm:$0xff] (!%p152_p3)   ;;  %v6533_v20 = vld [vmem:[%s9882_s1 + $0x194] ss:$40 sps:$4 sm:$0xff] (!%p152_p3)  }
   0xd   : > { %4152 = vmatpush1.bf16.msra.mxu0 (!%p152_p3), %v6514_v7  ;;  %4110 = vmatprep.subr.bf16.mxu1 (!%p152_p3), %v6515_v8  ;;  %v6532_v19 = vld [vmem:[%s9882_s1 + $0x640] ss:$40 sps:$4 sm:$0xff] (!%p152_p3)   ;;  %v6535_v21 = vld [vmem:[%s9882_s1 + $0x694] ss:$40 sps:$4 sm:$0xff] (!%p152_p3)   ;;  %v6537_v22 = vld [vmem:[%s9882_s1 + $0x190] ss:$40 sps:$4 sm:$0xff] (!%p152_p3)  }
   0xe   : > { %4153 = vmatprep.subr.bf16.mxu0 %v6517_v9  ;;  %v6538_v23 = vld [vmem:[%s9882_s1 + $0x690] ss:$40 sps:$4 sm:$0xff]   ;;  %v6539_v24 = vld [vmem:[%s9882_s1 + $0x1e4] ss:$40 sps:$4 sm:$0xff]   ;;  %v6543_v26 = vld [vmem:[%s9882_s1 + $0x1e0] ss:$40 sps:$4 sm:$0xff]  }
   0xf   : > { %v6541_v25 = vld [vmem:[%s9882_s1 + $0x6e4] ss:$40 sps:$4 sm:$0xff]   ;;  %v6544_v27 = vld [vmem:[%s9882_s1 + $0x6e0] ss:$40 sps:$4 sm:$0xff]   ;;  %v6545_v28 = vld [vmem:[%s9882_s1 + $0x234] ss:$40 sps:$4 sm:$0xff]  }
  0x10   : > { %4111 = vmatpush1.bf16.msra.mxu1 %v6519_v10  ;;  %v6547_v29 = vld [vmem:[%s9882_s1 + $0x734] ss:$40 sps:$4 sm:$0xff]   ;;  %v6549_v30 = vld [vmem:[%s9882_s1 + $0x230] ss:$40 sps:$4 sm:$0xff]   ;;  %v6551_v32 = vld [vmem:[%s9882_s1 + $0x284] ss:$40 sps:$4 sm:$0xff]  }
  0x11   : > { %4154 = vmatpush1.bf16.msra.mxu0 %v6520_v11  ;;  %4112 = vmatprep.subr.bf16.mxu1 %v6521_v12  ;;  %v6550_v31 = vld [vmem:[%s9882_s1 + $0x730] ss:$40 sps:$4 sm:$0xff]   ;;  %v6553_v33 = vld [vmem:[%s9882_s1 + $0x784] ss:$40 sps:$4 sm:$0xff]   ;;  %v6555_v34 = vld [vmem:[%s9882_s1 + $0x280] ss:$40 sps:$4 sm:$0xff]  }
  0x12   : > { %4155 = vmatprep.subr.bf16.mxu0 %v6523_v13  ;;  %v6556_v35 = vld [vmem:[%s9882_s1 + $0x780] ss:$40 sps:$4 sm:$0xff]   ;;  %s9890_s12 = smov (!%p178_p4, %s7543_s12), 1  ;;  %v6557_v36 = vld [vmem:[%s9882_s1 + $0x2d4] ss:$40 sps:$4 sm:$0xff]   ;;  %vm213_vm0 = vcmask 1046528  }
  0x13   : > { %v6559_v37 = vld [vmem:[%s9882_s1 + $0x7d4] ss:$40 sps:$4 sm:$0xff]   ;;  %v6561_v38 = vld [vmem:[%s9882_s1 + $0x2d0] ss:$40 sps:$4 sm:$0xff]   ;;  %s6476_s25 = smul.u32 24, %s9890_s12  ;;  %vm228_vm1 = vcmask 1045504  }
  0x14   : > { %4113 = vmatpush1.bf16.msra.mxu1 %v6525_v14  ;;  %v6562_v39 = vld [vmem:[%s9882_s1 + $0x7d0] ss:$40 sps:$4 sm:$0xff]   ;;  %v6563_v40 = vld [vmem:[%s9882_s1 + $0x324] ss:$40 sps:$4 sm:$0xff]   ;;  %v6567_v42 = vld [vmem:[%s9882_s1 + $0x320] ss:$40 sps:$4 sm:$0xff]  }
  0x15   : > { %4156 = vmatpush1.bf16.msra.mxu0 %v6526_v15  ;;  %4114 = vmatprep.subr.bf16.mxu1 %v6527_v16  ;;  %v6565_v41 = vld [vmem:[%s9882_s1 + $0x824] ss:$40 sps:$4 sm:$0xff]   ;;  %v6568_v43 = vld [vmem:[%s9882_s1 + $0x820] ss:$40 sps:$4 sm:$0xff]   ;;  %s182_s11 = scalar_lea.vmem %s9881_s0, %s6476_s25  ;;  %v6569_v44 = vld [vmem:[%s9882_s1 + $0x374] ss:$40 sps:$4 sm:$0xff]  }
  0x16   : > { %4157 = vmatprep.subr.bf16.mxu0 %v6529_v17  ;;  %v6571_v45 = vld [vmem:[%s9882_s1 + $0x874] ss:$40 sps:$4 sm:$0xff]   ;;  %v6573_v46 = vld [vmem:[%s9882_s1 + $0x370] ss:$40 sps:$4 sm:$0xff]   ;;  %v7744_v47 = vld [vmem:[%s182_s11] sm:$0xff]  ;;  %vm243_vm2 = vcmask 1044480  }
  0x17   : > { %v7746_v48 = vld [vmem:[%s182_s11 + $0x8] sm:$0xff]  ;;  %v200_v49 = vld [vmem:[%s182_s11 + $0x10] sm:$0xff]  ;;  %v7749_v50 = vunpack.c.h.bf16 %v7744_v47  ;;  %v7776_v61 = vunpack.c.l.bf16 %v7744_v47  ;;  %s6342_s23 = sshll.u32 %s9890_s12, 7 }
  0x18   : > { %4115 = vmatpush1.bf16.msra.mxu1 %v6531_v18  ;;  %v6574_v51 = vld [vmem:[%s9882_s1 + $0x870] ss:$40 sps:$4 sm:$0xff]   ;;  %v6575_v52 = vld [vmem:[%s9882_s1 + $0x3c4] ss:$40 sps:$4 sm:$0xff]   ;;  %v7758_v53 = vunpack.c.h.bf16 %v7746_v48  ;;  %v7760_v54 = vunpack.c.h.bf16 %v200_v49  ;;  %v7767_v56 = vcombine.high %v7744_v47, %v7746_v48  ;;  %v6579_v60 = vld [vmem:[%s9882_s1 + $0x3c0] ss:$40 sps:$4 sm:$0xff]   ;;  %v7783_v63 = vunpack.c.l.bf16 %v7746_v48  ;;  %s9838_s26 = scalar_lea.vmem %s9884_s3, %s6342_s23 }
  0x19   : > { %4158 = vmatpush1.bf16.msra.mxu0 %v6532_v19  ;;  %4116 = vmatprep.subr.bf16.mxu1 %v6533_v20  ;;  %v6577_v55 = vld [vmem:[%s9882_s1 + $0x8c4] ss:$40 sps:$4 sm:$0xff]   ;;  %v217_v57 = vrot.slane %v7749_v50, 1  ;;  %v6580_v62 = vld [vmem:[%s9882_s1 + $0x8c0] ss:$40 sps:$4 sm:$0xff]   ;;  %v7793_v4 = vunpack.c.l.bf16 %v200_v49  ;;  %v229_v6 = vrot.slane %v7776_v61, 2 }
  0x1a   : > { %4159 = vmatprep.subr.bf16.mxu0 %v6535_v21  ;;  %v218_v58 = vrot.slane %v7758_v53, 1  ;;  %v222_v59 = vrot.slane %v7760_v54, 1  ;;  %4138 = vmatprep.mubr.bf16.mxu1 %v7767_v56  ;;  %v6581_v2 = vld [vmem:[%s9882_s1 + $0x414] ss:$40 sps:$4 sm:$0xff]   ;;  %v230_v7 = vrot.slane %v7783_v63, 2  ;;  %v214_v18 = vrot.slane %v7776_v61, 1 }
  0x1b   : > { %v6583_v3 = vld [vmem:[%s9882_s1 + $0x914] ss:$40 sps:$4 sm:$0xff]   ;;  %v6585_v8 = vld [vmem:[%s9882_s1 + $0x410] ss:$40 sps:$4 sm:$0xff]   ;;  %v235_v9 = vrot.slane %v7793_v4, 2  ;;  %v215_v19 = vrot.slane %v7783_v63, 1 }
  0x1c   : > { %4117 = vmatpush1.bf16.msra.mxu1 %v6537_v22  ;;  %v219_v0 = vsel %vm213_vm0, %v217_v57, %v218_v58  ;;  %v223_v1 = vsel %vm213_vm0, %v218_v58, %v222_v59  ;;  %v6586_v10 = vld [vmem:[%s9882_s1 + $0x910] ss:$40 sps:$4 sm:$0xff]   ;;  %v231_v11 = vsel %vm228_vm1, %v229_v6, %v230_v7  ;;  %v6587_v12 = vld [vmem:[%s9882_s1 + $0x464] ss:$40 sps:$4 sm:$0xff]   ;;  %v6591_v15 = vld [vmem:[%s9882_s1 + $0x460] ss:$40 sps:$4 sm:$0xff]  }
  0x1d   : > { %4160 = vmatpush1.bf16.msra.mxu0 %v6538_v23  ;;  %4118 = vmatprep.subr.bf16.mxu1 %v6539_v24  ;;  %v7795_v5 = vpack.c.bf16 %v223_v1, %v219_v0  ;;  %v6589_v13 = vld [vmem:[%s9882_s1 + $0x964] ss:$40 sps:$4 sm:$0xff]   ;;  %v236_v14 = vsel %vm228_vm1, %v230_v7, %v235_v9  ;;  %v6592_v17 = vld [vmem:[%s9882_s1 + $0x960] ss:$40 sps:$4 sm:$0xff]   ;;  %v220_v20 = vrot.slane %v7793_v4, 1  ;;  %v232_v23 = vrot.slane %v7749_v50, 2 }
  0x1e   : > { %4161 = vmatprep.subr.bf16.mxu0 %v6541_v25  ;;  %v7818_v16 = vpack.c.bf16 %v236_v14, %v231_v11  ;;  %v6593_v21 = vld [vmem:[%s9882_s1 + $0x4b4] ss:$40 sps:$4 sm:$0xff]   ;;  %v233_v24 = vrot.slane %v7758_v53, 2  ;;  %v6597_v25 = vld [vmem:[%s9882_s1 + $0x4b0] ss:$40 sps:$4 sm:$0xff]  }
  0x1f   : > { %4181 = vmatprep.mubr.bf16.mxu0 %v7795_v5  ;;  %v6595_v22 = vld [vmem:[%s9882_s1 + $0x9b4] ss:$40 sps:$4 sm:$0xff]   ;;  %v6613_v58 = vld [vmem:[%s9882_s1 + $0xaa0] ss:$40 sps:$4 sm:$0xff]   ;;  %v6627_v0 = vld [vmem:[%s9882_s1 + $0xb44] ss:$40 sps:$4 sm:$0xff]  }
  0x20   : > { %4119 = vmatpush1.bf16.msra.mxu1 %v6543_v26  ;;  %v237_v26 = vrot.slane %v7760_v54, 2  ;;  %v6618_v57 = vld [vmem:[%s9882_s1 + $0xac] ss:$40 sps:$4 sm:$0xff]   ;;  %v6616_v59 = vld [vmem:[%s9882_s1 + $0xa8] ss:$40 sps:$4 sm:$0xff]  }
  0x21   : > { %4162 = vmatpush1.bf16.msra.mxu0 %v6544_v27  ;;  %4120 = vmatprep.subr.bf16.mxu1 %v6545_v28  ;;  %v6598_v27 = vld [vmem:[%s9882_s1 + $0x9b0] ss:$40 sps:$4 sm:$0xff]   ;;  %v216_v28 = vsel %vm213_vm0, %v214_v18, %v215_v19  ;;  %v6630_v1 = vld [vmem:[%s9882_s1 + $0x14c] ss:$40 sps:$4 sm:$0xff]   ;;  %v6636_v6 = vld [vmem:[%s9882_s1 + $0x19c] ss:$40 sps:$4 sm:$0xff]  }
  0x22   : > { %4163 = vmatprep.subr.bf16.mxu0 %v6547_v29  ;;  %v221_v29 = vsel %vm213_vm0, %v215_v19, %v220_v20  ;;  %v6631_v7 = vld [vmem:[%s9882_s1 + $0xb90] ss:$40 sps:$4 sm:$0xff]   ;;  %v6639_v9 = vld [vmem:[%s9882_s1 + $0xbe4] ss:$40 sps:$4 sm:$0xff]   ;;  %v6637_v11 = vld [vmem:[%s9882_s1 + $0xbe0] ss:$40 sps:$4 sm:$0xff]  }
  0x23   : > { %v6648_v14 = vld [vmem:[%s9882_s1 + $0x23c] ss:$40 sps:$4 sm:$0xff]   ;;  %v6654_v19 = vld [vmem:[%s9882_s1 + $0x28c] ss:$40 sps:$4 sm:$0xff]   ;;  %v6649_v20 = vld [vmem:[%s9882_s1 + $0xc80] ss:$40 sps:$4 sm:$0xff]  }
  0x24   : > { %4121 = vmatpush1.bf16.msra.mxu1 %v6549_v30  ;;  %v6602_v30 = vld [vmem:[%s9882_s1 + $0xa04] ss:$40 sps:$4 sm:$0xff]  }
  0x25   : > { %4164 = vmatpush1.bf16.msra.mxu0 %v6550_v31  ;;  %4122 = vmatprep.subr.bf16.mxu1 %v6551_v32  ;;  %v6605_v31 = vld [vmem:[%s9882_s1 + $0xc] ss:$40 sps:$4 sm:$0xff]   ;;  %v247_v32 = vrot.slane %v7749_v50, 3 }
  0x26   : > { %4165 = vmatprep.subr.bf16.mxu0 %v6553_v33  ;;  %v7852_v33 = vcombine.low %v7744_v47, %v7746_v48  ;;  %v250_v47 = vrot.slane %v7793_v4, 3  ;;  %v6633_v4 = vld [vmem:[%s9882_s1 + $0xb94] ss:$40 sps:$4 sm:$0xff]   ;;  %v6651_v18 = vld [vmem:[%s9882_s1 + $0xc84] ss:$40 sps:$4 sm:$0xff]  }
  0x28   : > { %4123 = vmatpush1.bf16.msra.mxu1 %v6555_v34  ;;  %v234_v34 = vsel %vm228_vm1, %v232_v23, %v233_v24  ;;  %v6660_v23 = vld [vmem:[%s9882_s1 + $0x2dc] ss:$40 sps:$4 sm:$0xff]  }
  0x29   : > { %4166 = vmatpush1.bf16.msra.mxu0 %v6556_v35  ;;  %4124 = vmatprep.subr.bf16.mxu1 %v6557_v36  ;;  %v6600_v35 = vld [vmem:[%s9882_s1 + $0xa00] ss:$40 sps:$4 sm:$0xff]   ;;  %v7858_v36 = vpack.c.bf16 %v221_v29, %v216_v28 }
  0x2a   : > { %4167 = vmatprep.subr.bf16.mxu0 %v6559_v37  ;;  %v238_v37 = vsel %vm228_vm1, %v233_v24, %v237_v26  ;;  %v6655_v24 = vld [vmem:[%s9882_s1 + $0xcd0] ss:$40 sps:$4 sm:$0xff]   ;;  %v6663_v26 = vld [vmem:[%s9882_s1 + $0xd24] ss:$40 sps:$4 sm:$0xff]   ;;  %v6661_v28 = vld [vmem:[%s9882_s1 + $0xd20] ss:$40 sps:$4 sm:$0xff]  }
  0x2b   : > { %v7877_v48 = vpack.c.bf16 %v238_v37, %v234_v34  ;;  %v6664_v29 = vld [vmem:[%s9882_s1 + $0x328] ss:$40 sps:$4 sm:$0xff]   ;;  %v6670_v34 = vld [vmem:[%s9882_s1 + $0x378] ss:$40 sps:$4 sm:$0xff]   ;;  %v6678_v37 = vld [vmem:[%s9882_s1 + $0x3cc] ss:$40 sps:$4 sm:$0xff]  }
  0x2c   : > { %4125 = vmatpush1.bf16.msra.mxu1 %v6561_v38  ;;  %v248_v38 = vrot.slane %v7758_v53, 3  ;;  %v6610_v53 = vld [vmem:[%s9882_s1 + $0x58] ss:$40 sps:$4 sm:$0xff]  }
  0x2d   : > { %4168 = vmatpush1.bf16.msra.mxu0 %v6562_v39  ;;  %4126 = vmatprep.subr.bf16.mxu1 %v6563_v40  ;;  %v252_v39 = vrot.slane %v7760_v54, 3  ;;  %v6603_v40 = vld [vmem:[%s9882_s1 + $0x8] ss:$40 sps:$4 sm:$0xff]  }
  0x2e   : > { %4169 = vmatprep.subr.bf16.mxu0 %v6565_v41  ;;  %v244_v41 = vrot.slane %v7776_v61, 3  ;;  %v6624_v61 = vld [vmem:[%s9882_s1 + $0xfc] ss:$40 sps:$4 sm:$0xff]  }
  0x30   : > { %4127 = vmatpush1.bf16.msra.mxu1 %v6567_v42  ;;  %v245_v42 = vrot.slane %v7783_v63, 3  ;;  %v6622_v63 = vld [vmem:[%s9882_s1 + $0xf8] ss:$40 sps:$4 sm:$0xff]  }
  0x31   : > { %4170 = vmatpush1.bf16.msra.mxu0 %v6568_v43  ;;  %4128 = vmatprep.subr.bf16.mxu1 %v6569_v44  ;;  %v6609_v43 = vld [vmem:[%s9882_s1 + $0xa54] ss:$40 sps:$4 sm:$0xff]  }
  0x32   : > { %4171 = vmatprep.subr.bf16.mxu0 %v6571_v45  ;;  %v6612_v44 = vld [vmem:[%s9882_s1 + $0x5c] ss:$40 sps:$4 sm:$0xff]   ;;  %v249_v45 = vsel %vm243_vm2, %v247_v32, %v248_v38  ;;  %v246_v50 = vsel %vm243_vm2, %v244_v41, %v245_v42  ;;  %v6667_v32 = vld [vmem:[%s9882_s1 + $0xd70] ss:$40 sps:$4 sm:$0xff]  }
  0x33   : > { %v6684_v41 = vld [vmem:[%s9882_s1 + $0x41c] ss:$40 sps:$4 sm:$0xff]  }
  0x34   : > { %4129 = vmatpush1.bf16.msra.mxu1 %v6573_v46  ;;  %v253_v46 = vsel %vm243_vm2, %v248_v38, %v252_v39  ;;  %v6673_v38 = vld [vmem:[%s9882_s1 + $0xdc0] ss:$40 sps:$4 sm:$0xff]  }
  0x35   : > { %4172 = vmatpush1.bf16.msra.mxu0 %v6574_v51  ;;  %4130 = vmatprep.subr.bf16.mxu1 %v6575_v52  ;;  %v7879_v49 = vpack.c.bf16 %v253_v46, %v249_v45  ;;  %v6607_v51 = vld [vmem:[%s9882_s1 + $0xa50] ss:$40 sps:$4 sm:$0xff]   ;;  %v251_v52 = vsel %vm243_vm2, %v245_v42, %v250_v47  ;;  %v6690_v45 = vld [vmem:[%s9882_s1 + $0x46c] ss:$40 sps:$4 sm:$0xff]   ;;  %v6685_v46 = vld [vmem:[%s9882_s1 + $0xe60] ss:$40 sps:$4 sm:$0xff]  }
  0x36   : > { %4173 = vmatprep.subr.bf16.mxu0 %v6577_v55  ;;  %v7891_v54 = vpack.c.bf16 %v251_v52, %v246_v50  ;;  %v6615_v55 = vld [vmem:[%s9882_s1 + $0xaa4] ss:$40 sps:$4 sm:$0xff]   ;;  %v6676_v39 = vld [vmem:[%s9882_s1 + $0x3c8] ss:$40 sps:$4 sm:$0xff]   ;;  %v6693_v50 = vld [vmem:[%s9882_s1 + $0xeb4] ss:$40 sps:$4 sm:$0xff]  }
  0x37   : > { %v6679_v42 = vld [vmem:[%s9882_s1 + $0xe10] ss:$40 sps:$4 sm:$0xff]  }
  0x38   : > { %4131 = vmatpush1.bf16.msra.mxu1 %v6579_v60  ;;  %v6621_v60 = vld [vmem:[%s9882_s1 + $0xaf4] ss:$40 sps:$4 sm:$0xff]   ;;  %v6688_v47 = vld [vmem:[%s9882_s1 + $0x468] ss:$40 sps:$4 sm:$0xff]  }
  0x39   : > { %4174 = vmatpush1.bf16.msra.mxu0 %v6580_v62  ;;  %4132 = vmatprep.subr.bf16.mxu1 %v6581_v2  ;;  %v6619_v62 = vld [vmem:[%s9882_s1 + $0xaf0] ss:$40 sps:$4 sm:$0xff]   ;;  %v6625_v2 = vld [vmem:[%s9882_s1 + $0xb40] ss:$40 sps:$4 sm:$0xff]  }
  0x3a   : > { %4175 = vmatprep.subr.bf16.mxu0 %v6583_v3  ;;  %v6628_v3 = vld [vmem:[%s9882_s1 + $0x148] ss:$40 sps:$4 sm:$0xff]  }
  0x3b   : > { %v6691_v52 = vld [vmem:[%s9882_s1 + $0xeb0] ss:$40 sps:$4 sm:$0xff]  }
  0x3c   : > { %4133 = vmatpush1.bf16.msra.mxu1 %v6585_v8  ;;  %v6634_v8 = vld [vmem:[%s9882_s1 + $0x198] ss:$40 sps:$4 sm:$0xff]  }
  0x3d   : > { %4176 = vmatpush1.bf16.msra.mxu0 %v6586_v10  ;;  %4134 = vmatprep.subr.bf16.mxu1 %v6587_v12  ;;  %v6642_v10 = vld [vmem:[%s9882_s1 + $0x1ec] ss:$40 sps:$4 sm:$0xff]   ;;  %v6640_v12 = vld [vmem:[%s9882_s1 + $0x1e8] ss:$40 sps:$4 sm:$0xff]  }
  0x3e   : > { %4177 = vmatprep.subr.bf16.mxu0 %v6589_v13  ;;  %v6645_v13 = vld [vmem:[%s9882_s1 + $0xc34] ss:$40 sps:$4 sm:$0xff]  }
  0x40   : > { %4135 = vmatpush1.bf16.msra.mxu1 %v6591_v15  ;;  %v6643_v15 = vld [vmem:[%s9882_s1 + $0xc30] ss:$40 sps:$4 sm:$0xff]  }
  0x41   : > { %4178 = vmatpush1.bf16.msra.mxu0 %v6592_v17  ;;  %4136 = vmatprep.subr.bf16.mxu1 %v6593_v21  ;;  %v6646_v17 = vld [vmem:[%s9882_s1 + $0x238] ss:$40 sps:$4 sm:$0xff]   ;;  %v6652_v21 = vld [vmem:[%s9882_s1 + $0x288] ss:$40 sps:$4 sm:$0xff]  }
  0x42   : > { %4179 = vmatprep.subr.bf16.mxu0 %v6595_v22  ;;  %v6657_v22 = vld [vmem:[%s9882_s1 + $0xcd4] ss:$40 sps:$4 sm:$0xff]  }
  0x44   : > { %4137 = vmatpush1.bf16.msra.mxu1 %v6597_v25  ;;  %v6658_v25 = vld [vmem:[%s9882_s1 + $0x2d8] ss:$40 sps:$4 sm:$0xff]  }
  0x45   : > { %4180 = vmatpush1.bf16.msra.mxu0 %v6598_v27  ;;  %4278 = vmatprep.subr.bf16.mxu1 %v6605_v31  ;;  %v6666_v27 = vld [vmem:[%s9882_s1 + $0x32c] ss:$40 sps:$4 sm:$0xff]   ;;  %v6672_v31 = vld [vmem:[%s9882_s1 + $0x37c] ss:$40 sps:$4 sm:$0xff]  }
  0x46   : > { %4192 = vmatprep.subr.bf16.mxu0 %v6602_v30  ;;  %v6669_v30 = vld [vmem:[%s9882_s1 + $0xd74] ss:$40 sps:$4 sm:$0xff]  }
  0x47   : > { %4139 = vmatmul.mubr.bf16.vlgmr.msra.gmra.mrb[0].mxu1 %v7852_v33 }
  0x48   : > { %4182 = vmatmul.mubr.bf16.vlgmr.msra.gmra.mrb[0].mxu0 %v7858_v36  ;;  %4279 = vmatpush1.bf16.msra.mxu1 %v6603_v40  ;;  %v6681_v40 = vld [vmem:[%s9882_s1 + $0xe14] ss:$40 sps:$4 sm:$0xff]  }
  0x49   : > { %4193 = vmatpush1.bf16.msra.mxu0 %v6600_v35  ;;  %4280 = vmatprep.subr.bf16.mxu1 %v6612_v44  ;;  %v6675_v35 = vld [vmem:[%s9882_s1 + $0xdc4] ss:$40 sps:$4 sm:$0xff]  }
  0x4a   : > { %4194 = vmatprep.subr.bf16.mxu0 %v6609_v43  ;;  %4224 = vmatprep.mubr.bf16.mxu0 %v7877_v48  ;;  %v6682_v43 = vld [vmem:[%s9882_s1 + $0x418] ss:$40 sps:$4 sm:$0xff]   ;;  %v6687_v44 = vld [vmem:[%s9882_s1 + $0xe64] ss:$40 sps:$4 sm:$0xff]  }
  0x4b   : > { %4310 = vmatprep.mubr.bf16.mxu1 %v7767_v56 }
  0x4c   : > { %4281 = vmatpush1.bf16.msra.mxu1 %v6610_v53  ;;  %v6694_v53 = vld [vmem:[%s9882_s1 + $0x4b8] ss:$40 sps:$4 sm:$0xff]  }
  0x4d   : > { %4195 = vmatpush1.bf16.msra.mxu0 %v6607_v51  ;;  %4282 = vmatprep.subr.bf16.mxu1 %v6618_v57  ;;  %v6696_v51 = vld [vmem:[%s9882_s1 + $0x4bc] ss:$40 sps:$4 sm:$0xff]   ;;  %v6702_v57 = vld [vmem:[%s9882_s1 + $0x50c] ss:$40 sps:$4 sm:$0xff]  }
  0x4e   : > { %4196 = vmatprep.subr.bf16.mxu0 %v6615_v55  ;;  %v6699_v55 = vld [vmem:[%s9882_s1 + $0xf04] ss:$40 sps:$4 sm:$0xff]  }
  0x50   : > { %4283 = vmatpush1.bf16.msra.mxu1 %v6616_v59  ;;  %v6700_v59 = vld [vmem:[%s9882_s1 + $0x508] ss:$40 sps:$4 sm:$0xff]  }
  0x51   : > { %4197 = vmatpush1.bf16.msra.mxu0 %v6613_v58  ;;  %4284 = vmatprep.subr.bf16.mxu1 %v6624_v61  ;;  %v6697_v58 = vld [vmem:[%s9882_s1 + $0xf00] ss:$40 sps:$4 sm:$0xff]   ;;  %v6708_v61 = vld [vmem:[%s9882_s1 + $0x55c] ss:$40 sps:$4 sm:$0xff]  }
  0x52   : > { %4198 = vmatprep.subr.bf16.mxu0 %v6621_v60  ;;  %v6705_v60 = vld [vmem:[%s9882_s1 + $0xf54] ss:$40 sps:$4 sm:$0xff]  }
  0x54   : > { %4285 = vmatpush1.bf16.msra.mxu1 %v6622_v63  ;;  %v6706_v63 = vld [vmem:[%s9882_s1 + $0x558] ss:$40 sps:$4 sm:$0xff]  }
  0x55   : > { %4199 = vmatpush1.bf16.msra.mxu0 %v6619_v62  ;;  %4286 = vmatprep.subr.bf16.mxu1 %v6630_v1  ;;  %v6703_v62 = vld [vmem:[%s9882_s1 + $0xf50] ss:$40 sps:$4 sm:$0xff]   ;;  %v6714_v1 = vld [vmem:[%s9882_s1 + $0x5ac] ss:$40 sps:$4 sm:$0xff]  }
  0x56   : > { %4200 = vmatprep.subr.bf16.mxu0 %v6627_v0  ;;  %v6711_v0 = vld [vmem:[%s9882_s1 + $0xfa4] ss:$40 sps:$4 sm:$0xff]  }
  0x58   : > { %4287 = vmatpush1.bf16.msra.mxu1 %v6628_v3  ;;  %v6712_v3 = vld [vmem:[%s9882_s1 + $0x5a8] ss:$40 sps:$4 sm:$0xff]  }
  0x59   : > { %4201 = vmatpush1.bf16.msra.mxu0 %v6625_v2  ;;  %4288 = vmatprep.subr.bf16.mxu1 %v6636_v6  ;;  %v6709_v2 = vld [vmem:[%s9882_s1 + $0xfa0] ss:$40 sps:$4 sm:$0xff]   ;;  %v6720_v6 = vld [vmem:[%s9882_s1 + $0x5fc] ss:$40 sps:$4 sm:$0xff]  }
  0x5a   : > { %4202 = vmatprep.subr.bf16.mxu0 %v6633_v4  ;;  %v6717_v4 = vld [vmem:[%s9882_s1 + $0xff4] ss:$40 sps:$4 sm:$0xff]  }
  0x5c   : > { %4289 = vmatpush1.bf16.msra.mxu1 %v6634_v8  ;;  %v6718_v8 = vld [vmem:[%s9882_s1 + $0x5f8] ss:$40 sps:$4 sm:$0xff]  }
  0x5d   : > { %4203 = vmatpush1.bf16.msra.mxu0 %v6631_v7  ;;  %4290 = vmatprep.subr.bf16.mxu1 %v6642_v10  ;;  %v6715_v7 = vld [vmem:[%s9882_s1 + $0xff0] ss:$40 sps:$4 sm:$0xff]   ;;  %v6726_v10 = vld [vmem:[%s9882_s1 + $0x64c] ss:$40 sps:$4 sm:$0xff]  }
  0x5e   : > { %4204 = vmatprep.subr.bf16.mxu0 %v6639_v9  ;;  %v6723_v9 = vld [vmem:[%s9882_s1 + $0x1044] ss:$40 sps:$4 sm:$0xff]  }
  0x60   : > { %4291 = vmatpush1.bf16.msra.mxu1 %v6640_v12  ;;  %v6724_v12 = vld [vmem:[%s9882_s1 + $0x648] ss:$40 sps:$4 sm:$0xff]  }
  0x61   : > { %4205 = vmatpush1.bf16.msra.mxu0 %v6637_v11  ;;  %4292 = vmatprep.subr.bf16.mxu1 %v6648_v14  ;;  %v6721_v11 = vld [vmem:[%s9882_s1 + $0x1040] ss:$40 sps:$4 sm:$0xff]   ;;  %v6732_v14 = vld [vmem:[%s9882_s1 + $0x69c] ss:$40 sps:$4 sm:$0xff]  }
  0x62   : > { %4206 = vmatprep.subr.bf16.mxu0 %v6645_v13  ;;  %v6729_v13 = vld [vmem:[%s9882_s1 + $0x1094] ss:$40 sps:$4 sm:$0xff]  }
  0x64   : > { %4293 = vmatpush1.bf16.msra.mxu1 %v6646_v17  ;;  %v6730_v17 = vld [vmem:[%s9882_s1 + $0x698] ss:$40 sps:$4 sm:$0xff]  }
  0x65   : > { %4207 = vmatpush1.bf16.msra.mxu0 %v6643_v15  ;;  %4294 = vmatprep.subr.bf16.mxu1 %v6654_v19  ;;  %v6727_v15 = vld [vmem:[%s9882_s1 + $0x1090] ss:$40 sps:$4 sm:$0xff]   ;;  %v6738_v19 = vld [vmem:[%s9882_s1 + $0x6ec] ss:$40 sps:$4 sm:$0xff]  }
  0x66   : > { %4208 = vmatprep.subr.bf16.mxu0 %v6651_v18  ;;  %v6735_v18 = vld [vmem:[%s9882_s1 + $0x10e4] ss:$40 sps:$4 sm:$0xff]  }
  0x68   : > { %4295 = vmatpush1.bf16.msra.mxu1 %v6652_v21  ;;  %v6736_v21 = vld [vmem:[%s9882_s1 + $0x6e8] ss:$40 sps:$4 sm:$0xff]  }
  0x69   : > { %4209 = vmatpush1.bf16.msra.mxu0 %v6649_v20  ;;  %4296 = vmatprep.subr.bf16.mxu1 %v6660_v23  ;;  %v6733_v20 = vld [vmem:[%s9882_s1 + $0x10e0] ss:$40 sps:$4 sm:$0xff]   ;;  %v6744_v23 = vld [vmem:[%s9882_s1 + $0x73c] ss:$40 sps:$4 sm:$0xff]  }
  0x6a   : > { %4210 = vmatprep.subr.bf16.mxu0 %v6657_v22  ;;  %v6741_v22 = vld [vmem:[%s9882_s1 + $0x1134] ss:$40 sps:$4 sm:$0xff]  }
  0x6c   : > { %4297 = vmatpush1.bf16.msra.mxu1 %v6658_v25  ;;  %v6742_v25 = vld [vmem:[%s9882_s1 + $0x738] ss:$40 sps:$4 sm:$0xff]  }
  0x6d   : > { %4211 = vmatpush1.bf16.msra.mxu0 %v6655_v24  ;;  %4298 = vmatprep.subr.bf16.mxu1 %v6666_v27  ;;  %v6739_v24 = vld [vmem:[%s9882_s1 + $0x1130] ss:$40 sps:$4 sm:$0xff]   ;;  %v6750_v27 = vld [vmem:[%s9882_s1 + $0x78c] ss:$40 sps:$4 sm:$0xff]  }
  0x6e   : > { %4212 = vmatprep.subr.bf16.mxu0 %v6663_v26  ;;  %v6747_v26 = vld [vmem:[%s9882_s1 + $0x1184] ss:$40 sps:$4 sm:$0xff]  }
  0x70   : > { %4299 = vmatpush1.bf16.msra.mxu1 %v6664_v29  ;;  %v6748_v29 = vld [vmem:[%s9882_s1 + $0x788] ss:$40 sps:$4 sm:$0xff]  }
  0x71   : > { %4213 = vmatpush1.bf16.msra.mxu0 %v6661_v28  ;;  %4300 = vmatprep.subr.bf16.mxu1 %v6672_v31  ;;  %v6745_v28 = vld [vmem:[%s9882_s1 + $0x1180] ss:$40 sps:$4 sm:$0xff]   ;;  %v6756_v31 = vld [vmem:[%s9882_s1 + $0x7dc] ss:$40 sps:$4 sm:$0xff]  }
  0x72   : > { %4214 = vmatprep.subr.bf16.mxu0 %v6669_v30  ;;  %v6753_v30 = vld [vmem:[%s9882_s1 + $0x11d4] ss:$40 sps:$4 sm:$0xff]  }
  0x74   : > { %4301 = vmatpush1.bf16.msra.mxu1 %v6670_v34  ;;  %v6754_v34 = vld [vmem:[%s9882_s1 + $0x7d8] ss:$40 sps:$4 sm:$0xff]  }
  0x75   : > { %4215 = vmatpush1.bf16.msra.mxu0 %v6667_v32  ;;  %4302 = vmatprep.subr.bf16.mxu1 %v6678_v37  ;;  %v6751_v32 = vld [vmem:[%s9882_s1 + $0x11d0] ss:$40 sps:$4 sm:$0xff]   ;;  %v6762_v37 = vld [vmem:[%s9882_s1 + $0x82c] ss:$40 sps:$4 sm:$0xff]  }
  0x76   : > { %4216 = vmatprep.subr.bf16.mxu0 %v6675_v35  ;;  %v6759_v35 = vld [vmem:[%s9882_s1 + $0x1224] ss:$40 sps:$4 sm:$0xff]  }
  0x78   : > { %4303 = vmatpush1.bf16.msra.mxu1 %v6676_v39  ;;  %v6760_v39 = vld [vmem:[%s9882_s1 + $0x828] ss:$40 sps:$4 sm:$0xff]  }
  0x79   : > { %4217 = vmatpush1.bf16.msra.mxu0 %v6673_v38  ;;  %4304 = vmatprep.subr.bf16.mxu1 %v6684_v41  ;;  %v6757_v38 = vld [vmem:[%s9882_s1 + $0x1220] ss:$40 sps:$4 sm:$0xff]   ;;  %v6768_v41 = vld [vmem:[%s9882_s1 + $0x87c] ss:$40 sps:$4 sm:$0xff]  }
  0x7a   : > { %4218 = vmatprep.subr.bf16.mxu0 %v6681_v40  ;;  %v6765_v40 = vld [vmem:[%s9882_s1 + $0x1274] ss:$40 sps:$4 sm:$0xff]  }
  0x7c   : > { %4305 = vmatpush1.bf16.msra.mxu1 %v6682_v43  ;;  %v6766_v43 = vld [vmem:[%s9882_s1 + $0x878] ss:$40 sps:$4 sm:$0xff]  }
  0x7d   : > { %4219 = vmatpush1.bf16.msra.mxu0 %v6679_v42  ;;  %4306 = vmatprep.subr.bf16.mxu1 %v6690_v45  ;;  %v6763_v42 = vld [vmem:[%s9882_s1 + $0x1270] ss:$40 sps:$4 sm:$0xff]   ;;  %v6774_v45 = vld [vmem:[%s9882_s1 + $0x8cc] ss:$40 sps:$4 sm:$0xff]  }
  0x7e   : > { %4220 = vmatprep.subr.bf16.mxu0 %v6687_v44  ;;  %v6771_v44 = vld [vmem:[%s9882_s1 + $0x12c4] ss:$40 sps:$4 sm:$0xff]  }
  0x80   : > { %4307 = vmatpush1.bf16.msra.mxu1 %v6688_v47  ;;  %v6772_v47 = vld [vmem:[%s9882_s1 + $0x8c8] ss:$40 sps:$4 sm:$0xff]  }
  0x81   : > { %4221 = vmatpush1.bf16.msra.mxu0 %v6685_v46  ;;  %4308 = vmatprep.subr.bf16.mxu1 %v6696_v51  ;;  %v6769_v46 = vld [vmem:[%s9882_s1 + $0x12c0] ss:$40 sps:$4 sm:$0xff]   ;;  %v6780_v51 = vld [vmem:[%s9882_s1 + $0x91c] ss:$40 sps:$4 sm:$0xff]  }
  0x82   : > { %4222 = vmatprep.subr.bf16.mxu0 %v6693_v50  ;;  %v6777_v50 = vld [vmem:[%s9882_s1 + $0x1314] ss:$40 sps:$4 sm:$0xff]  }
  0x84   : > { %4309 = vmatpush1.bf16.msra.mxu1 %v6694_v53  ;;  %v6778_v53 = vld [vmem:[%s9882_s1 + $0x918] ss:$40 sps:$4 sm:$0xff]  }
  0x85   : > { %4223 = vmatpush1.bf16.msra.mxu0 %v6691_v52  ;;  %4321 = vmatprep.subr.bf16.mxu1 %v6702_v57  ;;  %v6775_v52 = vld [vmem:[%s9882_s1 + $0x1310] ss:$40 sps:$4 sm:$0xff]   ;;  %v6786_v57 = vld [vmem:[%s9882_s1 + $0x96c] ss:$40 sps:$4 sm:$0xff]  }
  0x86   : > { %4235 = vmatprep.subr.bf16.mxu0 %v6699_v55  ;;  %v6783_v55 = vld [vmem:[%s9882_s1 + $0x1364] ss:$40 sps:$4 sm:$0xff]  }
  0x87   : > { %4311 = vmatmul.mubr.bf16.vlgmr.msra.gmra.mrb[4].mxu1 %v7852_v33 }
  0x88   : > { %4225 = vmatmul.mubr.bf16.vlgmr.msra.gmra.mrb[0].mxu0 %v7818_v16  ;;  %4322 = vmatpush1.bf16.msra.mxu1 %v6700_v59  ;;  %v6784_v59 = vld [vmem:[%s9882_s1 + $0x968] ss:$40 sps:$4 sm:$0xff]  }
  0x89   : > { %4236 = vmatpush1.bf16.msra.mxu0 %v6697_v58  ;;  %4323 = vmatprep.subr.bf16.mxu1 %v6708_v61  ;;  %v6781_v58 = vld [vmem:[%s9882_s1 + $0x1360] ss:$40 sps:$4 sm:$0xff]   ;;  %v6792_v61 = vld [vmem:[%s9882_s1 + $0x9bc] ss:$40 sps:$4 sm:$0xff]  }
  0x8a   : > { %4237 = vmatprep.subr.bf16.mxu0 %v6705_v60  ;;  %4267 = vmatprep.mubr.bf16.mxu0 %v7879_v49  ;;  %v6789_v60 = vld [vmem:[%s9882_s1 + $0x13b4] ss:$40 sps:$4 sm:$0xff]  }
  0x8b   : > { %4353 = vmatprep.mubr.bf16.mxu1 %v7795_v5 }
  0x8c   : > { %4324 = vmatpush1.bf16.msra.mxu1 %v6706_v63  ;;  %v6790_v63 = vld [vmem:[%s9882_s1 + $0x9b8] ss:$40 sps:$4 sm:$0xff]  }
  0x8d   : > { %4238 = vmatpush1.bf16.msra.mxu0 %v6703_v62  ;;  %4325 = vmatprep.subr.bf16.mxu1 %v6714_v1  ;;  %v6787_v62 = vld [vmem:[%s9882_s1 + $0x13b0] ss:$40 sps:$4 sm:$0xff]   ;;  %v6798_v1 = vld [vmem:[%s9882_s1 + $0x14] ss:$40 sps:$4 sm:$0xff]  }
  0x8e   : > { %4239 = vmatprep.subr.bf16.mxu0 %v6711_v0  ;;  %v6795_v0 = vld [vmem:[%s9882_s1 + $0xa0c] ss:$40 sps:$4 sm:$0xff]  }
  0x90   : > { %4326 = vmatpush1.bf16.msra.mxu1 %v6712_v3  ;;  %v6796_v3 = vld [vmem:[%s9882_s1 + $0x10] ss:$40 sps:$4 sm:$0xff]  }
  0x91   : > { %4240 = vmatpush1.bf16.msra.mxu0 %v6709_v2  ;;  %4327 = vmatprep.subr.bf16.mxu1 %v6720_v6  ;;  %v6793_v2 = vld [vmem:[%s9882_s1 + $0xa08] ss:$40 sps:$4 sm:$0xff]   ;;  %v6804_v6 = vld [vmem:[%s9882_s1 + $0x64] ss:$40 sps:$4 sm:$0xff]  }
  0x92   : > { %4241 = vmatprep.subr.bf16.mxu0 %v6717_v4  ;;  %v6801_v4 = vld [vmem:[%s9882_s1 + $0xa5c] ss:$40 sps:$4 sm:$0xff]  }
  0x94   : > { %4328 = vmatpush1.bf16.msra.mxu1 %v6718_v8  ;;  %v6802_v8 = vld [vmem:[%s9882_s1 + $0x60] ss:$40 sps:$4 sm:$0xff]  }
  0x95   : > { %4242 = vmatpush1.bf16.msra.mxu0 %v6715_v7  ;;  %4329 = vmatprep.subr.bf16.mxu1 %v6726_v10  ;;  %v6799_v7 = vld [vmem:[%s9882_s1 + $0xa58] ss:$40 sps:$4 sm:$0xff]   ;;  %v6810_v10 = vld [vmem:[%s9882_s1 + $0xb4] ss:$40 sps:$4 sm:$0xff]  }
  0x96   : > { %4243 = vmatprep.subr.bf16.mxu0 %v6723_v9  ;;  %v6807_v9 = vld [vmem:[%s9882_s1 + $0xaac] ss:$40 sps:$4 sm:$0xff]  }
  0x98   : > { %4330 = vmatpush1.bf16.msra.mxu1 %v6724_v12  ;;  %v6808_v12 = vld [vmem:[%s9882_s1 + $0xb0] ss:$40 sps:$4 sm:$0xff]  }
  0x99   : > { %4244 = vmatpush1.bf16.msra.mxu0 %v6721_v11  ;;  %4331 = vmatprep.subr.bf16.mxu1 %v6732_v14  ;;  %v6805_v11 = vld [vmem:[%s9882_s1 + $0xaa8] ss:$40 sps:$4 sm:$0xff]   ;;  %v6816_v14 = vld [vmem:[%s9882_s1 + $0x104] ss:$40 sps:$4 sm:$0xff]  }
  0x9a   : > { %4245 = vmatprep.subr.bf16.mxu0 %v6729_v13  ;;  %v6813_v13 = vld [vmem:[%s9882_s1 + $0xafc] ss:$40 sps:$4 sm:$0xff]  }
  0x9c   : > { %4332 = vmatpush1.bf16.msra.mxu1 %v6730_v17  ;;  %v6814_v17 = vld [vmem:[%s9882_s1 + $0x100] ss:$40 sps:$4 sm:$0xff]  }
  0x9d   : > { %4246 = vmatpush1.bf16.msra.mxu0 %v6727_v15  ;;  %4333 = vmatprep.subr.bf16.mxu1 %v6738_v19  ;;  %v6811_v15 = vld [vmem:[%s9882_s1 + $0xaf8] ss:$40 sps:$4 sm:$0xff]   ;;  %v6822_v19 = vld [vmem:[%s9882_s1 + $0x154] ss:$40 sps:$4 sm:$0xff]  }
  0x9e   : > { %4247 = vmatprep.subr.bf16.mxu0 %v6735_v18  ;;  %v6819_v18 = vld [vmem:[%s9882_s1 + $0xb4c] ss:$40 sps:$4 sm:$0xff]  }
  0xa0   : > { %4334 = vmatpush1.bf16.msra.mxu1 %v6736_v21  ;;  %v6820_v21 = vld [vmem:[%s9882_s1 + $0x150] ss:$40 sps:$4 sm:$0xff]  }
  0xa1   : > { %4248 = vmatpush1.bf16.msra.mxu0 %v6733_v20  ;;  %4335 = vmatprep.subr.bf16.mxu1 %v6744_v23  ;;  %v6817_v20 = vld [vmem:[%s9882_s1 + $0xb48] ss:$40 sps:$4 sm:$0xff]   ;;  %v6828_v23 = vld [vmem:[%s9882_s1 + $0x1a4] ss:$40 sps:$4 sm:$0xff]  }
  0xa2   : > { %4249 = vmatprep.subr.bf16.mxu0 %v6741_v22  ;;  %v6825_v22 = vld [vmem:[%s9882_s1 + $0xb9c] ss:$40 sps:$4 sm:$0xff]  }
  0xa4   : > { %4336 = vmatpush1.bf16.msra.mxu1 %v6742_v25  ;;  %v6826_v25 = vld [vmem:[%s9882_s1 + $0x1a0] ss:$40 sps:$4 sm:$0xff]  }
  0xa5   : > { %4250 = vmatpush1.bf16.msra.mxu0 %v6739_v24  ;;  %4337 = vmatprep.subr.bf16.mxu1 %v6750_v27  ;;  %v6823_v24 = vld [vmem:[%s9882_s1 + $0xb98] ss:$40 sps:$4 sm:$0xff]   ;;  %v6834_v27 = vld [vmem:[%s9882_s1 + $0x1f4] ss:$40 sps:$4 sm:$0xff]  }
  0xa6   : > { %4251 = vmatprep.subr.bf16.mxu0 %v6747_v26  ;;  %v6831_v26 = vld [vmem:[%s9882_s1 + $0xbec] ss:$40 sps:$4 sm:$0xff]  }
  0xa8   : > { %4338 = vmatpush1.bf16.msra.mxu1 %v6748_v29  ;;  %v6832_v29 = vld [vmem:[%s9882_s1 + $0x1f0] ss:$40 sps:$4 sm:$0xff]  }
  0xa9   : > { %4252 = vmatpush1.bf16.msra.mxu0 %v6745_v28  ;;  %4339 = vmatprep.subr.bf16.mxu1 %v6756_v31  ;;  %v6829_v28 = vld [vmem:[%s9882_s1 + $0xbe8] ss:$40 sps:$4 sm:$0xff]   ;;  %v6840_v31 = vld [vmem:[%s9882_s1 + $0x244] ss:$40 sps:$4 sm:$0xff]  }
  0xaa   : > { %4253 = vmatprep.subr.bf16.mxu0 %v6753_v30  ;;  %v6837_v30 = vld [vmem:[%s9882_s1 + $0xc3c] ss:$40 sps:$4 sm:$0xff]  }
  0xac   : > { %4340 = vmatpush1.bf16.msra.mxu1 %v6754_v34  ;;  %v6838_v34 = vld [vmem:[%s9882_s1 + $0x240] ss:$40 sps:$4 sm:$0xff]  }
  0xad   : > { %4254 = vmatpush1.bf16.msra.mxu0 %v6751_v32  ;;  %4341 = vmatprep.subr.bf16.mxu1 %v6762_v37  ;;  %v6835_v32 = vld [vmem:[%s9882_s1 + $0xc38] ss:$40 sps:$4 sm:$0xff]   ;;  %v6846_v37 = vld [vmem:[%s9882_s1 + $0x294] ss:$40 sps:$4 sm:$0xff]  }
  0xae   : > { %4255 = vmatprep.subr.bf16.mxu0 %v6759_v35  ;;  %v6843_v35 = vld [vmem:[%s9882_s1 + $0xc8c] ss:$40 sps:$4 sm:$0xff]  }
  0xb0   : > { %4342 = vmatpush1.bf16.msra.mxu1 %v6760_v39  ;;  %v6844_v39 = vld [vmem:[%s9882_s1 + $0x290] ss:$40 sps:$4 sm:$0xff]  }
  0xb1   : > { %4256 = vmatpush1.bf16.msra.mxu0 %v6757_v38  ;;  %4343 = vmatprep.subr.bf16.mxu1 %v6768_v41  ;;  %v6841_v38 = vld [vmem:[%s9882_s1 + $0xc88] ss:$40 sps:$4 sm:$0xff]   ;;  %v6852_v41 = vld [vmem:[%s9882_s1 + $0x2e4] ss:$40 sps:$4 sm:$0xff]  }
  0xb2   : > { %4257 = vmatprep.subr.bf16.mxu0 %v6765_v40  ;;  %v6849_v40 = vld [vmem:[%s9882_s1 + $0xcdc] ss:$40 sps:$4 sm:$0xff]  }
  0xb4   : > { %4344 = vmatpush1.bf16.msra.mxu1 %v6766_v43  ;;  %v6850_v43 = vld [vmem:[%s9882_s1 + $0x2e0] ss:$40 sps:$4 sm:$0xff]  }
  0xb5   : > { %4258 = vmatpush1.bf16.msra.mxu0 %v6763_v42  ;;  %4345 = vmatprep.subr.bf16.mxu1 %v6774_v45  ;;  %v6847_v42 = vld [vmem:[%s9882_s1 + $0xcd8] ss:$40 sps:$4 sm:$0xff]   ;;  %v6858_v45 = vld [vmem:[%s9882_s1 + $0x334] ss:$40 sps:$4 sm:$0xff]  }
  0xb6   : > { %4259 = vmatprep.subr.bf16.mxu0 %v6771_v44  ;;  %v6855_v44 = vld [vmem:[%s9882_s1 + $0xd2c] ss:$40 sps:$4 sm:$0xff]  }
  0xb8   : > { %4346 = vmatpush1.bf16.msra.mxu1 %v6772_v47  ;;  %v6856_v47 = vld [vmem:[%s9882_s1 + $0x330] ss:$40 sps:$4 sm:$0xff]  }
  0xb9   : > { %4260 = vmatpush1.bf16.msra.mxu0 %v6769_v46  ;;  %4347 = vmatprep.subr.bf16.mxu1 %v6780_v51  ;;  %v6853_v46 = vld [vmem:[%s9882_s1 + $0xd28] ss:$40 sps:$4 sm:$0xff]   ;;  %v6864_v51 = vld [vmem:[%s9882_s1 + $0x384] ss:$40 sps:$4 sm:$0xff]  }
  0xba   : > { %4261 = vmatprep.subr.bf16.mxu0 %v6777_v50  ;;  %v6861_v50 = vld [vmem:[%s9882_s1 + $0xd7c] ss:$40 sps:$4 sm:$0xff]  }
  0xbc   : > { %4348 = vmatpush1.bf16.msra.mxu1 %v6778_v53  ;;  %v6862_v53 = vld [vmem:[%s9882_s1 + $0x380] ss:$40 sps:$4 sm:$0xff]  }
  0xbd   : > { %4262 = vmatpush1.bf16.msra.mxu0 %v6775_v52  ;;  %4349 = vmatprep.subr.bf16.mxu1 %v6786_v57  ;;  %v6859_v52 = vld [vmem:[%s9882_s1 + $0xd78] ss:$40 sps:$4 sm:$0xff]   ;;  %v6870_v57 = vld [vmem:[%s9882_s1 + $0x3d4] ss:$40 sps:$4 sm:$0xff]  }
  0xbe   : > { %4263 = vmatprep.subr.bf16.mxu0 %v6783_v55  ;;  %v6867_v55 = vld [vmem:[%s9882_s1 + $0xdcc] ss:$40 sps:$4 sm:$0xff]  }
  0xc0   : > { %4350 = vmatpush1.bf16.msra.mxu1 %v6784_v59  ;;  %v6868_v59 = vld [vmem:[%s9882_s1 + $0x3d0] ss:$40 sps:$4 sm:$0xff]  }
  0xc1   : > { %4264 = vmatpush1.bf16.msra.mxu0 %v6781_v58  ;;  %4351 = vmatprep.subr.bf16.mxu1 %v6792_v61  ;;  %v6865_v58 = vld [vmem:[%s9882_s1 + $0xdc8] ss:$40 sps:$4 sm:$0xff]   ;;  %v6876_v61 = vld [vmem:[%s9882_s1 + $0x424] ss:$40 sps:$4 sm:$0xff]  }
  0xc2   : > { %4265 = vmatprep.subr.bf16.mxu0 %v6789_v60  ;;  %v6873_v60 = vld [vmem:[%s9882_s1 + $0xe1c] ss:$40 sps:$4 sm:$0xff]  }
  0xc4   : > { %4352 = vmatpush1.bf16.msra.mxu1 %v6790_v63  ;;  %v6874_v63 = vld [vmem:[%s9882_s1 + $0x420] ss:$40 sps:$4 sm:$0xff]  }
  0xc5   : > { %4266 = vmatpush1.bf16.msra.mxu0 %v6787_v62  ;;  %4364 = vmatprep.subr.bf16.mxu1 %v6795_v0  ;;  %v6871_v62 = vld [vmem:[%s9882_s1 + $0xe18] ss:$40 sps:$4 sm:$0xff]   ;;  %v6879_v0 = vld [vmem:[%s9882_s1 + $0xe6c] ss:$40 sps:$4 sm:$0xff]  }
  0xc6   : > { %4450 = vmatprep.subr.bf16.mxu0 %v6798_v1  ;;  %v6882_v1 = vld [vmem:[%s9882_s1 + $0x474] ss:$40 sps:$4 sm:$0xff]  }
  0xc7   : > { %4354 = vmatmul.mubr.bf16.vlgmr.msra.gmra.mrb[4].mxu1 %v7858_v36 }
  0xc8   : > { %4268 = vmatmul.mubr.bf16.vlgmr.msra.gmra.mrb[0].mxu0 %v7891_v54  ;;  %4365 = vmatpush1.bf16.msra.mxu1 %v6793_v2  ;;  %v6877_v2 = vld [vmem:[%s9882_s1 + $0xe68] ss:$40 sps:$4 sm:$0xff]  }
  0xc9   : > { %4451 = vmatpush1.bf16.msra.mxu0 %v6796_v3  ;;  %4366 = vmatprep.subr.bf16.mxu1 %v6801_v4  ;;  %v6880_v3 = vld [vmem:[%s9882_s1 + $0x470] ss:$40 sps:$4 sm:$0xff]   ;;  %v6885_v4 = vld [vmem:[%s9882_s1 + $0xebc] ss:$40 sps:$4 sm:$0xff]  }
  0xca   : > { %4452 = vmatprep.subr.bf16.mxu0 %v6804_v6  ;;  %4396 = vmatprep.mubr.bf16.mxu1 %v7877_v48  ;;  %v6888_v6 = vld [vmem:[%s9882_s1 + $0x4c4] ss:$40 sps:$4 sm:$0xff]  }
  0xcb   : > { %4482 = vmatprep.mubr.bf16.mxu0 %v7767_v56 }
  0xcc   : > { %4367 = vmatpush1.bf16.msra.mxu1 %v6799_v7  ;;  %v6883_v7 = vld [vmem:[%s9882_s1 + $0xeb8] ss:$40 sps:$4 sm:$0xff]  }
  0xcd   : > { %4453 = vmatpush1.bf16.msra.mxu0 %v6802_v8  ;;  %4368 = vmatprep.subr.bf16.mxu1 %v6807_v9  ;;  %v6886_v8 = vld [vmem:[%s9882_s1 + $0x4c0] ss:$40 sps:$4 sm:$0xff]   ;;  %v6891_v9 = vld [vmem:[%s9882_s1 + $0xf0c] ss:$40 sps:$4 sm:$0xff]  }
  0xce   : > { %4454 = vmatprep.subr.bf16.mxu0 %v6810_v10  ;;  %v6894_v10 = vld [vmem:[%s9882_s1 + $0x514] ss:$40 sps:$4 sm:$0xff]  }
  0xd0   : > { %4369 = vmatpush1.bf16.msra.mxu1 %v6805_v11  ;;  %v6889_v11 = vld [vmem:[%s9882_s1 + $0xf08] ss:$40 sps:$4 sm:$0xff]  }
  0xd1   : > { %4455 = vmatpush1.bf16.msra.mxu0 %v6808_v12  ;;  %4370 = vmatprep.subr.bf16.mxu1 %v6813_v13  ;;  %v6892_v12 = vld [vmem:[%s9882_s1 + $0x510] ss:$40 sps:$4 sm:$0xff]   ;;  %v6897_v13 = vld [vmem:[%s9882_s1 + $0xf5c] ss:$40 sps:$4 sm:$0xff]  }
  0xd2   : > { %4456 = vmatprep.subr.bf16.mxu0 %v6816_v14  ;;  %v6900_v14 = vld [vmem:[%s9882_s1 + $0x564] ss:$40 sps:$4 sm:$0xff]  }
  0xd4   : > { %4371 = vmatpush1.bf16.msra.mxu1 %v6811_v15  ;;  %v6895_v15 = vld [vmem:[%s9882_s1 + $0xf58] ss:$40 sps:$4 sm:$0xff]  }
  0xd5   : > { %4457 = vmatpush1.bf16.msra.mxu0 %v6814_v17  ;;  %4372 = vmatprep.subr.bf16.mxu1 %v6819_v18  ;;  %v6898_v17 = vld [vmem:[%s9882_s1 + $0x560] ss:$40 sps:$4 sm:$0xff]   ;;  %v6903_v18 = vld [vmem:[%s9882_s1 + $0xfac] ss:$40 sps:$4 sm:$0xff]  }
  0xd6   : > { %4458 = vmatprep.subr.bf16.mxu0 %v6822_v19  ;;  %v6906_v19 = vld [vmem:[%s9882_s1 + $0x5b4] ss:$40 sps:$4 sm:$0xff]  }
  0xd8   : > { %4373 = vmatpush1.bf16.msra.mxu1 %v6817_v20  ;;  %v6901_v20 = vld [vmem:[%s9882_s1 + $0xfa8] ss:$40 sps:$4 sm:$0xff]  }
  0xd9   : > { %4459 = vmatpush1.bf16.msra.mxu0 %v6820_v21  ;;  %4374 = vmatprep.subr.bf16.mxu1 %v6825_v22  ;;  %v6904_v21 = vld [vmem:[%s9882_s1 + $0x5b0] ss:$40 sps:$4 sm:$0xff]   ;;  %v6909_v22 = vld [vmem:[%s9882_s1 + $0xffc] ss:$40 sps:$4 sm:$0xff]  }
  0xda   : > { %4460 = vmatprep.subr.bf16.mxu0 %v6828_v23  ;;  %v6912_v23 = vld [vmem:[%s9882_s1 + $0x604] ss:$40 sps:$4 sm:$0xff]  }
  0xdc   : > { %4375 = vmatpush1.bf16.msra.mxu1 %v6823_v24  ;;  %v6907_v24 = vld [vmem:[%s9882_s1 + $0xff8] ss:$40 sps:$4 sm:$0xff]  }
  0xdd   : > { %4461 = vmatpush1.bf16.msra.mxu0 %v6826_v25  ;;  %4376 = vmatprep.subr.bf16.mxu1 %v6831_v26  ;;  %v6910_v25 = vld [vmem:[%s9882_s1 + $0x600] ss:$40 sps:$4 sm:$0xff]   ;;  %v6915_v26 = vld [vmem:[%s9882_s1 + $0x104c] ss:$40 sps:$4 sm:$0xff]  }
  0xde   : > { %4462 = vmatprep.subr.bf16.mxu0 %v6834_v27  ;;  %v6918_v27 = vld [vmem:[%s9882_s1 + $0x654] ss:$40 sps:$4 sm:$0xff]  }
  0xe0   : > { %4377 = vmatpush1.bf16.msra.mxu1 %v6829_v28  ;;  %v6913_v28 = vld [vmem:[%s9882_s1 + $0x1048] ss:$40 sps:$4 sm:$0xff]  }
  0xe1   : > { %4463 = vmatpush1.bf16.msra.mxu0 %v6832_v29  ;;  %4378 = vmatprep.subr.bf16.mxu1 %v6837_v30  ;;  %v6916_v29 = vld [vmem:[%s9882_s1 + $0x650] ss:$40 sps:$4 sm:$0xff]   ;;  %v6921_v30 = vld [vmem:[%s9882_s1 + $0x109c] ss:$40 sps:$4 sm:$0xff]  }
  0xe2   : > { %4464 = vmatprep.subr.bf16.mxu0 %v6840_v31  ;;  %v6924_v31 = vld [vmem:[%s9882_s1 + $0x6a4] ss:$40 sps:$4 sm:$0xff]  }
  0xe4   : > { %4379 = vmatpush1.bf16.msra.mxu1 %v6835_v32  ;;  %v6919_v32 = vld [vmem:[%s9882_s1 + $0x1098] ss:$40 sps:$4 sm:$0xff]  }
  0xe5   : > { %4465 = vmatpush1.bf16.msra.mxu0 %v6838_v34  ;;  %4380 = vmatprep.subr.bf16.mxu1 %v6843_v35  ;;  %v6922_v34 = vld [vmem:[%s9882_s1 + $0x6a0] ss:$40 sps:$4 sm:$0xff]   ;;  %v6927_v35 = vld [vmem:[%s9882_s1 + $0x10ec] ss:$40 sps:$4 sm:$0xff]  }
  0xe6   : > { %4466 = vmatprep.subr.bf16.mxu0 %v6846_v37  ;;  %v6930_v37 = vld [vmem:[%s9882_s1 + $0x6f4] ss:$40 sps:$4 sm:$0xff]  }
  0xe8   : > { %4381 = vmatpush1.bf16.msra.mxu1 %v6841_v38  ;;  %v6925_v38 = vld [vmem:[%s9882_s1 + $0x10e8] ss:$40 sps:$4 sm:$0xff]  }
  0xe9   : > { %4467 = vmatpush1.bf16.msra.mxu0 %v6844_v39  ;;  %4382 = vmatprep.subr.bf16.mxu1 %v6849_v40  ;;  %v6928_v39 = vld [vmem:[%s9882_s1 + $0x6f0] ss:$40 sps:$4 sm:$0xff]  }
  0xea   : > { %4468 = vmatprep.subr.bf16.mxu0 %v6852_v41 }
  0xec   : > { %4383 = vmatpush1.bf16.msra.mxu1 %v6847_v42 }
  0xed   : > { %4469 = vmatpush1.bf16.msra.mxu0 %v6850_v43  ;;  %4384 = vmatprep.subr.bf16.mxu1 %v6855_v44  ;;  %v6933_v43 = vld [vmem:[%s9882_s1 + $0x113c] ss:$40 sps:$4 sm:$0xff]  }
  0xee   : > { %4470 = vmatprep.subr.bf16.mxu0 %v6858_v45  ;;  %v6936_v44 = vld [vmem:[%s9882_s1 + $0x744] ss:$40 sps:$4 sm:$0xff]  }
  0xf0   : > { %4385 = vmatpush1.bf16.msra.mxu1 %v6853_v46  ;;  %v6931_v46 = vld [vmem:[%s9882_s1 + $0x1138] ss:$40 sps:$4 sm:$0xff]  }
  0xf1   : > { %4471 = vmatpush1.bf16.msra.mxu0 %v6856_v47  ;;  %4386 = vmatprep.subr.bf16.mxu1 %v6861_v50  ;;  %v6934_v47 = vld [vmem:[%s9882_s1 + $0x740] ss:$40 sps:$4 sm:$0xff]   ;;  %v6939_v50 = vld [vmem:[%s9882_s1 + $0x118c] ss:$40 sps:$4 sm:$0xff]  }
  0xf2   : > { %4472 = vmatprep.subr.bf16.mxu0 %v6864_v51  ;;  %v6942_v51 = vld [vmem:[%s9882_s1 + $0x794] ss:$40 sps:$4 sm:$0xff]  }
  0xf4   : > { %4387 = vmatpush1.bf16.msra.mxu1 %v6859_v52  ;;  %v6937_v52 = vld [vmem:[%s9882_s1 + $0x1188] ss:$40 sps:$4 sm:$0xff]  }
  0xf5   : > { %4473 = vmatpush1.bf16.msra.mxu0 %v6862_v53  ;;  %4388 = vmatprep.subr.bf16.mxu1 %v6867_v55  ;;  %v6940_v53 = vld [vmem:[%s9882_s1 + $0x790] ss:$40 sps:$4 sm:$0xff]   ;;  %v6945_v55 = vld [vmem:[%s9882_s1 + $0x11dc] ss:$40 sps:$4 sm:$0xff]  }
  0xf6   : > { %4474 = vmatprep.subr.bf16.mxu0 %v6870_v57  ;;  %v6948_v57 = vld [vmem:[%s9882_s1 + $0x7e4] ss:$40 sps:$4 sm:$0xff]  }
  0xf8   : > { %4389 = vmatpush1.bf16.msra.mxu1 %v6865_v58  ;;  %v6943_v58 = vld [vmem:[%s9882_s1 + $0x11d8] ss:$40 sps:$4 sm:$0xff]  }
  0xf9   : > { %4475 = vmatpush1.bf16.msra.mxu0 %v6868_v59  ;;  %4390 = vmatprep.subr.bf16.mxu1 %v6873_v60  ;;  %v6946_v59 = vld [vmem:[%s9882_s1 + $0x7e0] ss:$40 sps:$4 sm:$0xff]   ;;  %v6951_v60 = vld [vmem:[%s9882_s1 + $0x122c] ss:$40 sps:$4 sm:$0xff]  }
  0xfa   : > { %4476 = vmatprep.subr.bf16.mxu0 %v6876_v61  ;;  %v6954_v61 = vld [vmem:[%s9882_s1 + $0x834] ss:$40 sps:$4 sm:$0xff]  }
  0xfc   : > { %4391 = vmatpush1.bf16.msra.mxu1 %v6871_v62  ;;  %v6949_v62 = vld [vmem:[%s9882_s1 + $0x1228] ss:$40 sps:$4 sm:$0xff]  }
  0xfd   : > { %4477 = vmatpush1.bf16.msra.mxu0 %v6874_v63  ;;  %4392 = vmatprep.subr.bf16.mxu1 %v6879_v0  ;;  %v6952_v63 = vld [vmem:[%s9882_s1 + $0x830] ss:$40 sps:$4 sm:$0xff]   ;;  %v6957_v0 = vld [vmem:[%s9882_s1 + $0x127c] ss:$40 sps:$4 sm:$0xff]  }
  0xfe   : > { %4478 = vmatprep.subr.bf16.mxu0 %v6882_v1  ;;  %v6960_v1 = vld [vmem:[%s9882_s1 + $0x884] ss:$40 sps:$4 sm:$0xff]  }
 0x100   : > { %4393 = vmatpush1.bf16.msra.mxu1 %v6877_v2  ;;  %v6955_v2 = vld [vmem:[%s9882_s1 + $0x1278] ss:$40 sps:$4 sm:$0xff]  }
 0x101   : > { %4479 = vmatpush1.bf16.msra.mxu0 %v6880_v3  ;;  %4394 = vmatprep.subr.bf16.mxu1 %v6885_v4  ;;  %v6958_v3 = vld [vmem:[%s9882_s1 + $0x880] ss:$40 sps:$4 sm:$0xff]   ;;  %v6963_v4 = vld [vmem:[%s9882_s1 + $0x12cc] ss:$40 sps:$4 sm:$0xff]  }
 0x102   : > { %4480 = vmatprep.subr.bf16.mxu0 %v6888_v6  ;;  %v6966_v6 = vld [vmem:[%s9882_s1 + $0x8d4] ss:$40 sps:$4 sm:$0xff]  }
 0x104   : > { %4395 = vmatpush1.bf16.msra.mxu1 %v6883_v7  ;;  %v6961_v7 = vld [vmem:[%s9882_s1 + $0x12c8] ss:$40 sps:$4 sm:$0xff]  }
 0x105   : > { %4481 = vmatpush1.bf16.msra.mxu0 %v6886_v8  ;;  %4407 = vmatprep.subr.bf16.mxu1 %v6891_v9  ;;  %v6964_v8 = vld [vmem:[%s9882_s1 + $0x8d0] ss:$40 sps:$4 sm:$0xff]   ;;  %v6969_v9 = vld [vmem:[%s9882_s1 + $0x131c] ss:$40 sps:$4 sm:$0xff]  }
 0x106   : > { %4493 = vmatprep.subr.bf16.mxu0 %v6894_v10  ;;  %v6972_v10 = vld [vmem:[%s9882_s1 + $0x924] ss:$40 sps:$4 sm:$0xff]  }
 0x107   : > { %4397 = vmatmul.mubr.bf16.vlgmr.msra.gmra.mrb[4].mxu1 %v7818_v16 }
 0x108   : > { %4483 = vmatmul.mubr.bf16.vlgmr.msra.gmra.mrb[4].mxu0 %v7852_v33  ;;  %4408 = vmatpush1.bf16.msra.mxu1 %v6889_v11  ;;  %v6967_v11 = vld [vmem:[%s9882_s1 + $0x1318] ss:$40 sps:$4 sm:$0xff]  }
 0x109   : > { %4494 = vmatpush1.bf16.msra.mxu0 %v6892_v12  ;;  %4409 = vmatprep.subr.bf16.mxu1 %v6897_v13  ;;  %v6970_v12 = vld [vmem:[%s9882_s1 + $0x920] ss:$40 sps:$4 sm:$0xff]   ;;  %v6975_v13 = vld [vmem:[%s9882_s1 + $0x136c] ss:$40 sps:$4 sm:$0xff]  }
 0x10a   : > { %4495 = vmatprep.subr.bf16.mxu0 %v6900_v14  ;;  %4439 = vmatprep.mubr.bf16.mxu1 %v7879_v49  ;;  %v6978_v14 = vld [vmem:[%s9882_s1 + $0x974] ss:$40 sps:$4 sm:$0xff]  }
 0x10b   : > { %4525 = vmatprep.mubr.bf16.mxu0 %v7795_v5 }
 0x10c   : > { %4410 = vmatpush1.bf16.msra.mxu1 %v6895_v15  ;;  %v6973_v15 = vld [vmem:[%s9882_s1 + $0x1368] ss:$40 sps:$4 sm:$0xff]  }
 0x10d   : > { %4496 = vmatpush1.bf16.msra.mxu0 %v6898_v17  ;;  %4411 = vmatprep.subr.bf16.mxu1 %v6903_v18  ;;  %v6976_v17 = vld [vmem:[%s9882_s1 + $0x970] ss:$40 sps:$4 sm:$0xff]   ;;  %v6981_v18 = vld [vmem:[%s9882_s1 + $0x13bc] ss:$40 sps:$4 sm:$0xff]  }
 0x10e   : > { %4497 = vmatprep.subr.bf16.mxu0 %v6906_v19  ;;  %v6984_v19 = vld [vmem:[%s9882_s1 + $0x9c4] ss:$40 sps:$4 sm:$0xff]  }
 0x110   : > { %4412 = vmatpush1.bf16.msra.mxu1 %v6901_v20  ;;  %v6979_v20 = vld [vmem:[%s9882_s1 + $0x13b8] ss:$40 sps:$4 sm:$0xff]  }
 0x111   : > { %4498 = vmatpush1.bf16.msra.mxu0 %v6904_v21  ;;  %4413 = vmatprep.subr.bf16.mxu1 %v6909_v22  ;;  %v6982_v21 = vld [vmem:[%s9882_s1 + $0x9c0] ss:$40 sps:$4 sm:$0xff]   ;;  %v6987_v22 = vld [vmem:[%s9882_s1 + $0xa14] ss:$40 sps:$4 sm:$0xff]  }
 0x112   : > { %4499 = vmatprep.subr.bf16.mxu0 %v6912_v23  ;;  %v6990_v23 = vld [vmem:[%s9882_s1 + $0x1c] ss:$40 sps:$4 sm:$0xff]  }
 0x114   : > { %4414 = vmatpush1.bf16.msra.mxu1 %v6907_v24  ;;  %v6985_v24 = vld [vmem:[%s9882_s1 + $0xa10] ss:$40 sps:$4 sm:$0xff]  }
 0x115   : > { %4500 = vmatpush1.bf16.msra.mxu0 %v6910_v25  ;;  %4415 = vmatprep.subr.bf16.mxu1 %v6915_v26  ;;  %v6988_v25 = vld [vmem:[%s9882_s1 + $0x18] ss:$40 sps:$4 sm:$0xff]   ;;  %v6993_v26 = vld [vmem:[%s9882_s1 + $0xa64] ss:$40 sps:$4 sm:$0xff]  }
 0x116   : > { %4501 = vmatprep.subr.bf16.mxu0 %v6918_v27  ;;  %v6996_v27 = vld [vmem:[%s9882_s1 + $0x6c] ss:$40 sps:$4 sm:$0xff]  }
 0x118   : > { %4416 = vmatpush1.bf16.msra.mxu1 %v6913_v28  ;;  %v6991_v28 = vld [vmem:[%s9882_s1 + $0xa60] ss:$40 sps:$4 sm:$0xff]  }
 0x119   : > { %4502 = vmatpush1.bf16.msra.mxu0 %v6916_v29  ;;  %4417 = vmatprep.subr.bf16.mxu1 %v6921_v30  ;;  %v6994_v29 = vld [vmem:[%s9882_s1 + $0x68] ss:$40 sps:$4 sm:$0xff]   ;;  %v6999_v30 = vld [vmem:[%s9882_s1 + $0xab4] ss:$40 sps:$4 sm:$0xff]  }
 0x11a   : > { %4503 = vmatprep.subr.bf16.mxu0 %v6924_v31  ;;  %v8543_v40 = vpop.f32.mrb[0].mxu1  ;;  %v7002_v31 = vld [vmem:[%s9882_s1 + $0xbc] ss:$40 sps:$4 sm:$0xff]  }
 0x11b   : > { %v8545_v41 = vpop.f32.mrb[1].mxu1 }
 0x11c   : > { %4418 = vmatpush1.bf16.msra.mxu1 %v6919_v32  ;;  %v8547_v42 = vpop.f32.mrb[2].mxu1  ;;  %v6997_v32 = vld [vmem:[%s9882_s1 + $0xab0] ss:$40 sps:$4 sm:$0xff]  }
 0x11d   : > { %4504 = vmatpush1.bf16.msra.mxu0 %v6922_v34  ;;  %4419 = vmatprep.subr.bf16.mxu1 %v6927_v35  ;;  %v8555_v45 = vpop.f32.mrb[3].mxu1  ;;  %v7000_v34 = vld [vmem:[%s9882_s1 + $0xb8] ss:$40 sps:$4 sm:$0xff]   ;;  %v7005_v35 = vld [vmem:[%s9882_s1 + $0xb04] ss:$40 sps:$4 sm:$0xff]  }
 0x11e   : > { %4505 = vmatprep.subr.bf16.mxu0 %v6930_v37  ;;  %v7008_v37 = vld [vmem:[%s9882_s1 + $0x10c] ss:$40 sps:$4 sm:$0xff]  }
 0x120   : > { %4420 = vmatpush1.bf16.msra.mxu1 %v6925_v38  ;;  %v7003_v38 = vld [vmem:[%s9882_s1 + $0xb00] ss:$40 sps:$4 sm:$0xff]  }
 0x121   : > { %4506 = vmatpush1.bf16.msra.mxu0 %v6928_v39  ;;  %4421 = vmatprep.subr.bf16.mxu1 %v6933_v43  ;;  %v7006_v39 = vld [vmem:[%s9882_s1 + $0x108] ss:$40 sps:$4 sm:$0xff]   ;;  %v7011_v43 = vld [vmem:[%s9882_s1 + $0xb54] ss:$40 sps:$4 sm:$0xff]  }
 0x122   : > { %4507 = vmatprep.subr.bf16.mxu0 %v6936_v44  ;;  %v7014_v44 = vld [vmem:[%s9882_s1 + $0x15c] ss:$40 sps:$4 sm:$0xff]  }
 0x124   : > { %4422 = vmatpush1.bf16.msra.mxu1 %v6931_v46  ;;  %v7009_v46 = vld [vmem:[%s9882_s1 + $0xb50] ss:$40 sps:$4 sm:$0xff]  }
 0x125   : > { %4508 = vmatpush1.bf16.msra.mxu0 %v6934_v47  ;;  %4423 = vmatprep.subr.bf16.mxu1 %v6939_v50  ;;  %v7012_v47 = vld [vmem:[%s9882_s1 + $0x158] ss:$40 sps:$4 sm:$0xff]   ;;  %v7017_v50 = vld [vmem:[%s9882_s1 + $0xba4] ss:$40 sps:$4 sm:$0xff]  }
 0x126   : > { %4509 = vmatprep.subr.bf16.mxu0 %v6942_v51  ;;  %v7020_v51 = vld [vmem:[%s9882_s1 + $0x1ac] ss:$40 sps:$4 sm:$0xff]  }
 0x128   : > { %4424 = vmatpush1.bf16.msra.mxu1 %v6937_v52  ;;  %v7015_v52 = vld [vmem:[%s9882_s1 + $0xba0] ss:$40 sps:$4 sm:$0xff]  }
 0x129   : > { %4510 = vmatpush1.bf16.msra.mxu0 %v6940_v53  ;;  %4425 = vmatprep.subr.bf16.mxu1 %v6945_v55  ;;  %v7018_v53 = vld [vmem:[%s9882_s1 + $0x1a8] ss:$40 sps:$4 sm:$0xff]   ;;  %v7023_v55 = vld [vmem:[%s9882_s1 + $0xbf4] ss:$40 sps:$4 sm:$0xff]  }
 0x12a   : > { %4511 = vmatprep.subr.bf16.mxu0 %v6948_v57  ;;  %v7026_v57 = vld [vmem:[%s9882_s1 + $0x1fc] ss:$40 sps:$4 sm:$0xff]  }
 0x12c   : > { %4426 = vmatpush1.bf16.msra.mxu1 %v6943_v58  ;;  %v7021_v58 = vld [vmem:[%s9882_s1 + $0xbf0] ss:$40 sps:$4 sm:$0xff]  }
 0x12d   : > { %4512 = vmatpush1.bf16.msra.mxu0 %v6946_v59  ;;  %4427 = vmatprep.subr.bf16.mxu1 %v6951_v60  ;;  %v7024_v59 = vld [vmem:[%s9882_s1 + $0x1f8] ss:$40 sps:$4 sm:$0xff]   ;;  %v7029_v60 = vld [vmem:[%s9882_s1 + $0xc44] ss:$40 sps:$4 sm:$0xff]  }
 0x12e   : > { %4513 = vmatprep.subr.bf16.mxu0 %v6954_v61  ;;  %v7032_v61 = vld [vmem:[%s9882_s1 + $0x24c] ss:$40 sps:$4 sm:$0xff]  }
 0x130   : > { %4428 = vmatpush1.bf16.msra.mxu1 %v6949_v62  ;;  %v7027_v62 = vld [vmem:[%s9882_s1 + $0xc40] ss:$40 sps:$4 sm:$0xff]  }
 0x131   : > { %4514 = vmatpush1.bf16.msra.mxu0 %v6952_v63  ;;  %4429 = vmatprep.subr.bf16.mxu1 %v6957_v0  ;;  %v7030_v63 = vld [vmem:[%s9882_s1 + $0x248] ss:$40 sps:$4 sm:$0xff]   ;;  %v7035_v0 = vld [vmem:[%s9882_s1 + $0xc94] ss:$40 sps:$4 sm:$0xff]  }
 0x132   : > { %4515 = vmatprep.subr.bf16.mxu0 %v6960_v1  ;;  %v7038_v1 = vld [vmem:[%s9882_s1 + $0x29c] ss:$40 sps:$4 sm:$0xff]  }
 0x134   : > { %4430 = vmatpush1.bf16.msra.mxu1 %v6955_v2  ;;  %v7033_v2 = vld [vmem:[%s9882_s1 + $0xc90] ss:$40 sps:$4 sm:$0xff]  }
 0x135   : > { %4516 = vmatpush1.bf16.msra.mxu0 %v6958_v3  ;;  %4431 = vmatprep.subr.bf16.mxu1 %v6963_v4  ;;  %v7036_v3 = vld [vmem:[%s9882_s1 + $0x298] ss:$40 sps:$4 sm:$0xff]   ;;  %v7041_v4 = vld [vmem:[%s9882_s1 + $0xce4] ss:$40 sps:$4 sm:$0xff]  }
 0x136   : > { %4517 = vmatprep.subr.bf16.mxu0 %v6966_v6  ;;  %v7044_v6 = vld [vmem:[%s9882_s1 + $0x2ec] ss:$40 sps:$4 sm:$0xff]  }
 0x138   : > { %4432 = vmatpush1.bf16.msra.mxu1 %v6961_v7  ;;  %v7039_v7 = vld [vmem:[%s9882_s1 + $0xce0] ss:$40 sps:$4 sm:$0xff]  }
 0x139   : > { %4518 = vmatpush1.bf16.msra.mxu0 %v6964_v8  ;;  %4433 = vmatprep.subr.bf16.mxu1 %v6969_v9  ;;  %v7042_v8 = vld [vmem:[%s9882_s1 + $0x2e8] ss:$40 sps:$4 sm:$0xff]   ;;  %v7047_v9 = vld [vmem:[%s9882_s1 + $0xd34] ss:$40 sps:$4 sm:$0xff]  }
 0x13a   : > { %4519 = vmatprep.subr.bf16.mxu0 %v6972_v10  ;;  %v7050_v10 = vld [vmem:[%s9882_s1 + $0x33c] ss:$40 sps:$4 sm:$0xff]  }
 0x13c   : > { %4434 = vmatpush1.bf16.msra.mxu1 %v6967_v11  ;;  %v7045_v11 = vld [vmem:[%s9882_s1 + $0xd30] ss:$40 sps:$4 sm:$0xff]  }
 0x13d   : > { %4520 = vmatpush1.bf16.msra.mxu0 %v6970_v12  ;;  %4435 = vmatprep.subr.bf16.mxu1 %v6975_v13  ;;  %v7048_v12 = vld [vmem:[%s9882_s1 + $0x338] ss:$40 sps:$4 sm:$0xff]   ;;  %v7053_v13 = vld [vmem:[%s9882_s1 + $0xd84] ss:$40 sps:$4 sm:$0xff]  }
 0x13e   : > { %4521 = vmatprep.subr.bf16.mxu0 %v6978_v14  ;;  %v7056_v14 = vld [vmem:[%s9882_s1 + $0x38c] ss:$40 sps:$4 sm:$0xff]  }
 0x140   : > { %4436 = vmatpush1.bf16.msra.mxu1 %v6973_v15  ;;  %v7051_v15 = vld [vmem:[%s9882_s1 + $0xd80] ss:$40 sps:$4 sm:$0xff]  }
 0x141   : > { %4522 = vmatpush1.bf16.msra.mxu0 %v6976_v17  ;;  %4437 = vmatprep.subr.bf16.mxu1 %v6981_v18  ;;  %v7054_v17 = vld [vmem:[%s9882_s1 + $0x388] ss:$40 sps:$4 sm:$0xff]   ;;  %v7059_v18 = vld [vmem:[%s9882_s1 + $0xdd4] ss:$40 sps:$4 sm:$0xff]  }
 0x142   : > { %4523 = vmatprep.subr.bf16.mxu0 %v6984_v19  ;;  %v7062_v19 = vld [vmem:[%s9882_s1 + $0x3dc] ss:$40 sps:$4 sm:$0xff]  }
 0x144   : > { %4438 = vmatpush1.bf16.msra.mxu1 %v6979_v20  ;;  %v7057_v20 = vld [vmem:[%s9882_s1 + $0xdd0] ss:$40 sps:$4 sm:$0xff]  }
 0x145   : > { %4524 = vmatpush1.bf16.msra.mxu0 %v6982_v21  ;;  %4622 = vmatprep.subr.bf16.mxu1 %v6990_v23  ;;  %v7060_v21 = vld [vmem:[%s9882_s1 + $0x3d8] ss:$40 sps:$4 sm:$0xff]   ;;  %v7068_v23 = vld [vmem:[%s9882_s1 + $0x42c] ss:$40 sps:$4 sm:$0xff]  }
 0x146   : > { %4536 = vmatprep.subr.bf16.mxu0 %v6987_v22  ;;  %v7065_v22 = vld [vmem:[%s9882_s1 + $0xe24] ss:$40 sps:$4 sm:$0xff]  }
 0x147   : > { %4440 = vmatmul.mubr.bf16.vlgmr.msra.gmra.mrb[4].mxu1 %v7891_v54 }
 0x148   : > { %4526 = vmatmul.mubr.bf16.vlgmr.msra.gmra.mrb[4].mxu0 %v7858_v36  ;;  %4623 = vmatpush1.bf16.msra.mxu1 %v6988_v25  ;;  %v7066_v25 = vld [vmem:[%s9882_s1 + $0x428] ss:$40 sps:$4 sm:$0xff]  }
 0x149   : > { %4537 = vmatpush1.bf16.msra.mxu0 %v6985_v24  ;;  %4624 = vmatprep.subr.bf16.mxu1 %v6996_v27  ;;  %v7063_v24 = vld [vmem:[%s9882_s1 + $0xe20] ss:$40 sps:$4 sm:$0xff]   ;;  %v7074_v27 = vld [vmem:[%s9882_s1 + $0x47c] ss:$40 sps:$4 sm:$0xff]  }
 0x14a   : > { %4538 = vmatprep.subr.bf16.mxu0 %v6993_v26  ;;  %4568 = vmatprep.mubr.bf16.mxu0 %v7877_v48  ;;  %v7071_v26 = vld [vmem:[%s9882_s1 + $0xe74] ss:$40 sps:$4 sm:$0xff]  }
 0x14b   : > { %4654 = vmatprep.mubr.bf16.mxu1 %v7767_v56 }
 0x14c   : > { %4625 = vmatpush1.bf16.msra.mxu1 %v6994_v29  ;;  %v7072_v29 = vld [vmem:[%s9882_s1 + $0x478] ss:$40 sps:$4 sm:$0xff]  }
 0x14d   : > { %4539 = vmatpush1.bf16.msra.mxu0 %v6991_v28  ;;  %4626 = vmatprep.subr.bf16.mxu1 %v7002_v31  ;;  %v7069_v28 = vld [vmem:[%s9882_s1 + $0xe70] ss:$40 sps:$4 sm:$0xff]   ;;  %v7080_v31 = vld [vmem:[%s9882_s1 + $0x4cc] ss:$40 sps:$4 sm:$0xff]  }
 0x14e   : > { %4540 = vmatprep.subr.bf16.mxu0 %v6999_v30  ;;  %v7077_v30 = vld [vmem:[%s9882_s1 + $0xec4] ss:$40 sps:$4 sm:$0xff]  }
 0x150   : > { %4627 = vmatpush1.bf16.msra.mxu1 %v7000_v34  ;;  %v7078_v34 = vld [vmem:[%s9882_s1 + $0x4c8] ss:$40 sps:$4 sm:$0xff]  }
 0x151   : > { %4541 = vmatpush1.bf16.msra.mxu0 %v6997_v32  ;;  %4628 = vmatprep.subr.bf16.mxu1 %v7008_v37  ;;  %v7075_v32 = vld [vmem:[%s9882_s1 + $0xec0] ss:$40 sps:$4 sm:$0xff]   ;;  %v7086_v37 = vld [vmem:[%s9882_s1 + $0x51c] ss:$40 sps:$4 sm:$0xff]  }
 0x152   : > { %4542 = vmatprep.subr.bf16.mxu0 %v7005_v35  ;;  %v7083_v35 = vld [vmem:[%s9882_s1 + $0xf14] ss:$40 sps:$4 sm:$0xff]  }
 0x154   : > { %4629 = vmatpush1.bf16.msra.mxu1 %v7006_v39  ;;  %v7084_v39 = vld [vmem:[%s9882_s1 + $0x518] ss:$40 sps:$4 sm:$0xff]  }
 0x155   : > { %4543 = vmatpush1.bf16.msra.mxu0 %v7003_v38  ;;  %4630 = vmatprep.subr.bf16.mxu1 %v7014_v44  ;;  %v7081_v38 = vld [vmem:[%s9882_s1 + $0xf10] ss:$40 sps:$4 sm:$0xff]   ;;  %v7092_v44 = vld [vmem:[%s9882_s1 + $0x56c] ss:$40 sps:$4 sm:$0xff]  }
 0x156   : > { %4544 = vmatprep.subr.bf16.mxu0 %v7011_v43  ;;  %v7089_v43 = vld [vmem:[%s9882_s1 + $0xf64] ss:$40 sps:$4 sm:$0xff]  }
 0x158   : > { %4631 = vmatpush1.bf16.msra.mxu1 %v7012_v47  ;;  %v7090_v47 = vld [vmem:[%s9882_s1 + $0x568] ss:$40 sps:$4 sm:$0xff]  }
 0x159   : > { %4545 = vmatpush1.bf16.msra.mxu0 %v7009_v46  ;;  %4632 = vmatprep.subr.bf16.mxu1 %v7020_v51  ;;  %v7087_v46 = vld [vmem:[%s9882_s1 + $0xf60] ss:$40 sps:$4 sm:$0xff]   ;;  %v7098_v51 = vld [vmem:[%s9882_s1 + $0x5bc] ss:$40 sps:$4 sm:$0xff]  }
 0x15a   : > { %4546 = vmatprep.subr.bf16.mxu0 %v7017_v50  ;;  %v7095_v50 = vld [vmem:[%s9882_s1 + $0xfb4] ss:$40 sps:$4 sm:$0xff]  }
 0x15c   : > { %4633 = vmatpush1.bf16.msra.mxu1 %v7018_v53  ;;  %v7096_v53 = vld [vmem:[%s9882_s1 + $0x5b8] ss:$40 sps:$4 sm:$0xff]  }
 0x15d   : > { %4547 = vmatpush1.bf16.msra.mxu0 %v7015_v52  ;;  %4634 = vmatprep.subr.bf16.mxu1 %v7026_v57  ;;  %v7093_v52 = vld [vmem:[%s9882_s1 + $0xfb0] ss:$40 sps:$4 sm:$0xff]   ;;  %v7104_v57 = vld [vmem:[%s9882_s1 + $0x60c] ss:$40 sps:$4 sm:$0xff]  }
 0x15e   : > { %4548 = vmatprep.subr.bf16.mxu0 %v7023_v55  ;;  %v7101_v55 = vld [vmem:[%s9882_s1 + $0x1004] ss:$40 sps:$4 sm:$0xff]  }
 0x160   : > { %4635 = vmatpush1.bf16.msra.mxu1 %v7024_v59  ;;  %v7102_v59 = vld [vmem:[%s9882_s1 + $0x608] ss:$40 sps:$4 sm:$0xff]  }
 0x161   : > { %4549 = vmatpush1.bf16.msra.mxu0 %v7021_v58  ;;  %4636 = vmatprep.subr.bf16.mxu1 %v7032_v61  ;;  %v7099_v58 = vld [vmem:[%s9882_s1 + $0x1000] ss:$40 sps:$4 sm:$0xff]   ;;  %v7110_v61 = vld [vmem:[%s9882_s1 + $0x65c] ss:$40 sps:$4 sm:$0xff]  }
 0x162   : > { %4550 = vmatprep.subr.bf16.mxu0 %v7029_v60  ;;  %v7107_v60 = vld [vmem:[%s9882_s1 + $0x1054] ss:$40 sps:$4 sm:$0xff]  }
 0x164   : > { %4637 = vmatpush1.bf16.msra.mxu1 %v7030_v63  ;;  %v7108_v63 = vld [vmem:[%s9882_s1 + $0x658] ss:$40 sps:$4 sm:$0xff]  }
 0x165   : > { %4551 = vmatpush1.bf16.msra.mxu0 %v7027_v62  ;;  %4638 = vmatprep.subr.bf16.mxu1 %v7038_v1  ;;  %v7105_v62 = vld [vmem:[%s9882_s1 + $0x1050] ss:$40 sps:$4 sm:$0xff]   ;;  %v7116_v1 = vld [vmem:[%s9882_s1 + $0x6ac] ss:$40 sps:$4 sm:$0xff]  }
 0x166   : > { %4552 = vmatprep.subr.bf16.mxu0 %v7035_v0  ;;  %v7113_v0 = vld [vmem:[%s9882_s1 + $0x10a4] ss:$40 sps:$4 sm:$0xff]  }
 0x168   : > { %4639 = vmatpush1.bf16.msra.mxu1 %v7036_v3  ;;  %v7114_v3 = vld [vmem:[%s9882_s1 + $0x6a8] ss:$40 sps:$4 sm:$0xff]  }
 0x169   : > { %4553 = vmatpush1.bf16.msra.mxu0 %v7033_v2  ;;  %4640 = vmatprep.subr.bf16.mxu1 %v7044_v6  ;;  %v7111_v2 = vld [vmem:[%s9882_s1 + $0x10a0] ss:$40 sps:$4 sm:$0xff]   ;;  %v7122_v6 = vld [vmem:[%s9882_s1 + $0x6fc] ss:$40 sps:$4 sm:$0xff]  }
 0x16a   : > { %4554 = vmatprep.subr.bf16.mxu0 %v7041_v4  ;;  %v7119_v4 = vld [vmem:[%s9882_s1 + $0x10f4] ss:$40 sps:$4 sm:$0xff]  }
 0x16c   : > { %4641 = vmatpush1.bf16.msra.mxu1 %v7042_v8  ;;  %v7117_v8 = vld [vmem:[%s9882_s1 + $0x10f0] ss:$40 sps:$4 sm:$0xff]  }
 0x16d   : > { %4555 = vmatpush1.bf16.msra.mxu0 %v7039_v7  ;;  %4642 = vmatprep.subr.bf16.mxu1 %v7050_v10 }
 0x16e   : > { %4556 = vmatprep.subr.bf16.mxu0 %v7047_v9  ;;  %v7120_v9 = vld [vmem:[%s9882_s1 + $0x6f8] ss:$40 sps:$4 sm:$0xff]  }
 0x170   : > { %4643 = vmatpush1.bf16.msra.mxu1 %v7048_v12 }
 0x171   : > { %4557 = vmatpush1.bf16.msra.mxu0 %v7045_v11  ;;  %4644 = vmatprep.subr.bf16.mxu1 %v7056_v14 }
 0x172   : > { %4558 = vmatprep.subr.bf16.mxu0 %v7053_v13 }
 0x174   : > { %4645 = vmatpush1.bf16.msra.mxu1 %v7054_v17  ;;  %v7125_v17 = vld [vmem:[%s9882_s1 + $0x1144] ss:$40 sps:$4 sm:$0xff]  }
 0x175   : > { %4559 = vmatpush1.bf16.msra.mxu0 %v7051_v15  ;;  %4646 = vmatprep.subr.bf16.mxu1 %v7062_v19  ;;  %v7131_v19 = vld [vmem:[%s9882_s1 + $0x1194] ss:$40 sps:$4 sm:$0xff]  }
 0x176   : > { %4560 = vmatprep.subr.bf16.mxu0 %v7059_v18  ;;  %v7126_v18 = vld [vmem:[%s9882_s1 + $0x748] ss:$40 sps:$4 sm:$0xff]  }
 0x178   : > { %4647 = vmatpush1.bf16.msra.mxu1 %v7060_v21  ;;  %v7132_v21 = vld [vmem:[%s9882_s1 + $0x798] ss:$40 sps:$4 sm:$0xff]  }
 0x179   : > { %4561 = vmatpush1.bf16.msra.mxu0 %v7057_v20  ;;  %4648 = vmatprep.subr.bf16.mxu1 %v7068_v23  ;;  %v7129_v20 = vld [vmem:[%s9882_s1 + $0x1190] ss:$40 sps:$4 sm:$0xff]   ;;  %v7140_v23 = vld [vmem:[%s9882_s1 + $0x7ec] ss:$40 sps:$4 sm:$0xff]  }
 0x17a   : > { %4562 = vmatprep.subr.bf16.mxu0 %v7065_v22  ;;  %v7137_v22 = vld [vmem:[%s9882_s1 + $0x11e4] ss:$40 sps:$4 sm:$0xff]  }
 0x17c   : > { %4649 = vmatpush1.bf16.msra.mxu1 %v7066_v25  ;;  %v7138_v25 = vld [vmem:[%s9882_s1 + $0x7e8] ss:$40 sps:$4 sm:$0xff]  }
 0x17d   : > { %4563 = vmatpush1.bf16.msra.mxu0 %v7063_v24  ;;  %4650 = vmatprep.subr.bf16.mxu1 %v7074_v27  ;;  %v7135_v24 = vld [vmem:[%s9882_s1 + $0x11e0] ss:$40 sps:$4 sm:$0xff]   ;;  %v7146_v27 = vld [vmem:[%s9882_s1 + $0x83c] ss:$40 sps:$4 sm:$0xff]  }
 0x17e   : > { %4564 = vmatprep.subr.bf16.mxu0 %v7071_v26  ;;  %v7143_v26 = vld [vmem:[%s9882_s1 + $0x1234] ss:$40 sps:$4 sm:$0xff]  }
 0x180   : > { %4651 = vmatpush1.bf16.msra.mxu1 %v7072_v29  ;;  %v7144_v29 = vld [vmem:[%s9882_s1 + $0x838] ss:$40 sps:$4 sm:$0xff]  }
 0x181   : > { %4565 = vmatpush1.bf16.msra.mxu0 %v7069_v28  ;;  %4652 = vmatprep.subr.bf16.mxu1 %v7080_v31  ;;  %v7141_v28 = vld [vmem:[%s9882_s1 + $0x1230] ss:$40 sps:$4 sm:$0xff]   ;;  %v7152_v31 = vld [vmem:[%s9882_s1 + $0x88c] ss:$40 sps:$4 sm:$0xff]  }
 0x182   : > { %4566 = vmatprep.subr.bf16.mxu0 %v7077_v30  ;;  %v7149_v30 = vld [vmem:[%s9882_s1 + $0x1284] ss:$40 sps:$4 sm:$0xff]  }
 0x184   : > { %4653 = vmatpush1.bf16.msra.mxu1 %v7078_v34  ;;  %v7150_v34 = vld [vmem:[%s9882_s1 + $0x888] ss:$40 sps:$4 sm:$0xff]  }
 0x185   : > { %4567 = vmatpush1.bf16.msra.mxu0 %v7075_v32  ;;  %4665 = vmatprep.subr.bf16.mxu1 %v7086_v37  ;;  %v7147_v32 = vld [vmem:[%s9882_s1 + $0x1280] ss:$40 sps:$4 sm:$0xff]   ;;  %v7158_v37 = vld [vmem:[%s9882_s1 + $0x8dc] ss:$40 sps:$4 sm:$0xff]  }
 0x186   : > { %4579 = vmatprep.subr.bf16.mxu0 %v7083_v35  ;;  %v7155_v35 = vld [vmem:[%s9882_s1 + $0x12d4] ss:$40 sps:$4 sm:$0xff]  }
 0x187   : > { %4655 = vmatmul.mubr.bf16.vlgmr.msra.gmra.mrb[8].mxu1 %v7852_v33 }
 0x188   : > { %4569 = vmatmul.mubr.bf16.vlgmr.msra.gmra.mrb[4].mxu0 %v7818_v16  ;;  %4666 = vmatpush1.bf16.msra.mxu1 %v7084_v39  ;;  %v7156_v39 = vld [vmem:[%s9882_s1 + $0x8d8] ss:$40 sps:$4 sm:$0xff]  }
 0x189   : > { %4580 = vmatpush1.bf16.msra.mxu0 %v7081_v38  ;;  %4667 = vmatprep.subr.bf16.mxu1 %v7092_v44  ;;  %v7153_v38 = vld [vmem:[%s9882_s1 + $0x12d0] ss:$40 sps:$4 sm:$0xff]   ;;  %v7164_v44 = vld [vmem:[%s9882_s1 + $0x92c] ss:$40 sps:$4 sm:$0xff]  }
 0x18a   : > { %4581 = vmatprep.subr.bf16.mxu0 %v7089_v43  ;;  %4611 = vmatprep.mubr.bf16.mxu0 %v7879_v49  ;;  %v7161_v43 = vld [vmem:[%s9882_s1 + $0x1324] ss:$40 sps:$4 sm:$0xff]  }
 0x18b   : > { %4697 = vmatprep.mubr.bf16.mxu1 %v7795_v5 }
 0x18c   : > { %4668 = vmatpush1.bf16.msra.mxu1 %v7090_v47  ;;  %v7162_v47 = vld [vmem:[%s9882_s1 + $0x928] ss:$40 sps:$4 sm:$0xff]  }
 0x18d   : > { %4582 = vmatpush1.bf16.msra.mxu0 %v7087_v46  ;;  %4669 = vmatprep.subr.bf16.mxu1 %v7098_v51  ;;  %v7159_v46 = vld [vmem:[%s9882_s1 + $0x1320] ss:$40 sps:$4 sm:$0xff]   ;;  %v7170_v51 = vld [vmem:[%s9882_s1 + $0x97c] ss:$40 sps:$4 sm:$0xff]  }
 0x18e   : > { %4583 = vmatprep.subr.bf16.mxu0 %v7095_v50  ;;  %v7167_v50 = vld [vmem:[%s9882_s1 + $0x1374] ss:$40 sps:$4 sm:$0xff]  }
 0x190   : > { %4670 = vmatpush1.bf16.msra.mxu1 %v7096_v53  ;;  %v7168_v53 = vld [vmem:[%s9882_s1 + $0x978] ss:$40 sps:$4 sm:$0xff]  }
 0x191   : > { %4584 = vmatpush1.bf16.msra.mxu0 %v7093_v52  ;;  %4671 = vmatprep.subr.bf16.mxu1 %v7104_v57  ;;  %v7165_v52 = vld [vmem:[%s9882_s1 + $0x1370] ss:$40 sps:$4 sm:$0xff]   ;;  %v7176_v57 = vld [vmem:[%s9882_s1 + $0x9cc] ss:$40 sps:$4 sm:$0xff]  }
 0x192   : > { %4585 = vmatprep.subr.bf16.mxu0 %v7101_v55  ;;  %v7173_v55 = vld [vmem:[%s9882_s1 + $0x13c4] ss:$40 sps:$4 sm:$0xff]  }
 0x194   : > { %4672 = vmatpush1.bf16.msra.mxu1 %v7102_v59  ;;  %v7174_v59 = vld [vmem:[%s9882_s1 + $0x9c8] ss:$40 sps:$4 sm:$0xff]  }
 0x195   : > { %4586 = vmatpush1.bf16.msra.mxu0 %v7099_v58  ;;  %4673 = vmatprep.subr.bf16.mxu1 %v7110_v61  ;;  %v7171_v58 = vld [vmem:[%s9882_s1 + $0x13c0] ss:$40 sps:$4 sm:$0xff]   ;;  %v7182_v61 = vld [vmem:[%s9882_s1 + $0x24] ss:$40 sps:$4 sm:$0xff]  }
 0x196   : > { %4587 = vmatprep.subr.bf16.mxu0 %v7107_v60  ;;  %v7179_v60 = vld [vmem:[%s9882_s1 + $0xa1c] ss:$40 sps:$4 sm:$0xff]  }
 0x198   : > { %4674 = vmatpush1.bf16.msra.mxu1 %v7108_v63  ;;  %v7180_v63 = vld [vmem:[%s9882_s1 + $0x20] ss:$40 sps:$4 sm:$0xff]  }
 0x199   : > { %4588 = vmatpush1.bf16.msra.mxu0 %v7105_v62  ;;  %4675 = vmatprep.subr.bf16.mxu1 %v7116_v1  ;;  %v7177_v62 = vld [vmem:[%s9882_s1 + $0xa18] ss:$40 sps:$4 sm:$0xff]   ;;  %v7188_v1 = vld [vmem:[%s9882_s1 + $0x74] ss:$40 sps:$4 sm:$0xff]  }
 0x19a   : > { %4589 = vmatprep.subr.bf16.mxu0 %v7113_v0  ;;  %v7185_v0 = vld [vmem:[%s9882_s1 + $0xa6c] ss:$40 sps:$4 sm:$0xff]  }
 0x19b   : > { %v4269_v7 = vpop.f32.mrb[0].mxu0 }
 0x19c   : > { %v8944_v10 = vadd.f32 %v4269_v7, %v8543_v40  ;;  %v4271_v11 = vpop.f32.mrb[1].mxu0  ;;  %4676 = vmatpush1.bf16.msra.mxu1 %v7114_v3  ;;  %v7128_v40 = vld [vmem:[%s9882_s1 + $0x74c] ss:$40 sps:$4 sm:$0xff]   ;;  %v7186_v3 = vld [vmem:[%s9882_s1 + $0x70] ss:$40 sps:$4 sm:$0xff]  }
 0x19d   : > { %v8947_v12 = vadd.f32 %v4271_v11, %v8545_v41  ;;  %v4273_v13 = vpop.f32.mrb[2].mxu0  ;;  %4590 = vmatpush1.bf16.msra.mxu0 %v7111_v2  ;;  %4677 = vmatprep.subr.bf16.mxu1 %v7122_v6  ;;  %v7183_v2 = vld [vmem:[%s9882_s1 + $0xa68] ss:$40 sps:$4 sm:$0xff]   ;;  %v7194_v6 = vld [vmem:[%s9882_s1 + $0xc4] ss:$40 sps:$4 sm:$0xff]  }
 0x19e   : > { %v8950_v14 = vadd.f32 %v4273_v13, %v8547_v42  ;;  %v4275_v15 = vpop.f32.mrb[3].mxu0  ;;  %4591 = vmatprep.subr.bf16.mxu0 %v7119_v4  ;;  %v7123_v42 = vld [vmem:[%s9882_s1 + $0x1140] ss:$40 sps:$4 sm:$0xff]   ;;  %v7191_v4 = vld [vmem:[%s9882_s1 + $0xabc] ss:$40 sps:$4 sm:$0xff]  }
 0x19f   : > { %v8959_v41 = vadd.f32 %v4275_v15, %v8555_v45  ;;  %v7134_v45 = vld [vmem:[%s9882_s1 + $0x79c] ss:$40 sps:$4 sm:$0xff]   ;;  %v7189_v7 = vld [vmem:[%s9882_s1 + $0xab8] ss:$40 sps:$4 sm:$0xff]   ;;  %v7195_v11 = vld [vmem:[%s9882_s1 + $0xb08] ss:$40 sps:$4 sm:$0xff]  }
 0x1a0   : > { %4678 = vmatpush1.bf16.msra.mxu1 %v7120_v9  ;;  %v7197_v9 = vld [vmem:[%s9882_s1 + $0xb0c] ss:$40 sps:$4 sm:$0xff]   ;;  %v7198_v13 = vld [vmem:[%s9882_s1 + $0x110] ss:$40 sps:$4 sm:$0xff]   ;;  %v7203_v15 = vld [vmem:[%s9882_s1 + $0xb5c] ss:$40 sps:$4 sm:$0xff]  }
 0x1a1   : > { %4592 = vmatpush1.bf16.msra.mxu0 %v7117_v8  ;;  %4679 = vmatprep.subr.bf16.mxu1 %v7128_v40  ;;  %v7192_v8 = vld [vmem:[%s9882_s1 + $0xc0] ss:$40 sps:$4 sm:$0xff]  }
 0x1a2   : > { %4593 = vmatprep.subr.bf16.mxu0 %v7125_v17  ;;  %v7206_v17 = vld [vmem:[%s9882_s1 + $0x164] ss:$40 sps:$4 sm:$0xff]   ;;  %v7201_v40 = vld [vmem:[%s9882_s1 + $0xb58] ss:$40 sps:$4 sm:$0xff]  }
 0x1a4   : > { %4680 = vmatpush1.bf16.msra.mxu1 %v7126_v18  ;;  %v7209_v18 = vld [vmem:[%s9882_s1 + $0xbac] ss:$40 sps:$4 sm:$0xff]  }
 0x1a5   : > { %4594 = vmatpush1.bf16.msra.mxu0 %v7123_v42  ;;  %4681 = vmatprep.subr.bf16.mxu1 %v7134_v45  ;;  %v7204_v42 = vld [vmem:[%s9882_s1 + $0x160] ss:$40 sps:$4 sm:$0xff]  }
 0x1a6   : > { %4595 = vmatprep.subr.bf16.mxu0 %v7131_v19  ;;  %v7212_v19 = vld [vmem:[%s9882_s1 + $0x1b4] ss:$40 sps:$4 sm:$0xff]   ;;  %v7207_v45 = vld [vmem:[%s9882_s1 + $0xba8] ss:$40 sps:$4 sm:$0xff]  }
 0x1a8   : > { %4682 = vmatpush1.bf16.msra.mxu1 %v7132_v21  ;;  %v7215_v21 = vld [vmem:[%s9882_s1 + $0xbfc] ss:$40 sps:$4 sm:$0xff]  }
 0x1a9   : > { %4596 = vmatpush1.bf16.msra.mxu0 %v7129_v20  ;;  %4683 = vmatprep.subr.bf16.mxu1 %v7140_v23  ;;  %v7210_v20 = vld [vmem:[%s9882_s1 + $0x1b0] ss:$40 sps:$4 sm:$0xff]  }
 0x1aa   : > { %4597 = vmatprep.subr.bf16.mxu0 %v7137_v22  ;;  %v7218_v22 = vld [vmem:[%s9882_s1 + $0x204] ss:$40 sps:$4 sm:$0xff]   ;;  %v7213_v23 = vld [vmem:[%s9882_s1 + $0xbf8] ss:$40 sps:$4 sm:$0xff]  }
 0x1ac   : > { %4684 = vmatpush1.bf16.msra.mxu1 %v7138_v25  ;;  %v7221_v25 = vld [vmem:[%s9882_s1 + $0xc4c] ss:$40 sps:$4 sm:$0xff]  }
 0x1ad   : > { %4598 = vmatpush1.bf16.msra.mxu0 %v7135_v24  ;;  %4685 = vmatprep.subr.bf16.mxu1 %v7146_v27  ;;  %v7216_v24 = vld [vmem:[%s9882_s1 + $0x200] ss:$40 sps:$4 sm:$0xff]  }
 0x1ae   : > { %4599 = vmatprep.subr.bf16.mxu0 %v7143_v26  ;;  %v7224_v26 = vld [vmem:[%s9882_s1 + $0x254] ss:$40 sps:$4 sm:$0xff]   ;;  %v7219_v27 = vld [vmem:[%s9882_s1 + $0xc48] ss:$40 sps:$4 sm:$0xff]  }
 0x1b0   : > { %4686 = vmatpush1.bf16.msra.mxu1 %v7144_v29  ;;  %v7227_v29 = vld [vmem:[%s9882_s1 + $0xc9c] ss:$40 sps:$4 sm:$0xff]  }
 0x1b1   : > { %4600 = vmatpush1.bf16.msra.mxu0 %v7141_v28  ;;  %4687 = vmatprep.subr.bf16.mxu1 %v7152_v31  ;;  %v7222_v28 = vld [vmem:[%s9882_s1 + $0x250] ss:$40 sps:$4 sm:$0xff]  }
 0x1b2   : > { %4601 = vmatprep.subr.bf16.mxu0 %v7149_v30  ;;  %v7230_v30 = vld [vmem:[%s9882_s1 + $0x2a4] ss:$40 sps:$4 sm:$0xff]   ;;  %v7225_v31 = vld [vmem:[%s9882_s1 + $0xc98] ss:$40 sps:$4 sm:$0xff]  }
 0x1b4   : > { %4688 = vmatpush1.bf16.msra.mxu1 %v7150_v34  ;;  %v7233_v34 = vld [vmem:[%s9882_s1 + $0xcec] ss:$40 sps:$4 sm:$0xff]  }
 0x1b5   : > { %4602 = vmatpush1.bf16.msra.mxu0 %v7147_v32  ;;  %4689 = vmatprep.subr.bf16.mxu1 %v7158_v37  ;;  %v7228_v32 = vld [vmem:[%s9882_s1 + $0x2a0] ss:$40 sps:$4 sm:$0xff]  }
 0x1b6   : > { %4603 = vmatprep.subr.bf16.mxu0 %v7155_v35  ;;  %v7236_v35 = vld [vmem:[%s9882_s1 + $0x2f4] ss:$40 sps:$4 sm:$0xff]   ;;  %v7231_v37 = vld [vmem:[%s9882_s1 + $0xce8] ss:$40 sps:$4 sm:$0xff]  }
 0x1b8   : > { %4690 = vmatpush1.bf16.msra.mxu1 %v7156_v39  ;;  %v7239_v39 = vld [vmem:[%s9882_s1 + $0xd3c] ss:$40 sps:$4 sm:$0xff]  }
 0x1b9   : > { %4604 = vmatpush1.bf16.msra.mxu0 %v7153_v38  ;;  %4691 = vmatprep.subr.bf16.mxu1 %v7164_v44  ;;  %v7234_v38 = vld [vmem:[%s9882_s1 + $0x2f0] ss:$40 sps:$4 sm:$0xff]  }
 0x1ba   : > { %4605 = vmatprep.subr.bf16.mxu0 %v7161_v43  ;;  %v7242_v43 = vld [vmem:[%s9882_s1 + $0x344] ss:$40 sps:$4 sm:$0xff]   ;;  %v7237_v44 = vld [vmem:[%s9882_s1 + $0xd38] ss:$40 sps:$4 sm:$0xff]  }
 0x1bc   : > { %4692 = vmatpush1.bf16.msra.mxu1 %v7162_v47  ;;  %v7245_v47 = vld [vmem:[%s9882_s1 + $0xd8c] ss:$40 sps:$4 sm:$0xff]  }
 0x1bd   : > { %4606 = vmatpush1.bf16.msra.mxu0 %v7159_v46  ;;  %4693 = vmatprep.subr.bf16.mxu1 %v7170_v51  ;;  %v7240_v46 = vld [vmem:[%s9882_s1 + $0x340] ss:$40 sps:$4 sm:$0xff]  }
 0x1be   : > { %4607 = vmatprep.subr.bf16.mxu0 %v7167_v50  ;;  %v7248_v50 = vld [vmem:[%s9882_s1 + $0x394] ss:$40 sps:$4 sm:$0xff]   ;;  %v7243_v51 = vld [vmem:[%s9882_s1 + $0xd88] ss:$40 sps:$4 sm:$0xff]  }
 0x1c0   : > { %4694 = vmatpush1.bf16.msra.mxu1 %v7168_v53  ;;  %v7251_v53 = vld [vmem:[%s9882_s1 + $0xddc] ss:$40 sps:$4 sm:$0xff]  }
 0x1c1   : > { %4608 = vmatpush1.bf16.msra.mxu0 %v7165_v52  ;;  %4695 = vmatprep.subr.bf16.mxu1 %v7176_v57  ;;  %v7246_v52 = vld [vmem:[%s9882_s1 + $0x390] ss:$40 sps:$4 sm:$0xff]  }
 0x1c2   : > { %4609 = vmatprep.subr.bf16.mxu0 %v7173_v55  ;;  %v7254_v55 = vld [vmem:[%s9882_s1 + $0x3e4] ss:$40 sps:$4 sm:$0xff]   ;;  %v7249_v57 = vld [vmem:[%s9882_s1 + $0xdd8] ss:$40 sps:$4 sm:$0xff]  }
 0x1c4   : > { %4696 = vmatpush1.bf16.msra.mxu1 %v7174_v59  ;;  %v7257_v59 = vld [vmem:[%s9882_s1 + $0xe2c] ss:$40 sps:$4 sm:$0xff]  }
 0x1c5   : > { %4610 = vmatpush1.bf16.msra.mxu0 %v7171_v58  ;;  %4708 = vmatprep.subr.bf16.mxu1 %v7179_v60  ;;  %v7252_v58 = vld [vmem:[%s9882_s1 + $0x3e0] ss:$40 sps:$4 sm:$0xff]   ;;  %v7260_v60 = vld [vmem:[%s9882_s1 + $0x434] ss:$40 sps:$4 sm:$0xff]  }
 0x1c6   : > { %4794 = vmatprep.subr.bf16.mxu0 %v7182_v61  ;;  %v7255_v61 = vld [vmem:[%s9882_s1 + $0xe28] ss:$40 sps:$4 sm:$0xff]  }
 0x1c7   : > { %4698 = vmatmul.mubr.bf16.vlgmr.msra.gmra.mrb[8].mxu1 %v7858_v36 }
 0x1c8   : > { %4612 = vmatmul.mubr.bf16.vlgmr.msra.gmra.mrb[4].mxu0 %v7891_v54  ;;  %4709 = vmatpush1.bf16.msra.mxu1 %v7177_v62  ;;  %v7258_v62 = vld [vmem:[%s9882_s1 + $0x430] ss:$40 sps:$4 sm:$0xff]  }
 0x1c9   : > { %4795 = vmatpush1.bf16.msra.mxu0 %v7180_v63  ;;  %4710 = vmatprep.subr.bf16.mxu1 %v7185_v0  ;;  %v7263_v63 = vld [vmem:[%s9882_s1 + $0xe7c] ss:$40 sps:$4 sm:$0xff]  }
 0x1ca   : > { %4796 = vmatprep.subr.bf16.mxu0 %v7188_v1  ;;  %4740 = vmatprep.mubr.bf16.mxu1 %v7877_v48  ;;  %v7266_v0 = vld [vmem:[%s9882_s1 + $0x484] ss:$40 sps:$4 sm:$0xff]   ;;  %v7261_v1 = vld [vmem:[%s9882_s1 + $0xe78] ss:$40 sps:$4 sm:$0xff]  }
 0x1cb   : > { %4826 = vmatprep.mubr.bf16.mxu0 %v7767_v56  ;;  %v7200_v56 = vld [vmem:[%s9882_s1 + $0x114] ss:$40 sps:$4 sm:$0xff]  }
 0x1cc   : > { %4711 = vmatpush1.bf16.msra.mxu1 %v7183_v2  ;;  %v7264_v2 = vld [vmem:[%s9882_s1 + $0x480] ss:$40 sps:$4 sm:$0xff]  }
 0x1cd   : > { %4797 = vmatpush1.bf16.msra.mxu0 %v7186_v3  ;;  %4712 = vmatprep.subr.bf16.mxu1 %v7191_v4  ;;  %v7269_v3 = vld [vmem:[%s9882_s1 + $0xecc] ss:$40 sps:$4 sm:$0xff]  }
 0x1ce   : > { %4798 = vmatprep.subr.bf16.mxu0 %v7194_v6  ;;  %v7272_v4 = vld [vmem:[%s9882_s1 + $0x4d4] ss:$40 sps:$4 sm:$0xff]   ;;  %v7267_v6 = vld [vmem:[%s9882_s1 + $0xec8] ss:$40 sps:$4 sm:$0xff]  }
 0x1d0   : > { %4713 = vmatpush1.bf16.msra.mxu1 %v7189_v7  ;;  %v7270_v7 = vld [vmem:[%s9882_s1 + $0x4d0] ss:$40 sps:$4 sm:$0xff]  }
 0x1d1   : > { %4799 = vmatpush1.bf16.msra.mxu0 %v7192_v8  ;;  %4714 = vmatprep.subr.bf16.mxu1 %v7197_v9  ;;  %v7275_v8 = vld [vmem:[%s9882_s1 + $0xf1c] ss:$40 sps:$4 sm:$0xff]  }
 0x1d2   : > { %4800 = vmatprep.subr.bf16.mxu0 %v7200_v56  ;;  %v7278_v9 = vld [vmem:[%s9882_s1 + $0x524] ss:$40 sps:$4 sm:$0xff]   ;;  %v7273_v56 = vld [vmem:[%s9882_s1 + $0xf18] ss:$40 sps:$4 sm:$0xff]  }
 0x1d4   : > { %4715 = vmatpush1.bf16.msra.mxu1 %v7195_v11  ;;  %v7276_v11 = vld [vmem:[%s9882_s1 + $0x520] ss:$40 sps:$4 sm:$0xff]  }
 0x1d5   : > { %4801 = vmatpush1.bf16.msra.mxu0 %v7198_v13  ;;  %4716 = vmatprep.subr.bf16.mxu1 %v7203_v15  ;;  %v7281_v13 = vld [vmem:[%s9882_s1 + $0xf6c] ss:$40 sps:$4 sm:$0xff]  }
 0x1d6   : > { %4802 = vmatprep.subr.bf16.mxu0 %v7206_v17  ;;  %v7284_v15 = vld [vmem:[%s9882_s1 + $0x574] ss:$40 sps:$4 sm:$0xff]   ;;  %v7279_v17 = vld [vmem:[%s9882_s1 + $0xf68] ss:$40 sps:$4 sm:$0xff]  }
 0x1d8   : > { %4717 = vmatpush1.bf16.msra.mxu1 %v7201_v40  ;;  %v7282_v40 = vld [vmem:[%s9882_s1 + $0x570] ss:$40 sps:$4 sm:$0xff]  }
 0x1d9   : > { %4803 = vmatpush1.bf16.msra.mxu0 %v7204_v42  ;;  %4718 = vmatprep.subr.bf16.mxu1 %v7209_v18  ;;  %v7287_v42 = vld [vmem:[%s9882_s1 + $0xfbc] ss:$40 sps:$4 sm:$0xff]   ;;  %v7285_v18 = vld [vmem:[%s9882_s1 + $0xfb8] ss:$40 sps:$4 sm:$0xff]  }
 0x1da   : > { %4804 = vmatprep.subr.bf16.mxu0 %v7212_v19  ;;  %v7288_v19 = vld [vmem:[%s9882_s1 + $0x5c0] ss:$40 sps:$4 sm:$0xff]  }
 0x1dc   : > { %4719 = vmatpush1.bf16.msra.mxu1 %v7207_v45  ;;  %v7293_v45 = vld [vmem:[%s9882_s1 + $0x100c] ss:$40 sps:$4 sm:$0xff]  }
 0x1dd   : > { %4805 = vmatpush1.bf16.msra.mxu0 %v7210_v20  ;;  %4720 = vmatprep.subr.bf16.mxu1 %v7215_v21  ;;  %v7291_v20 = vld [vmem:[%s9882_s1 + $0x1008] ss:$40 sps:$4 sm:$0xff]  }
 0x1de   : > { %4806 = vmatprep.subr.bf16.mxu0 %v7218_v22  ;;  %v7294_v21 = vld [vmem:[%s9882_s1 + $0x610] ss:$40 sps:$4 sm:$0xff]   ;;  %v7299_v22 = vld [vmem:[%s9882_s1 + $0x105c] ss:$40 sps:$4 sm:$0xff]  }
 0x1e0   : > { %4721 = vmatpush1.bf16.msra.mxu1 %v7213_v23  ;;  %v7302_v23 = vld [vmem:[%s9882_s1 + $0x664] ss:$40 sps:$4 sm:$0xff]  }
 0x1e1   : > { %4807 = vmatpush1.bf16.msra.mxu0 %v7216_v24  ;;  %4722 = vmatprep.subr.bf16.mxu1 %v7221_v25  ;;  %v7297_v24 = vld [vmem:[%s9882_s1 + $0x1058] ss:$40 sps:$4 sm:$0xff]  }
 0x1e2   : > { %4808 = vmatprep.subr.bf16.mxu0 %v7224_v26  ;;  %v7300_v25 = vld [vmem:[%s9882_s1 + $0x660] ss:$40 sps:$4 sm:$0xff]   ;;  %v7305_v26 = vld [vmem:[%s9882_s1 + $0x10ac] ss:$40 sps:$4 sm:$0xff]  }
 0x1e4   : > { %4723 = vmatpush1.bf16.msra.mxu1 %v7219_v27  ;;  %v7308_v27 = vld [vmem:[%s9882_s1 + $0x6b4] ss:$40 sps:$4 sm:$0xff]  }
 0x1e5   : > { %4809 = vmatpush1.bf16.msra.mxu0 %v7222_v28  ;;  %4724 = vmatprep.subr.bf16.mxu1 %v7227_v29  ;;  %v7303_v28 = vld [vmem:[%s9882_s1 + $0x10a8] ss:$40 sps:$4 sm:$0xff]  }
 0x1e6   : > { %4810 = vmatprep.subr.bf16.mxu0 %v7230_v30  ;;  %v7306_v29 = vld [vmem:[%s9882_s1 + $0x6b0] ss:$40 sps:$4 sm:$0xff]   ;;  %v7311_v30 = vld [vmem:[%s9882_s1 + $0x10fc] ss:$40 sps:$4 sm:$0xff]  }
 0x1e8   : > { %4725 = vmatpush1.bf16.msra.mxu1 %v7225_v31  ;;  %v7314_v31 = vld [vmem:[%s9882_s1 + $0x704] ss:$40 sps:$4 sm:$0xff]  }
 0x1e9   : > { %4811 = vmatpush1.bf16.msra.mxu0 %v7228_v32  ;;  %4726 = vmatprep.subr.bf16.mxu1 %v7233_v34 }
 0x1ea   : > { %4812 = vmatprep.subr.bf16.mxu0 %v7236_v35 }
 0x1ec   : > { %4727 = vmatpush1.bf16.msra.mxu1 %v7231_v37  ;;  %v7309_v37 = vld [vmem:[%s9882_s1 + $0x10f8] ss:$40 sps:$4 sm:$0xff]  }
 0x1ed   : > { %4813 = vmatpush1.bf16.msra.mxu0 %v7234_v38  ;;  %4728 = vmatprep.subr.bf16.mxu1 %v7239_v39  ;;  %v7312_v38 = vld [vmem:[%s9882_s1 + $0x700] ss:$40 sps:$4 sm:$0xff]  }
 0x1ee   : > { %4814 = vmatprep.subr.bf16.mxu0 %v7242_v43  ;;  %v7317_v43 = vld [vmem:[%s9882_s1 + $0x114c] ss:$40 sps:$4 sm:$0xff]  }
 0x1f0   : > { %4729 = vmatpush1.bf16.msra.mxu1 %v7237_v44  ;;  %v7320_v44 = vld [vmem:[%s9882_s1 + $0x754] ss:$40 sps:$4 sm:$0xff]  }
 0x1f1   : > { %4815 = vmatpush1.bf16.msra.mxu0 %v7240_v46  ;;  %4730 = vmatprep.subr.bf16.mxu1 %v7245_v47  ;;  %v7315_v46 = vld [vmem:[%s9882_s1 + $0x1148] ss:$40 sps:$4 sm:$0xff]  }
 0x1f2   : > { %4816 = vmatprep.subr.bf16.mxu0 %v7248_v50  ;;  %v7318_v47 = vld [vmem:[%s9882_s1 + $0x750] ss:$40 sps:$4 sm:$0xff]   ;;  %v7323_v50 = vld [vmem:[%s9882_s1 + $0x119c] ss:$40 sps:$4 sm:$0xff]  }
 0x1f4   : > { %4731 = vmatpush1.bf16.msra.mxu1 %v7243_v51  ;;  %v7326_v51 = vld [vmem:[%s9882_s1 + $0x7a4] ss:$40 sps:$4 sm:$0xff]  }
 0x1f5   : > { %4817 = vmatpush1.bf16.msra.mxu0 %v7246_v52  ;;  %4732 = vmatprep.subr.bf16.mxu1 %v7251_v53  ;;  %v7321_v52 = vld [vmem:[%s9882_s1 + $0x1198] ss:$40 sps:$4 sm:$0xff]  }
 0x1f6   : > { %4818 = vmatprep.subr.bf16.mxu0 %v7254_v55  ;;  %v7324_v53 = vld [vmem:[%s9882_s1 + $0x7a0] ss:$40 sps:$4 sm:$0xff]   ;;  %v7329_v55 = vld [vmem:[%s9882_s1 + $0x11ec] ss:$40 sps:$4 sm:$0xff]  }
 0x1f8   : > { %4733 = vmatpush1.bf16.msra.mxu1 %v7249_v57  ;;  %v7332_v57 = vld [vmem:[%s9882_s1 + $0x7f4] ss:$40 sps:$4 sm:$0xff]  }
 0x1f9   : > { %4819 = vmatpush1.bf16.msra.mxu0 %v7252_v58  ;;  %4734 = vmatprep.subr.bf16.mxu1 %v7257_v59  ;;  %v7327_v58 = vld [vmem:[%s9882_s1 + $0x11e8] ss:$40 sps:$4 sm:$0xff]  }
 0x1fa   : > { %4820 = vmatprep.subr.bf16.mxu0 %v7260_v60  ;;  %v7330_v59 = vld [vmem:[%s9882_s1 + $0x7f0] ss:$40 sps:$4 sm:$0xff]   ;;  %v7335_v60 = vld [vmem:[%s9882_s1 + $0x123c] ss:$40 sps:$4 sm:$0xff]  }
 0x1fc   : > { %4735 = vmatpush1.bf16.msra.mxu1 %v7255_v61  ;;  %v7338_v61 = vld [vmem:[%s9882_s1 + $0x844] ss:$40 sps:$4 sm:$0xff]  }
 0x1fd   : > { %4821 = vmatpush1.bf16.msra.mxu0 %v7258_v62  ;;  %4736 = vmatprep.subr.bf16.mxu1 %v7263_v63  ;;  %v7333_v62 = vld [vmem:[%s9882_s1 + $0x1238] ss:$40 sps:$4 sm:$0xff]  }
 0x1fe   : > { %4822 = vmatprep.subr.bf16.mxu0 %v7266_v0  ;;  %v7336_v63 = vld [vmem:[%s9882_s1 + $0x840] ss:$40 sps:$4 sm:$0xff]   ;;  %v7341_v0 = vld [vmem:[%s9882_s1 + $0x128c] ss:$40 sps:$4 sm:$0xff]  }
 0x200   : > { %4737 = vmatpush1.bf16.msra.mxu1 %v7261_v1  ;;  %v7344_v1 = vld [vmem:[%s9882_s1 + $0x894] ss:$40 sps:$4 sm:$0xff]  }
 0x201   : > { %4823 = vmatpush1.bf16.msra.mxu0 %v7264_v2  ;;  %4738 = vmatprep.subr.bf16.mxu1 %v7269_v3  ;;  %v7339_v2 = vld [vmem:[%s9882_s1 + $0x1288] ss:$40 sps:$4 sm:$0xff]  }
 0x202   : > { %4824 = vmatprep.subr.bf16.mxu0 %v7272_v4  ;;  %v7342_v3 = vld [vmem:[%s9882_s1 + $0x890] ss:$40 sps:$4 sm:$0xff]   ;;  %v7347_v4 = vld [vmem:[%s9882_s1 + $0x12dc] ss:$40 sps:$4 sm:$0xff]  }
 0x204   : > { %4739 = vmatpush1.bf16.msra.mxu1 %v7267_v6  ;;  %v7350_v6 = vld [vmem:[%s9882_s1 + $0x8e4] ss:$40 sps:$4 sm:$0xff]  }
 0x205   : > { %4825 = vmatpush1.bf16.msra.mxu0 %v7270_v7  ;;  %4751 = vmatprep.subr.bf16.mxu1 %v7275_v8  ;;  %v7345_v7 = vld [vmem:[%s9882_s1 + $0x12d8] ss:$40 sps:$4 sm:$0xff]  }
 0x206   : > { %4837 = vmatprep.subr.bf16.mxu0 %v7278_v9  ;;  %v7348_v8 = vld [vmem:[%s9882_s1 + $0x8e0] ss:$40 sps:$4 sm:$0xff]   ;;  %v7353_v9 = vld [vmem:[%s9882_s1 + $0x132c] ss:$40 sps:$4 sm:$0xff]  }
 0x207   : > { %4741 = vmatmul.mubr.bf16.vlgmr.msra.gmra.mrb[8].mxu1 %v7818_v16 }
 0x208   : > { %4827 = vmatmul.mubr.bf16.vlgmr.msra.gmra.mrb[8].mxu0 %v7852_v33  ;;  %4752 = vmatpush1.bf16.msra.mxu1 %v7273_v56  ;;  %v7290_v33 = vld [vmem:[%s9882_s1 + $0x5c4] ss:$40 sps:$4 sm:$0xff]   ;;  %v7356_v56 = vld [vmem:[%s9882_s1 + $0x934] ss:$40 sps:$4 sm:$0xff]  }
 0x209   : > { %4838 = vmatpush1.bf16.msra.mxu0 %v7276_v11  ;;  %4753 = vmatprep.subr.bf16.mxu1 %v7281_v13  ;;  %v7351_v11 = vld [vmem:[%s9882_s1 + $0x1328] ss:$40 sps:$4 sm:$0xff]  }
 0x20a   : > { %4839 = vmatprep.subr.bf16.mxu0 %v7284_v15  ;;  %4783 = vmatprep.mubr.bf16.mxu1 %v7879_v49  ;;  %v7354_v13 = vld [vmem:[%s9882_s1 + $0x930] ss:$40 sps:$4 sm:$0xff]   ;;  %v7359_v15 = vld [vmem:[%s9882_s1 + $0x137c] ss:$40 sps:$4 sm:$0xff]  }
 0x20b   : > { %4869 = vmatprep.mubr.bf16.mxu0 %v7795_v5  ;;  %v7296_v5 = vld [vmem:[%s9882_s1 + $0x614] ss:$40 sps:$4 sm:$0xff]  }
 0x20c   : > { %4754 = vmatpush1.bf16.msra.mxu1 %v7279_v17  ;;  %v7362_v17 = vld [vmem:[%s9882_s1 + $0x984] ss:$40 sps:$4 sm:$0xff]  }
 0x20d   : > { %4840 = vmatpush1.bf16.msra.mxu0 %v7282_v40  ;;  %4755 = vmatprep.subr.bf16.mxu1 %v7287_v42  ;;  %v7357_v40 = vld [vmem:[%s9882_s1 + $0x1378] ss:$40 sps:$4 sm:$0xff]  }
 0x20e   : > { %4841 = vmatprep.subr.bf16.mxu0 %v7290_v33  ;;  %v7360_v42 = vld [vmem:[%s9882_s1 + $0x980] ss:$40 sps:$4 sm:$0xff]   ;;  %v7365_v33 = vld [vmem:[%s9882_s1 + $0x13cc] ss:$40 sps:$4 sm:$0xff]  }
 0x210   : > { %4756 = vmatpush1.bf16.msra.mxu1 %v7285_v18  ;;  %v7368_v18 = vld [vmem:[%s9882_s1 + $0x9d4] ss:$40 sps:$4 sm:$0xff]  }
 0x211   : > { %4842 = vmatpush1.bf16.msra.mxu0 %v7288_v19  ;;  %4757 = vmatprep.subr.bf16.mxu1 %v7293_v45  ;;  %v7363_v19 = vld [vmem:[%s9882_s1 + $0x13c8] ss:$40 sps:$4 sm:$0xff]  }
 0x212   : > { %4843 = vmatprep.subr.bf16.mxu0 %v7296_v5  ;;  %v7366_v45 = vld [vmem:[%s9882_s1 + $0x9d0] ss:$40 sps:$4 sm:$0xff]   ;;  %v7371_v5 = vld [vmem:[%s9882_s1 + $0xa24] ss:$40 sps:$4 sm:$0xff]  }
 0x214   : > { %4758 = vmatpush1.bf16.msra.mxu1 %v7291_v20  ;;  %v7369_v20 = vld [vmem:[%s9882_s1 + $0xa20] ss:$40 sps:$4 sm:$0xff]  }
 0x215   : > { %4844 = vmatpush1.bf16.msra.mxu0 %v7294_v21  ;;  %4759 = vmatprep.subr.bf16.mxu1 %v7299_v22  ;;  %v7374_v21 = vld [vmem:[%s9882_s1 + $0xa74] ss:$40 sps:$4 sm:$0xff]   ;;  %v7465_v22 = vld [vmem:[%s9883_s2 + $0x40] sm:$0xff]  }
 0x216   : > { %4845 = vmatprep.subr.bf16.mxu0 %v7302_v23  ;;  %v7466_v23 = vld [vmem:[%s9883_s2] sm:$0xff]  }
 0x218   : > { %4760 = vmatpush1.bf16.msra.mxu1 %v7297_v24  ;;  %v7467_v24 = vld [vmem:[%s9883_s2 + $0x48] sm:$0xff]  }
 0x219   : > { %4846 = vmatpush1.bf16.msra.mxu0 %v7300_v25  ;;  %4761 = vmatprep.subr.bf16.mxu1 %v7305_v26  ;;  %v7372_v25 = vld [vmem:[%s9882_s1 + $0xa70] ss:$40 sps:$4 sm:$0xff]   ;;  %v7468_v26 = vld [vmem:[%s9883_s2 + $0x8] sm:$0xff]  }
 0x21a   : > { %4847 = vmatprep.subr.bf16.mxu0 %v7308_v27  ;;  %v9341_v32 = vpop.f32.mrb[4].mxu1  ;;  %v7375_v27 = vld [vmem:[%s9882_s1 + $0xac0] ss:$40 sps:$4 sm:$0xff]  }
 0x21b   : > { %v9343_v34 = vpop.f32.mrb[5].mxu1 }
 0x21c   : > { %v9345_v35 = vpop.f32.mrb[6].mxu1  ;;  %4762 = vmatpush1.bf16.msra.mxu1 %v7303_v28  ;;  %v7378_v28 = vld [vmem:[%s9882_s1 + $0xb10] ss:$40 sps:$4 sm:$0xff]  }
 0x21d   : > { %4848 = vmatpush1.bf16.msra.mxu0 %v7306_v29  ;;  %v9353_v39 = vpop.f32.mrb[7].mxu1  ;;  %4763 = vmatprep.subr.bf16.mxu1 %v7311_v30  ;;  %v7383_v29 = vld [vmem:[%s9882_s1 + $0xb64] ss:$40 sps:$4 sm:$0xff]   ;;  %v7381_v30 = vld [vmem:[%s9882_s1 + $0xb60] ss:$40 sps:$4 sm:$0xff]  }
 0x21e   : > { %4849 = vmatprep.subr.bf16.mxu0 %v7314_v31  ;;  %v7386_v31 = vld [vmem:[%s9882_s1 + $0xbb4] ss:$40 sps:$4 sm:$0xff]  }
 0x220   : > { %4764 = vmatpush1.bf16.msra.mxu1 %v7309_v37  ;;  %v7384_v37 = vld [vmem:[%s9882_s1 + $0xbb0] ss:$40 sps:$4 sm:$0xff]  }
 0x221   : > { %4850 = vmatpush1.bf16.msra.mxu0 %v7312_v38  ;;  %4765 = vmatprep.subr.bf16.mxu1 %v7317_v43  ;;  %v7389_v38 = vld [vmem:[%s9882_s1 + $0xc04] ss:$40 sps:$4 sm:$0xff]   ;;  %v7387_v43 = vld [vmem:[%s9882_s1 + $0xc00] ss:$40 sps:$4 sm:$0xff]  }
 0x222   : > { %4851 = vmatprep.subr.bf16.mxu0 %v7320_v44  ;;  %v7392_v44 = vld [vmem:[%s9882_s1 + $0xc54] ss:$40 sps:$4 sm:$0xff]  }
 0x224   : > { %4766 = vmatpush1.bf16.msra.mxu1 %v7315_v46  ;;  %v7390_v46 = vld [vmem:[%s9882_s1 + $0xc50] ss:$40 sps:$4 sm:$0xff]  }
 0x225   : > { %4852 = vmatpush1.bf16.msra.mxu0 %v7318_v47  ;;  %4767 = vmatprep.subr.bf16.mxu1 %v7323_v50  ;;  %v7395_v47 = vld [vmem:[%s9882_s1 + $0xca4] ss:$40 sps:$4 sm:$0xff]   ;;  %v7393_v50 = vld [vmem:[%s9882_s1 + $0xca0] ss:$40 sps:$4 sm:$0xff]  }
 0x226   : > { %4853 = vmatprep.subr.bf16.mxu0 %v7326_v51  ;;  %v7398_v51 = vld [vmem:[%s9882_s1 + $0xcf4] ss:$40 sps:$4 sm:$0xff]  }
 0x228   : > { %4768 = vmatpush1.bf16.msra.mxu1 %v7321_v52  ;;  %v7396_v52 = vld [vmem:[%s9882_s1 + $0xcf0] ss:$40 sps:$4 sm:$0xff]  }
 0x229   : > { %4854 = vmatpush1.bf16.msra.mxu0 %v7324_v53  ;;  %4769 = vmatprep.subr.bf16.mxu1 %v7329_v55  ;;  %v7401_v53 = vld [vmem:[%s9882_s1 + $0xd44] ss:$40 sps:$4 sm:$0xff]   ;;  %v7399_v55 = vld [vmem:[%s9882_s1 + $0xd40] ss:$40 sps:$4 sm:$0xff]  }
 0x22a   : > { %4855 = vmatprep.subr.bf16.mxu0 %v7332_v57  ;;  %v7404_v57 = vld [vmem:[%s9882_s1 + $0xd94] ss:$40 sps:$4 sm:$0xff]  }
 0x22c   : > { %4770 = vmatpush1.bf16.msra.mxu1 %v7327_v58  ;;  %v7402_v58 = vld [vmem:[%s9882_s1 + $0xd90] ss:$40 sps:$4 sm:$0xff]  }
 0x22d   : > { %4856 = vmatpush1.bf16.msra.mxu0 %v7330_v59  ;;  %4771 = vmatprep.subr.bf16.mxu1 %v7335_v60  ;;  %v7407_v59 = vld [vmem:[%s9882_s1 + $0xde4] ss:$40 sps:$4 sm:$0xff]   ;;  %v7405_v60 = vld [vmem:[%s9882_s1 + $0xde0] ss:$40 sps:$4 sm:$0xff]  }
 0x22e   : > { %4857 = vmatprep.subr.bf16.mxu0 %v7338_v61  ;;  %v7410_v61 = vld [vmem:[%s9882_s1 + $0xe34] ss:$40 sps:$4 sm:$0xff]  }
 0x230   : > { %4772 = vmatpush1.bf16.msra.mxu1 %v7333_v62  ;;  %v7408_v62 = vld [vmem:[%s9882_s1 + $0xe30] ss:$40 sps:$4 sm:$0xff]  }
 0x231   : > { %4858 = vmatpush1.bf16.msra.mxu0 %v7336_v63  ;;  %4773 = vmatprep.subr.bf16.mxu1 %v7341_v0  ;;  %v7413_v63 = vld [vmem:[%s9882_s1 + $0xe84] ss:$40 sps:$4 sm:$0xff]   ;;  %v7411_v0 = vld [vmem:[%s9882_s1 + $0xe80] ss:$40 sps:$4 sm:$0xff]  }
 0x232   : > { %4859 = vmatprep.subr.bf16.mxu0 %v7344_v1  ;;  %v7416_v1 = vld [vmem:[%s9882_s1 + $0xed4] ss:$40 sps:$4 sm:$0xff]  }
 0x234   : > { %4774 = vmatpush1.bf16.msra.mxu1 %v7339_v2  ;;  %v7414_v2 = vld [vmem:[%s9882_s1 + $0xed0] ss:$40 sps:$4 sm:$0xff]  }
 0x235   : > { %4860 = vmatpush1.bf16.msra.mxu0 %v7342_v3  ;;  %4775 = vmatprep.subr.bf16.mxu1 %v7347_v4  ;;  %v7419_v3 = vld [vmem:[%s9882_s1 + $0xf24] ss:$40 sps:$4 sm:$0xff]   ;;  %v7417_v4 = vld [vmem:[%s9882_s1 + $0xf20] ss:$40 sps:$4 sm:$0xff]  }
 0x236   : > { %4861 = vmatprep.subr.bf16.mxu0 %v7350_v6  ;;  %v7422_v6 = vld [vmem:[%s9882_s1 + $0xf74] ss:$40 sps:$4 sm:$0xff]  }
 0x238   : > { %4776 = vmatpush1.bf16.msra.mxu1 %v7345_v7  ;;  %v7420_v7 = vld [vmem:[%s9882_s1 + $0xf70] ss:$40 sps:$4 sm:$0xff]  }
 0x239   : > { %4862 = vmatpush1.bf16.msra.mxu0 %v7348_v8  ;;  %4777 = vmatprep.subr.bf16.mxu1 %v7353_v9  ;;  %v7425_v8 = vld [vmem:[%s9882_s1 + $0xfc4] ss:$40 sps:$4 sm:$0xff]   ;;  %v7423_v9 = vld [vmem:[%s9882_s1 + $0xfc0] ss:$40 sps:$4 sm:$0xff]  }
 0x23a   : > { %4863 = vmatprep.subr.bf16.mxu0 %v7356_v56  ;;  %v7431_v56 = vld [vmem:[%s9882_s1 + $0x1064] ss:$40 sps:$4 sm:$0xff]  }
 0x23c   : > { %4778 = vmatpush1.bf16.msra.mxu1 %v7351_v11  ;;  %v7429_v11 = vld [vmem:[%s9882_s1 + $0x1060] ss:$40 sps:$4 sm:$0xff]  }
 0x23d   : > { %4864 = vmatpush1.bf16.msra.mxu0 %v7354_v13  ;;  %4779 = vmatprep.subr.bf16.mxu1 %v7359_v15  ;;  %v7434_v13 = vld [vmem:[%s9882_s1 + $0x10b4] ss:$40 sps:$4 sm:$0xff]   ;;  %v7432_v15 = vld [vmem:[%s9882_s1 + $0x10b0] ss:$40 sps:$4 sm:$0xff]  }
 0x23e   : > { %4865 = vmatprep.subr.bf16.mxu0 %v7362_v17  ;;  %v7437_v17 = vld [vmem:[%s9882_s1 + $0x1104] ss:$40 sps:$4 sm:$0xff]  }
 0x240   : > { %4780 = vmatpush1.bf16.msra.mxu1 %v7357_v40  ;;  %v7469_v40 = vld [vmem:[%s9883_s2 + $0x50] sm:$0xff]  }
 0x241   : > { %4866 = vmatpush1.bf16.msra.mxu0 %v7360_v42  ;;  %4781 = vmatprep.subr.bf16.mxu1 %v7365_v33  ;;  %v7470_v33 = vld [vmem:[%s9883_s2 + $0x10] sm:$0xff]  }
 0x242   : > { %4867 = vmatprep.subr.bf16.mxu0 %v7368_v18 }
 0x244   : > { %4782 = vmatpush1.bf16.msra.mxu1 %v7363_v19  ;;  %v4966_v19 = vmul.f32 %v8944_v10, %v8944_v10  ;;  %v4971_v10 = vmul.f32 %v8950_v14, %v8950_v14  ;;  %v7443_v14 = vld [vmem:[%s9882_s1 + $0x11a4] ss:$40 sps:$4 sm:$0xff]  }
 0x245   : > { %4868 = vmatpush1.bf16.msra.mxu0 %v7366_v45  ;;  %6343 = vmatprep.subr.bf16.mxu1 %v7465_v22  ;;  %v7440_v22 = vld [vmem:[%s9882_s1 + $0x1154] ss:$40 sps:$4 sm:$0xff]  }
 0x246   : > { %4880 = vmatprep.subr.bf16.mxu0 %v7371_v5 }
 0x247   : > { %4784 = vmatmul.mubr.bf16.vlgmr.msra.gmra.mrb[8].mxu1 %v7891_v54 }
 0x248   : > { %4870 = vmatmul.mubr.bf16.vlgmr.msra.gmra.mrb[8].mxu0 %v7858_v36  ;;  %v7377_v36 = vld [vmem:[%s9882_s1 + $0xac4] ss:$40 sps:$4 sm:$0xff]   ;;  %6344 = vmatpush3.bf16.msra.mxu1 %v7466_v23  ;;  %v7471_v23 = vld [vmem:[%s9883_s2 + $0x58] sm:$0xff]  }
 0x249   : > { %4881 = vmatpush1.bf16.msra.mxu0 %v7369_v20  ;;  %4912 = vmatprep.mubr.bf16.mxu0 %v7877_v48  ;;  %v7380_v48 = vld [vmem:[%s9882_s1 + $0xb14] ss:$40 sps:$4 sm:$0xff]   ;;  %v7435_v20 = vld [vmem:[%s9882_s1 + $0x1100] ss:$40 sps:$4 sm:$0xff]  }
 0x24a   : > { %4882 = vmatprep.subr.bf16.mxu0 %v7374_v21  ;;  %6345 = vmatprep.subr.bf16.mxu1 %v7467_v24 }
 0x24c   : > { %6346 = vmatpush3.bf16.msra.mxu1 %v7468_v26 }
 0x24d   : > { %4883 = vmatpush1.bf16.msra.mxu0 %v7372_v25  ;;  %6347 = vmatprep.subr.bf16.mxu1 %v7469_v40  ;;  %v4968_v40 = vmul.f32 %v9341_v32, %v9341_v32 }
 0x24e   : > { %4884 = vmatprep.subr.bf16.mxu0 %v7377_v36  ;;  %v7472_v36 = vld [vmem:[%s9883_s2 + $0x18] sm:$0xff]  }
 0x250   : > { %6348 = vmatpush3.bf16.msra.mxu1 %v7470_v33 }
 0x251   : > { %4885 = vmatpush1.bf16.msra.mxu0 %v7375_v27  ;;  %6349 = vmatprep.subr.bf16.mxu1 %v7471_v23  ;;  %v7438_v27 = vld [vmem:[%s9882_s1 + $0x1150] ss:$40 sps:$4 sm:$0xff]  }
 0x252   : > { %4886 = vmatprep.subr.bf16.mxu0 %v7380_v48  ;;  %v7473_v48 = vld [vmem:[%s9883_s2 + $0x60] sm:$0xff]  }
 0x254   : > { %6350 = vmatpush3.bf16.msra.mxu1 %v7472_v36 }
 0x255   : > { %4887 = vmatpush1.bf16.msra.mxu0 %v7378_v28  ;;  %v7474_v28 = vld [vmem:[%s9883_s2 + $0x20] sm:$0xff]   ;;  %6351 = vmatprep.subr.bf16.mxu1 %v7473_v48 }
 0x256   : > { %4888 = vmatprep.subr.bf16.mxu0 %v7383_v29  ;;  %v7475_v29 = vld [vmem:[%s9883_s2 + $0x68] sm:$0xff]  }
 0x258   : > { %6352 = vmatpush3.bf16.msra.mxu1 %v7474_v28 }
 0x259   : > { %4889 = vmatpush1.bf16.msra.mxu0 %v7381_v30  ;;  %v7441_v30 = vld [vmem:[%s9882_s1 + $0x11a0] ss:$40 sps:$4 sm:$0xff]   ;;  %6353 = vmatprep.subr.bf16.mxu1 %v7475_v29 }
 0x25a   : > { %4890 = vmatprep.subr.bf16.mxu0 %v7386_v31  ;;  %v7476_v31 = vld [vmem:[%s9883_s2 + $0x28] sm:$0xff]  }
 0x25c   : > { %6354 = vmatpush3.bf16.msra.mxu1 %v7476_v31 }
 0x25d   : > { %4891 = vmatpush1.bf16.msra.mxu0 %v7384_v37  ;;  %v7446_v37 = vld [vmem:[%s9882_s1 + $0x11f4] ss:$40 sps:$4 sm:$0xff]  }
 0x25e   : > { %4892 = vmatprep.subr.bf16.mxu0 %v7389_v38  ;;  %v7477_v38 = vld [vmem:[%s9883_s2 + $0x70] sm:$0xff]  }
 0x25f   : > { %6355 = vmatprep.subr.bf16.mxu1 %v7477_v38 }
 0x261   : > { %4893 = vmatpush1.bf16.msra.mxu0 %v7387_v43  ;;  %v7444_v43 = vld [vmem:[%s9882_s1 + $0x11f0] ss:$40 sps:$4 sm:$0xff]  }
 0x262   : > { %4894 = vmatprep.subr.bf16.mxu0 %v7392_v44  ;;  %v7478_v44 = vld [vmem:[%s9883_s2 + $0x30] sm:$0xff]  }
 0x263   : > { %6356 = vmatpush3.bf16.msra.mxu1 %v7478_v44 }
 0x265   : > { %4895 = vmatpush1.bf16.msra.mxu0 %v7390_v46  ;;  %v7449_v46 = vld [vmem:[%s9882_s1 + $0x1244] ss:$40 sps:$4 sm:$0xff]  }
 0x266   : > { %4896 = vmatprep.subr.bf16.mxu0 %v7395_v47  ;;  %v7479_v47 = vld [vmem:[%s9883_s2 + $0x78] sm:$0xff]  }
 0x267   : > { %6357 = vmatprep.subr.bf16.mxu1 %v7479_v47  ;;  %v7482_v47 = vld [vmem:[%s9883_s2 + $0x80] sm:$0xff]  }
 0x269   : > { %4897 = vmatpush1.bf16.msra.mxu0 %v7393_v50 }
 0x26a   : > { %4898 = vmatprep.subr.bf16.mxu0 %v7398_v51 }
 0x26d   : > { %4899 = vmatpush1.bf16.msra.mxu0 %v7396_v52 }
 0x26e   : > { %4900 = vmatprep.subr.bf16.mxu0 %v7401_v53  ;;  %v7447_v53 = vld [vmem:[%s9882_s1 + $0x1240] ss:$40 sps:$4 sm:$0xff]  }
 0x271   : > { %4901 = vmatpush1.bf16.msra.mxu0 %v7399_v55  ;;  %v7480_v55 = vld [vmem:[%s9883_s2 + $0x38] sm:$0xff]  }
 0x272   : > { %4902 = vmatprep.subr.bf16.mxu0 %v7404_v57  ;;  %v7452_v57 = vld [vmem:[%s9882_s1 + $0x1294] ss:$40 sps:$4 sm:$0xff]   ;;  %6358 = vmatpush3.bf16.msra.mxu1 %v7480_v55  ;;  %v7484_v55 = vld [vmem:[%s9883_s2 + $0x88] sm:$0xff]  }
 0x275   : > { %4903 = vmatpush1.bf16.msra.mxu0 %v7402_v58 }
 0x276   : > { %4904 = vmatprep.subr.bf16.mxu0 %v7407_v59 }
 0x279   : > { %4905 = vmatpush1.bf16.msra.mxu0 %v7405_v60 }
 0x27a   : > { %4906 = vmatprep.subr.bf16.mxu0 %v7410_v61 }
 0x27d   : > { %4907 = vmatpush1.bf16.msra.mxu0 %v7408_v62 }
 0x27e   : > { %4908 = vmatprep.subr.bf16.mxu0 %v7413_v63  ;;  %v7450_v63 = vld [vmem:[%s9882_s1 + $0x1290] ss:$40 sps:$4 sm:$0xff]  }
 0x281   : > { %4909 = vmatpush1.bf16.msra.mxu0 %v7411_v0 }
 0x282   : > { %4910 = vmatprep.subr.bf16.mxu0 %v7416_v1 }
 0x285   : > { %4911 = vmatpush1.bf16.msra.mxu0 %v7414_v2  ;;  %v7455_v2 = vld [vmem:[%s9882_s1 + $0x12e4] ss:$40 sps:$4 sm:$0xff]  }
 0x286   : > { %4923 = vmatprep.subr.bf16.mxu0 %v7419_v3 }
 0x288   : > { %4913 = vmatmul.mubr.bf16.vlgmr.msra.gmra.mrb[8].mxu0 %v7818_v16  ;;  %v7428_v16 = vld [vmem:[%s9882_s1 + $0x1014] ss:$40 sps:$4 sm:$0xff]  }
 0x289   : > { %4924 = vmatpush1.bf16.msra.mxu0 %v7417_v4  ;;  %4955 = vmatprep.mubr.bf16.mxu0 %v7879_v49  ;;  %v7426_v49 = vld [vmem:[%s9882_s1 + $0x1010] ss:$40 sps:$4 sm:$0xff]   ;;  %v7481_v4 = vld [vmem:[%s9883_s2 + $0xc0] sm:$0xff]  }
 0x28a   : > { %4925 = vmatprep.subr.bf16.mxu0 %v7422_v6  ;;  %v7453_v6 = vld [vmem:[%s9882_s1 + $0x12e0] ss:$40 sps:$4 sm:$0xff]   ;;  %6365 = vmatprep.subr.bf16.mxu1 %v7481_v4  ;;  %v7496_v4 = vld [vmem:[%s9883_s2 + $0xb8] sm:$0xff]  }
 0x28d   : > { %4926 = vmatpush1.bf16.msra.mxu0 %v7420_v7  ;;  %v7458_v7 = vld [vmem:[%s9882_s1 + $0x1334] ss:$40 sps:$4 sm:$0xff]  }
 0x28e   : > { %4927 = vmatprep.subr.bf16.mxu0 %v7425_v8  ;;  %v7456_v8 = vld [vmem:[%s9882_s1 + $0x1330] ss:$40 sps:$4 sm:$0xff]  }
 0x291   : > { %4928 = vmatpush1.bf16.msra.mxu0 %v7423_v9  ;;  %v7461_v9 = vld [vmem:[%s9882_s1 + $0x1384] ss:$40 sps:$4 sm:$0xff]  }
 0x292   : > { %4929 = vmatprep.subr.bf16.mxu0 %v7428_v16  ;;  %v7459_v16 = vld [vmem:[%s9882_s1 + $0x1380] ss:$40 sps:$4 sm:$0xff]  }
 0x295   : > { %4930 = vmatpush1.bf16.msra.mxu0 %v7426_v49  ;;  %v7464_v49 = vld [vmem:[%s9882_s1 + $0x13d4] ss:$40 sps:$4 sm:$0xff]  }
 0x296   : > { %4931 = vmatprep.subr.bf16.mxu0 %v7431_v56  ;;  %v7462_v56 = vld [vmem:[%s9882_s1 + $0x13d0] ss:$40 sps:$4 sm:$0xff]  }
 0x299   : > { %4932 = vmatpush1.bf16.msra.mxu0 %v7429_v11 }
 0x29a   : > { %4933 = vmatprep.subr.bf16.mxu0 %v7434_v13  ;;  %v4967_v13 = vmul.f32 %v8947_v12, %v8947_v12 }
 0x29b   : > { %v9618_v42 = vpop.f32.mrb[4].mxu0 }
 0x29c   : > { %v4615_v18 = vpop.f32.mrb[5].mxu0 }
 0x29d   : > { %v4976_v45 = vmul.f32 %v4615_v18, %v4615_v18  ;;  %v9625_v5 = vpop.f32.mrb[6].mxu0  ;;  %4934 = vmatpush1.bf16.msra.mxu0 %v7432_v15 }
 0x29e   : > { %v4619_v21 = vpop.f32.mrb[7].mxu0  ;;  %4935 = vmatprep.subr.bf16.mxu0 %v7437_v17 }
 0x29f   : > { %v4986_v24 = vadd.f32 %v4976_v45, %v4966_v19  ;;  %v4981_v25 = vmul.f32 %v4619_v21, %v4619_v21  ;;  %v4972_v19 = vmul.f32 %v8959_v41, %v8959_v41 }
 0x2a1   : > { %7505 = vrsqrt.f32 %v4986_v24  ;;  %v4991_v26 = vadd.f32 %v4981_v25, %v4971_v10  ;;  %4936 = vmatpush1.bf16.msra.mxu0 %v7435_v20  ;;  %vm4998_vm3 = vcmp.eq.f32.partialorder %v4986_v24, inf  ;;  %v5001_v60 = vand.u32 2147483648, %v4986_v24 }
 0x2a2   : > { %4937 = vmatprep.subr.bf16.mxu0 %v7440_v22  ;;  %vm5000_vm5 = vcmp.eq.f32.partialorder %v4986_v24, 0.0 }
 0x2a3   : > { %7507 = vrsqrt.f32 %v4991_v26  ;;  %vm5033_vm4 = vcmp.eq.f32.partialorder %v4991_v26, inf  ;;  %v5036_v61 = vand.u32 2147483648, %v4991_v26  ;;  %vm5035_vm6 = vcmp.eq.f32.partialorder %v4991_v26, 0.0 }
 0x2a5   : > { %4938 = vmatpush1.bf16.msra.mxu0 %v7438_v27 }
 0x2a6   : > { %4939 = vmatprep.subr.bf16.mxu0 %v7443_v14 }
 0x2a9   : > { %4940 = vmatpush1.bf16.msra.mxu0 %v7441_v30 }
 0x2aa   : > { %4941 = vmatprep.subr.bf16.mxu0 %v7446_v37 }
 0x2ab   : > { %v7506_v50 = vpop.eup %7505 }
 0x2ac   : > { %v4997_v51 = vmul.f32 %v7506_v50, %v4986_v24 }
 0x2ad   : > { %v7508_v52 = vpop.eup %7507  ;;  %4942 = vmatpush1.bf16.msra.mxu0 %v7444_v43 }
 0x2ae   : > { %4943 = vmatprep.subr.bf16.mxu0 %v7449_v46  ;;  %v4999_v58 = vsel %vm4998_vm3, %v4986_v24, %v4997_v51  ;;  %v5032_v59 = vmul.f32 %v7508_v52, %v4991_v26  ;;  %v7483_v52 = vld [vmem:[%s9883_s2 + $0xc8] sm:$0xff]  }
 0x2af   : > { %v9692_v0 = vsel %vm5000_vm5, %v5001_v60, %v4999_v58  ;;  %v7486_v58 = vld [vmem:[%s9883_s2 + $0x90] sm:$0xff]   ;;  %v7488_v60 = vld [vmem:[%s9883_s2 + $0x98] sm:$0xff]  }
 0x2b0   : > { %v5034_v62 = vsel %vm5033_vm4, %v4991_v26, %v5032_v59  ;;  %v7487_v59 = vld [vmem:[%s9883_s2 + $0xd8] sm:$0xff]  }
 0x2b1   : > { %4944 = vmatpush1.bf16.msra.mxu0 %v7447_v53  ;;  %v9694_v1 = vsel %vm5035_vm6, %v5036_v61, %v5034_v62  ;;  %v7489_v61 = vld [vmem:[%s9883_s2 + $0xe0] sm:$0xff]  }
 0x2b2   : > { %4945 = vmatprep.subr.bf16.mxu0 %v7452_v57  ;;  %v5066_v3 = vpack.c.bf16 %v9694_v1, %v9692_v0  ;;  %v7485_v57 = vld [vmem:[%s9883_s2 + $0xd0] sm:$0xff]   ;;  %v7490_v62 = vld [vmem:[%s9883_s2 + $0xa0] sm:$0xff]   ;;  %v7492_v0 = vld [vmem:[%s9883_s2 + $0xa8] sm:$0xff]  }
 0x2b3   : > { %v7493_v1 = vld [vmem:[%s9883_s2 + $0xf0] sm:$0xff]  }
 0x2b5   : > { %4946 = vmatpush1.bf16.msra.mxu0 %v7450_v63  ;;  %v7491_v63 = vld [vmem:[%s9883_s2 + $0xe8] sm:$0xff]  }
 0x2b6   : > { %4947 = vmatprep.subr.bf16.mxu0 %v7455_v2  ;;  %v7494_v2 = vld [vmem:[%s9883_s2 + $0xb0] sm:$0xff]  }
 0x2b9   : > { %4948 = vmatpush1.bf16.msra.mxu0 %v7453_v6  ;;  %v7553_v6 = vmov 0.0  }
 0x2ba   : > { %4949 = vmatprep.subr.bf16.mxu0 %v7458_v7 }
 0x2bd   : > { %4950 = vmatpush1.bf16.msra.mxu0 %v7456_v8  ;;  %v4969_v8 = vmul.f32 %v9343_v34, %v9343_v34 }
 0x2be   : > { %4951 = vmatprep.subr.bf16.mxu0 %v7461_v9 }
 0x2c1   : > { %4952 = vmatpush1.bf16.msra.mxu0 %v7459_v16 }
 0x2c2   : > { %4953 = vmatprep.subr.bf16.mxu0 %v7464_v49  ;;  %v4970_v49 = vmul.f32 %v9618_v42, %v9618_v42 }
 0x2c5   : > { %4954 = vmatpush1.bf16.msra.mxu0 %v7462_v56 }
 0x2c8   : > { %4956 = vmatmul.mubr.bf16.vlgmr.msra.gmra.mrb[8].mxu0 %v7891_v54  ;;  %v4973_v54 = vmul.f32 %v9345_v35, %v9345_v35 }
 0x31a   : > { %v4785_v11 = vpop.f32.mrb[8].mxu1 }
 0x31b   : > { %v4977_v15 = vmul.f32 %v4785_v11, %v4785_v11  ;;  %v4787_v17 = vpop.f32.mrb[9].mxu1 }
 0x31c   : > { %v4978_v33 = vmul.f32 %v4787_v17, %v4787_v17  ;;  %v4789_v18 = vpop.f32.mrb[10].mxu1 }
 0x31d   : > { %v4987_v45 = vadd.f32 %v4977_v15, %v4967_v13  ;;  %v4982_v20 = vmul.f32 %v4789_v18, %v4789_v18  ;;  %v4791_v21 = vpop.f32.mrb[11].mxu1  ;;  %v4974_v13 = vmul.f32 %v9353_v39, %v9353_v39 }
 0x31e   : > { %v4988_v22 = vadd.f32 %v4978_v33, %v4968_v40  ;;  %v4983_v23 = vmul.f32 %v4791_v21, %v4791_v21  ;;  %v4975_v33 = vmul.f32 %v9625_v5, %v9625_v5 }
 0x31f   : > { %7509 = vrsqrt.f32 %v4987_v45  ;;  %v4992_v12 = vadd.f32 %v4982_v20, %v4972_v19  ;;  %vm5005_vm7 = vcmp.eq.f32.partialorder %v4987_v45, inf  ;;  %vm5007_vm8 = vcmp.eq.f32.partialorder %v4987_v45, 0.0 }
 0x320   : > { %7511 = vrsqrt.f32 %v4988_v22  ;;  %v4993_v10 = vadd.f32 %v4983_v23, %v4973_v54  ;;  %v5008_v41 = vand.u32 2147483648, %v4987_v45  ;;  %vm5012_vm9 = vcmp.eq.f32.partialorder %v4988_v22, inf }
 0x321   : > { %7513 = vrsqrt.f32 %v4992_v12  ;;  %vm5040_vm10 = vcmp.eq.f32.partialorder %v4992_v12, inf  ;;  %vm5042_vm11 = vcmp.eq.f32.partialorder %v4992_v12, 0.0  ;;  %v5043_v48 = vand.u32 2147483648, %v4992_v12 }
 0x322   : > { %7515 = vrsqrt.f32 %v4993_v10  ;;  %vm5014_vm12 = vcmp.eq.f32.partialorder %v4988_v22, 0.0  ;;  %v5015_v31 = vand.u32 2147483648, %v4988_v22  ;;  %vm5047_vm13 = vcmp.eq.f32.partialorder %v4993_v10, inf }
 0x323   : > { %v5050_v37 = vand.u32 2147483648, %v4993_v10  ;;  %vm5049_vm14 = vcmp.eq.f32.partialorder %v4993_v10, 0.0 }
 0x329   : > { %v7510_v32 = vpop.eup %7509 }
 0x32a   : > { %v7512_v24 = vpop.eup %7511  ;;  %v5004_v25 = vmul.f32 %v7510_v32, %v4987_v45 }
 0x32b   : > { %v7514_v36 = vpop.eup %7513  ;;  %v5011_v26 = vmul.f32 %v7512_v24, %v4988_v22 }
 0x32c   : > { %v7516_v27 = vpop.eup %7515  ;;  %v5006_v14 = vsel %vm5005_vm7, %v4987_v45, %v5004_v25  ;;  %v5039_v35 = vmul.f32 %v7514_v36, %v4992_v12  ;;  %vm7554_vm7 = vmmov 0  }
 0x32d   : > { %v5013_v28 = vsel %vm5012_vm9, %v4988_v22, %v5011_v26  ;;  %v5046_v29 = vmul.f32 %v7516_v27, %v4993_v10  ;;  %v5009_v38 = vsel %vm5007_vm8, %v5008_v41, %v5006_v14  ;;  %vm5554_vm8 = vcmask 130048  }
 0x32e   : > { %v5041_v30 = vsel %vm5040_vm10, %v4992_v12, %v5039_v35  ;;  %v9738_v50 = vsel %vm5014_vm12, %v5015_v31, %v5013_v28  ;;  %v7498_v31 = vld [vmem:[%s9883_s2 + $0x108] sm:$0xff]  }
 0x32f   : > { %v5044_v43 = vsel %vm5042_vm11, %v5043_v48, %v5041_v30  ;;  %v5048_v44 = vsel %vm5047_vm13, %v4993_v10, %v5046_v29  ;;  %v7497_v48 = vld [vmem:[%s9883_s2 + $0x100] sm:$0xff]  }
 0x330   : > { %v5067_v46 = vpack.c.bf16 %v5044_v43, %v5009_v38  ;;  %v9740_v51 = vsel %vm5049_vm14, %v5050_v37, %v5048_v44  ;;  %v7499_v37 = vld [vmem:[%s9883_s2 + $0x110] sm:$0xff]   ;;  %v7500_v38 = vld [vmem:[%s9883_s2 + $0x118] sm:$0xff]   ;;  %v7501_v43 = vld [vmem:[%s9883_s2 + $0x120] sm:$0xff]  }
 0x331   : > { %v5068_v53 = vpack.c.bf16 %v9740_v51, %v9738_v50  ;;  %v7502_v44 = vld [vmem:[%s9883_s2 + $0x128] sm:$0xff]  }
 0x332   : > { %5423 = vmatprep.mubr.bf16.mxu1 %v5067_v46  ;;  %v7503_v46 = vld [vmem:[%s9883_s2 + $0x130] sm:$0xff]  }
 0x333   : > { %5424 = vmatmul.mubr.bf16.vlgmr.msra.gmra.mrb[12].mxu1 %v5066_v3  ;;  %v7495_v3 = vld [vmem:[%s9883_s2 + $0xf8] sm:$0xff]  }
 0x334   : > { %6366 = vmatpush3.bf16.msra.mxu1 %v7482_v47  ;;  %v7504_v47 = vld [vmem:[%s9883_s2 + $0x138] sm:$0xff]  }
 0x335   : > { %6367 = vmatprep.subr.bf16.mxu1 %v7483_v52 }
 0x338   : > { %6368 = vmatpush3.bf16.msra.mxu1 %v7484_v55 }
 0x339   : > { %6369 = vmatprep.subr.bf16.mxu1 %v7485_v57 }
 0x33c   : > { %6370 = vmatpush3.bf16.msra.mxu1 %v7486_v58 }
 0x33d   : > { %6371 = vmatprep.subr.bf16.mxu1 %v7487_v59 }
 0x340   : > { %6372 = vmatpush3.bf16.msra.mxu1 %v7488_v60 }
 0x341   : > { %6373 = vmatprep.subr.bf16.mxu1 %v7489_v61 }
 0x344   : > { %6374 = vmatpush3.bf16.msra.mxu1 %v7490_v62 }
 0x345   : > { %6375 = vmatprep.subr.bf16.mxu1 %v7491_v63 }
 0x348   : > { %6376 = vmatpush3.bf16.msra.mxu1 %v7492_v0 }
 0x349   : > { %6377 = vmatprep.subr.bf16.mxu1 %v7493_v1 }
 0x34c   : > { %6378 = vmatpush3.bf16.msra.mxu1 %v7494_v2 }
 0x34d   : > { %6379 = vmatprep.subr.bf16.mxu1 %v7495_v3 }
 0x350   : > { %6380 = vmatpush3.bf16.msra.mxu1 %v7496_v4 }
 0x351   : > { %6396 = vmatprep.subr.bf16.mxu1 %v7553_v6 }
 0x39b   : > { %v4957_v7 = vpop.f32.mrb[8].mxu0 }
 0x39c   : > { %v4979_v9 = vmul.f32 %v4957_v7, %v4957_v7  ;;  %v4959_v16 = vpop.f32.mrb[9].mxu0 }
 0x39d   : > { %v4980_v56 = vmul.f32 %v4959_v16, %v4959_v16  ;;  %v4961_v11 = vpop.f32.mrb[10].mxu0 }
 0x39e   : > { %v4989_v15 = vadd.f32 %v4979_v9, %v4969_v8  ;;  %v4984_v17 = vmul.f32 %v4961_v11, %v4961_v11  ;;  %v4963_v40 = vpop.f32.mrb[11].mxu0 }
 0x39f   : > { %v4990_v18 = vadd.f32 %v4980_v56, %v4970_v49  ;;  %v4985_v19 = vmul.f32 %v4963_v40, %v4963_v40 }
 0x3a0   : > { %7517 = vrsqrt.f32 %v4989_v15  ;;  %v4994_v34 = vadd.f32 %v4984_v17, %v4974_v13  ;;  %vm5019_vm15 = vcmp.eq.f32.partialorder %v4989_v15, inf  ;;  %vm5021_vm0 = vcmp.eq.f32.partialorder %v4989_v15, 0.0 }
 0x3a1   : > { %7519 = vrsqrt.f32 %v4990_v18  ;;  %v4995_v45 = vadd.f32 %v4985_v19, %v4975_v33  ;;  %v5022_v39 = vand.u32 2147483648, %v4989_v15  ;;  %vm5026_vm1 = vcmp.eq.f32.partialorder %v4990_v18, inf }
 0x3a2   : > { %7521 = vrsqrt.f32 %v4994_v34  ;;  %vm5054_vm2 = vcmp.eq.f32.partialorder %v4994_v34, inf  ;;  %vm5056_vm3 = vcmp.eq.f32.partialorder %v4994_v34, 0.0  ;;  %v5057_v10 = vand.u32 2147483648, %v4994_v34 }
 0x3a3   : > { %7523 = vrsqrt.f32 %v4995_v45  ;;  %vm5028_vm4 = vcmp.eq.f32.partialorder %v4990_v18, 0.0  ;;  %v5029_v36 = vand.u32 2147483648, %v4990_v18  ;;  %vm5061_vm5 = vcmp.eq.f32.partialorder %v4995_v45, inf }
 0x3a4   : > { %v5064_v41 = vand.u32 2147483648, %v4995_v45  ;;  %vm5063_vm6 = vcmp.eq.f32.partialorder %v4995_v45, 0.0 }
 0x3aa   : > { %v7518_v42 = vpop.eup %7517 }
 0x3ab   : > { %v7520_v20 = vpop.eup %7519  ;;  %v5018_v21 = vmul.f32 %v7518_v42, %v4989_v15 }
 0x3ac   : > { %v7522_v54 = vpop.eup %7521  ;;  %v5025_v22 = vmul.f32 %v7520_v20, %v4990_v18 }
 0x3ad   : > { %v7524_v23 = vpop.eup %7523  ;;  %v5020_v12 = vsel %vm5019_vm15, %v4989_v15, %v5018_v21  ;;  %v5053_v5 = vmul.f32 %v7522_v54, %v4994_v34 }
 0x3ae   : > { %v5027_v32 = vsel %vm5026_vm1, %v4990_v18, %v5025_v22  ;;  %v5060_v24 = vmul.f32 %v7524_v23, %v4995_v45  ;;  %v5023_v26 = vsel %vm5021_vm0, %v5022_v39, %v5020_v12 }
 0x3af   : > { %v5055_v25 = vsel %vm5054_vm2, %v4994_v34, %v5053_v5  ;;  %v5030_v28 = vsel %vm5028_vm4, %v5029_v36, %v5027_v32 }
 0x3b0   : > { %v5058_v27 = vsel %vm5056_vm3, %v5057_v10, %v5055_v25  ;;  %v5062_v14 = vsel %vm5061_vm5, %v4995_v45, %v5060_v24 }
 0x3b1   : > { %v5069_v35 = vpack.c.bf16 %v5058_v27, %v5023_v26  ;;  %v5065_v29 = vsel %vm5063_vm6, %v5064_v41, %v5062_v14 }
 0x3b2   : > { %v5070_v30 = vpack.c.bf16 %v5065_v29, %v5030_v28 }
 0x3b3   : > { %5464 = vmatprep.mubr.bf16.mxu1 %v5069_v35 }
 0x3b4   : > { %5465 = vmatmul.mubr.bf16.vlgmr.msra.gmra.mrb[16].mxu1 %v5068_v53 }
 0x3b5   : > { %6397 = vmatpush3.bf16.msra.mxu1 %v7497_v48  ;;  %6412 = vmatprep.mubr.msk.bf16.mxu1 %vm7554_vm7, %v7553_v6 }
 0x3b6   : > { %6398 = vmatprep.subr.bf16.mxu1 %v7553_v6 }
 0x3b9   : > { %6399 = vmatpush3.bf16.msra.mxu1 %v7498_v31 }
 0x3ba   : > { %6400 = vmatprep.subr.bf16.mxu1 %v7553_v6 }
 0x3bd   : > { %6401 = vmatpush3.bf16.msra.mxu1 %v7499_v37 }
 0x3be   : > { %6402 = vmatprep.subr.bf16.mxu1 %v7553_v6 }
 0x3c1   : > { %6403 = vmatpush3.bf16.msra.mxu1 %v7500_v38 }
 0x3c2   : > { %6404 = vmatprep.subr.bf16.mxu1 %v7553_v6 }
 0x3c5   : > { %6405 = vmatpush3.bf16.msra.mxu1 %v7501_v43 }
 0x3c6   : > { %6406 = vmatprep.subr.bf16.mxu1 %v7553_v6 }
 0x3c9   : > { %6407 = vmatpush3.bf16.msra.mxu1 %v7502_v44 }
 0x3ca   : > { %6408 = vmatprep.subr.bf16.mxu1 %v7553_v6 }
 0x3cd   : > { %6409 = vmatpush3.bf16.msra.mxu1 %v7503_v46 }
 0x3ce   : > { %6410 = vmatprep.subr.bf16.mxu1 %v7553_v6 }
 0x3d1   : > { %6411 = vmatpush3.bf16.msra.mxu1 %v7504_v47 }
 0x3d4   : > { %6413 = vmatmul.mubr.bf16.vlgmr.msra.gmra.mrb[20].mxu1 %v5070_v30 }
 0x406   : > { %v6359_v50 = vpop.f32.mrb[12].mxu1 }
 0x407   : > { %v6360_v51 = vpop.f32.mrb[13].mxu1 }
 0x408   : > { %v6361_v52 = vadd.f32 %v6360_v51, %v6359_v50  ;;  %v6362_v53 = vpop.f32.mrb[14].mxu1 }
 0x409   : > { %v6363_v55 = vpop.f32.mrb[15].mxu1 }
 0x40a   : > { %v6364_v57 = vadd.f32 %v6363_v55, %v6362_v53 }
 0x487   : > { %v6381_v58 = vpop.f32.mrb[16].mxu1 }
 0x488   : > { %v6382_v59 = vpop.f32.mrb[17].mxu1 }
 0x489   : > { %v6383_v60 = vadd.f32 %v6382_v59, %v6381_v58  ;;  %v6384_v61 = vpop.f32.mrb[18].mxu1 }
 0x48a   : > { %v6385_v62 = vpop.f32.mrb[19].mxu1 }
 0x48b   : > { %v6386_v63 = vadd.f32 %v6385_v62, %v6384_v61  ;;  %v5467_v0 = vadd.f32 %v6383_v60, %v6361_v52 }
 0x48d   : > { %v5470_v1 = vadd.f32 %v6386_v63, %v6364_v57 }
 0x4a7   : > { %v5507_v2 = vpop.f32.mrb[20].mxu1 }
 0x4a8   : > { %v5508_v3 = vadd.f32 %v5507_v2, %v5467_v0  ;;  %v6414_v4 = vpop.f32.mrb[21].mxu1 }
 0x4a9   : > { %v5510_v6 = vpop.f32.mrb[22].mxu1 }
 0x4aa   : > { %v5514_v7 = vmax.f32 %v5508_v3, 1e-05  ;;  %v5511_v8 = vadd.f32 %v5510_v6, %v5470_v1  ;;  %v6415_v9 = vpop.f32.mrb[23].mxu1 }
 0x4ac   : > { %7525 = vlog2.f32 %v5514_v7  ;;  %v5515_v16 = vmax.f32 %v5511_v8, 1e-05 }
 0x4ae   : > { %7527 = vlog2.f32 %v5515_v16 }
 0x4b6   : > { %v7526_v49 = vpop.eup %7525 }
 0x4b7   : > { %v5517_v56 = vmul.f32 0.6931472, %v7526_v49 }
 0x4b8   : > { %v7528_v11 = vpop.eup %7527 }
 0x4b9   : > { %v5520_v13 = vmul.f32 0.4342945, %v5517_v56  ;;  %v5519_v15 = vmul.f32 0.6931472, %v7528_v11 }
 0x4bb   : > { %5522 = vxpose.xlu0.b32.start [1/2] (short) %v5520_v13, 128  ;;  %v5521_v17 = vmul.f32 0.4342945, %v5519_v15 }
 0x4bf   : > { %5523 = vxpose.xlu0.b32.end [2/2] (short) %v5521_v17, 128 }
 0x53b   : > { %v5538_v40 = vpop.trf.xlu0 }
 0x53c   : > { %5555 = vst.msk [vmem:[%s9838_s26] sm:$0xff] %vm5554_vm8, %v5538_v40 }
 0x53f   : > { %v5539_v33 = vpop.trf.xlu0 }
 0x540   : > { %5556 = vst.msk [vmem:[%s9838_s26 + $0x8] sm:$0xff] %vm5554_vm8, %v5539_v33 }
 0x543   : > { %v5540_v18 = vpop.trf.xlu0 }
 0x544   : > { %5557 = vst.msk [vmem:[%s9838_s26 + $0x10] sm:$0xff] %vm5554_vm8, %v5540_v18 }
 0x547   : > { %v5541_v19 = vpop.trf.xlu0 }
 0x548   : > { %5558 = vst.msk [vmem:[%s9838_s26 + $0x18] sm:$0xff] %vm5554_vm8, %v5541_v19 }
 0x54b   : > { %v5542_v34 = vpop.trf.xlu0 }
 0x54c   : > { %5559 = vst.msk [vmem:[%s9838_s26 + $0x20] sm:$0xff] %vm5554_vm8, %v5542_v34 }
 0x54f   : > { %v5543_v45 = vpop.trf.xlu0 }
 0x550   : > { %5560 = vst.msk [vmem:[%s9838_s26 + $0x28] sm:$0xff] %vm5554_vm8, %v5543_v45 }
 0x553   : > { %v5544_v42 = vpop.trf.xlu0 }
 0x554   : > { %5561 = vst.msk [vmem:[%s9838_s26 + $0x30] sm:$0xff] %vm5554_vm8, %v5544_v42 }
 0x557   : > { %v5545_v20 = vpop.trf.xlu0 }
 0x558   : > { %5562 = vst.msk [vmem:[%s9838_s26 + $0x38] sm:$0xff] %vm5554_vm8, %v5545_v20 }
 0x55b   : > { %v5546_v21 = vpop.trf.xlu0 }
 0x55c   : > { %5563 = vst.msk [vmem:[%s9838_s26 + $0x40] sm:$0xff] %vm5554_vm8, %v5546_v21 }
 0x55f   : > { %v5547_v54 = vpop.trf.xlu0 }
 0x560   : > { %5564 = vst.msk [vmem:[%s9838_s26 + $0x48] sm:$0xff] %vm5554_vm8, %v5547_v54 }
 0x563   : > { %v5548_v39 = vpop.trf.xlu0 }
 0x564   : > { %5565 = vst.msk [vmem:[%s9838_s26 + $0x50] sm:$0xff] %vm5554_vm8, %v5548_v39 }
 0x567   : > { %v5549_v22 = vpop.trf.xlu0 }
 0x568   : > { %5566 = vst.msk [vmem:[%s9838_s26 + $0x58] sm:$0xff] %vm5554_vm8, %v5549_v22 }
 0x56b   : > { %v5550_v23 = vpop.trf.xlu0 }
 0x56c   : > { %5567 = vst.msk [vmem:[%s9838_s26 + $0x60] sm:$0xff] %vm5554_vm8, %v5550_v23 }
 0x56f   : > { %v5551_v12 = vpop.trf.xlu0 }
 0x570   : > { %5568 = vst.msk [vmem:[%s9838_s26 + $0x68] sm:$0xff] %vm5554_vm8, %v5551_v12 }
 0x573   : > { %v5552_v5 = vpop.trf.xlu0 }
 0x574   : > { %5569 = vst.msk [vmem:[%s9838_s26 + $0x70] sm:$0xff] %vm5554_vm8, %v5552_v5 }
 0x577   : > { %v5553_v10 = vpop.trf.xlu0 }
 0x578   : > { %5570 = vst.msk [vmem:[%s9838_s26 + $0x78] sm:$0xff] %vm5554_vm8, %v5553_v10 }
 0x579 PF: > { %s13_s14 = sadd.s32 1, %s7551_s14   ;;  %s9885_s12 = smov %s7547_s13 }
 0x57a   : > { %p10_p5 = scmp.ge.s32.totalorder %s13_s14, 4   ;;  %s9886_s13 = smov %s9888_s15 }
 0x57c   :  { %12 = sbr.rel (!%p10_p5) target bundleno = 2 (0x2), region = 63 }

</bundles_post_ra>
